<compile_context>
chip_gen: v7x
topology: tpu7x:2x2x1
jax: 0.10.0
libtpu: 0.0.40
codegen_flags: <defaults>
</compile_context>

<pallas_src>
import jax
import jax.numpy as jnp
from jax.experimental import pallas as pl
from jax.experimental.pallas import tpu as pltpu

# ----------------------------- scaled-down config -----------------------------
B = 2            # batch
N_BANDS = 32     # filterbank bands (orig exp.n_bands)
T = 128          # frames of pooled filterbank (matches p1's time dim)
C = 32           # model channels
H = 16           # hyperchannels
HYPERLATENT = 8  # hyperlatent
L = 2            # n_layers (number of hyper layers)
N_SAMPLES = 256  # orig 2**15
DILATIONS = (1, 3, 9, 1, 3, 9, 1)
EPS = 1e-5
KP = 128         # embed contraction dim, N_BANDS + 33 = 65 zero-padded to 128
BT = B * T       # batch merged onto the lane axis


# ------------------------------ Pallas kernels --------------------------------
def _context_kernel(xin_ref, ew_ref, eb_ref, wf_ref, bf_ref, g_ref, be_ref,
                    lat_ref):
    """Embed (1x1 conv) + 7 residual dilated Blocks on a single (C, B*T) slab.
    Emits only the latent = last time column of each batch element, as (C, B)."""
    # embed: bf16 MXU operands, f32 accumulation
    x = jnp.dot(ew_ref[...], xin_ref[...],
                preferred_element_type=jnp.float32) + eb_ref[...]      # (C, BT) f32

    t_glob = jax.lax.broadcasted_iota(jnp.int32, (C, BT), 1)           # global lane idx
    t_loc = t_glob % T                                                  # per-batch time idx

    for blk, d in enumerate(DILATIONS):
        # dilated taps via lane rolls (XLU) + local-time masks: rolls that wrap
        # across the batch boundary are zeroed by the t_loc masks.
        prev = jnp.where(t_loc >= d, pltpu.roll(x, d, axis=1), 0.0)        # x[t-d]
        nxt = jnp.where(t_loc < T - d, pltpu.roll(x, BT - d, axis=1), 0.0)  # x[t+d]
        cat = jnp.concatenate([prev, x, nxt], axis=0).astype(jnp.bfloat16)  # (3C, BT)
        # folded conv1(k=3, dilated) + conv2(1x1): one (C, 3C) x (3C, BT) dot
        h = jnp.dot(wf_ref[blk], cat,
                    preferred_element_type=jnp.float32) + bf_ref[blk]       # (C, BT)
        y = h + x                                    # residual
        y = jnp.where(y > 0, y, 0.2 * y)             # leaky_relu(0.2) (after residual)
        # BatchNorm1d, training-mode batch statistics over (B*T) lanes, one pass
        mu = jnp.sum(y, axis=1, keepdims=True) * (1.0 / BT)            # (C, 1)
        ex2 = jnp.sum(y * y, axis=1, keepdims=True) * (1.0 / BT)       # (C, 1)
        var = ex2 - mu * mu
        scale = jax.lax.rsqrt(var + EPS) * g_ref[blk]                  # (C, 1)
        x = y * scale + (be_ref[blk] - mu * scale)                     # fused affine

    # latent = last time column per batch element -> (C, B) via masked lane-reduce
    lat_cols = [jnp.sum(jnp.where(t_glob == (b * T + T - 1), x, 0.0),
                        axis=1, keepdims=True) for b in range(B)]
    lat_ref[...] = jnp.concatenate(lat_cols, axis=1)                   # (C, B)


def context_forward(x_in, ew, eb, wf, bf, gm, bt):
    return pl.pallas_call(
        _context_kernel,
        out_shape=jax.ShapeDtypeStruct((C, B), jnp.float32),
    )(x_in, ew, eb, wf, bf, gm, bt)


def _hyper_apply_kernel(xp2_ref, wbd_ref, bbd_ref, g_ref, be_ref, wo2_ref,
                        bo_ref, o_ref):
    """Apply L hyper-generated linear layers (+ leaky + LayerNorm((N,H))) and
    to_samples, with both batch elements stacked on the sublane axis (2H, N)
    and block-diagonal (2H, 2H) weights -> single grid-less program."""
    xx = xp2_ref[...]                                   # (2H, N) f32
    for i in range(L):
        xx = jnp.dot(wbd_ref[i], xx.astype(jnp.bfloat16),
                     preferred_element_type=jnp.float32) + bbd_ref[i]   # (2H, N)
        if i < L - 1:
            xx = jnp.where(xx > 0, xx, 0.2 * xx)        # leaky_relu(0.2)
            # LayerNorm over the whole (N_SAMPLES, H) slab, per batch half
            halves = []
            for b in range(B):
                hb = xx[b * H:(b + 1) * H, :]           # (H, N)
                mu = jnp.mean(hb)
                var = jnp.mean((hb - mu) ** 2)
                halves.append((hb - mu) * jax.lax.rsqrt(var + EPS)
                              * g_ref[...] + be_ref[...])
            xx = jnp.concatenate(halves, axis=0)        # (2H, N)
    # to_samples: Linear(H, 1) -> lane-dense (1, N) row per batch element
    prod = xx * wo2_ref[...]                            # (2H, N)
    outs = [jnp.sum(prod[b * H:(b + 1) * H, :], axis=0, keepdims=True)
            + bo_ref[...] for b in range(B)]
    o_ref[...] = jnp.stack(outs, axis=0)                # (B, 1, N)


def hyper_apply(xp2, wbd, bbd, gT, bT, wo2, bo):
    return pl.pallas_call(
        _hyper_apply_kernel,
        out_shape=jax.ShapeDtypeStruct((B, 1, N_SAMPLES), jnp.float32),
    )(xp2, wbd, bbd, gT, bT, wo2, bo)


# --------------------- hyper parameter generation (plain jnp) ------------------
# (2, 32)-sized matmuls: launch-overhead dominated; left to XLA (see TODO above).
def _leaky(x):
    return jnp.where(x > 0, x, 0.2 * x)


def _ln_last(x):
    mu = jnp.mean(x, axis=-1, keepdims=True)
    var = jnp.mean((x - mu) ** 2, axis=-1, keepdims=True)
    return (x - mu) * jax.lax.rsqrt(var + EPS)


def hyper_generate(latent, hyper_params):
    """latent: (B, C) -> per-layer block-diagonal (2H, 2H) bf16 weights and
    (2H, 1) biases for the single-step apply kernel."""
    wbds, bbds = [], []
    for hp in hyper_params:
        z = latent
        for j in range(3):
            z = _ln_last(_leaky(z @ hp["los_w"][j] + hp["los_b"][j]))
        z = z @ hp["los_out_w"] + hp["los_out_b"]
        lat = _leaky(z @ hp["to_latent_w"] + hp["to_latent_b"])
        w = (lat @ hp["to_w_w"] + hp["to_w_b"]).reshape(B, H, H)
        wT = jnp.transpose(w, (0, 2, 1))               # pre-transposed for (H,N) layout
        wbd = jnp.zeros((B * H, B * H), jnp.float32)
        for b in range(B):
            wbd = wbd.at[b * H:(b + 1) * H, b * H:(b + 1) * H].set(wT[b])
        wbds.append(wbd.astype(jnp.bfloat16))
        bbds.append((z @ hp["to_b_w"] + hp["to_b_b"]).reshape(B * H, 1))
    return jnp.stack(wbds), jnp.stack(bbds)            # (L,2H,2H) bf16, (L,2H,1) f32


# ---------------------------- parameter construction --------------------------
def init_params(key):
    keys = iter(jax.random.split(key, 256))

    def u(shape, scale=0.1):
        return jax.random.uniform(next(keys), shape, jnp.float32, -scale, scale)

    params = {
        "p1": u((1, 33, T), 1.0),
        "p2": u((1, 33, N_SAMPLES), 1.0),
        "embed_w": u((C, N_BANDS + 33)),               # 1x1 conv weight (Cout, Cin)
        "embed_b": jnp.zeros((C, 1), jnp.float32),
        "embed_pos_w": u((H, 33)),                     # Linear(33, H) weight (H, 33)
        "embed_pos_b": jnp.zeros((H, 1), jnp.float32),
        "norm_gT": jnp.ones((H, N_SAMPLES), jnp.float32),   # LayerNorm((N, H)) affine, stored (H, N)
        "norm_bT": jnp.zeros((H, N_SAMPLES), jnp.float32),
        "to_samples_w": u((H, 1)),                     # Linear(H, 1) stored (H, 1)
        "to_samples_b": jnp.zeros((1, 1), jnp.float32),
        "blocks": [],
        "hyper": [],
    }
    for _ in DILATIONS:
        params["blocks"].append({
            "w1": u((3, C, C)),                        # conv1d k=3 taps, (Cin, Cmid) per tap
            "b1": jnp.zeros((1, C), jnp.float32),
            "w2": u((C, C)),                           # 1x1 conv (Cmid, Cout)
            "b2": jnp.zeros((1, C), jnp.float32),
            "gamma": jnp.ones((1, C), jnp.float32),    # BatchNorm1d affine
            "beta": jnp.zeros((1, C), jnp.float32),
        })
    for _ in range(L):
        params["hyper"].append({
            "los_w": [u((C, C)) for _ in range(3)],
            "los_b": [jnp.zeros((1, C), jnp.float32) for _ in range(3)],
            "los_out_w": u((C, C)),
            "los_out_b": jnp.zeros((1, C), jnp.float32),
            "to_latent_w": u((C, HYPERLATENT)),
            "to_latent_b": jnp.zeros((1, HYPERLATENT), jnp.float32),
            "to_w_w": u((HYPERLATENT, H * H)),
            "to_w_b": jnp.zeros((1, H * H), jnp.float32),
            "to_b_w": u((C, H)),
            "to_b_b": jnp.zeros((1, H), jnp.float32),
        })
    return params


# --------------------------------- forward ------------------------------------
def model_forward(feats, params):
    """feats: (B, N_BANDS, T) = output of exp.pooled_filter_bank (see TODO)."""
    # embed input: channels-first, batch merged onto the lane axis -> (KP, B*T) bf16
    pos = jnp.broadcast_to(params["p1"], (B, 33, T))
    xcat = jnp.concatenate([feats, pos], axis=1)                          # (B, 65, T)
    xcat = jnp.pad(xcat, ((0, 0), (0, KP - (N_BANDS + 33)), (0, 0)))      # (B, KP, T)
    x_in = jnp.transpose(xcat, (1, 0, 2)).reshape(KP, BT).astype(jnp.bfloat16)
    ew = jnp.pad(params["embed_w"],
                 ((0, 0), (0, KP - (N_BANDS + 33)))).astype(jnp.bfloat16)

    # fold conv1(k=3, dilated) + conv2(1x1) of each block into one (C, 3C) bf16 matmul
    wf, bf, gm, bt = [], [], [], []
    for bp in params["blocks"]:
        m = jnp.einsum("kim,mo->kio", bp["w1"], bp["w2"])          # (3, Cin, Cout)
        wf.append(jnp.transpose(m, (2, 0, 1)).reshape(C, 3 * C))   # (Cout, 3*Cin)
        bf.append((bp["b1"] @ bp["w2"] + bp["b2"]).reshape(C, 1))
        gm.append(bp["gamma"].reshape(C, 1))
        bt.append(bp["beta"].reshape(C, 1))
    wf = jnp.stack(wf).astype(jnp.bfloat16)
    bf = jnp.stack(bf)
    gm = jnp.stack(gm)
    bt = jnp.stack(bt)

    # Pallas kernel 1: embed + 7-block dilated context stack -> latent only
    latT = context_forward(x_in, ew, params["embed_b"], wf, bf, gm, bt)   # (C, B)
    latent = latT.T                                                       # (B, C)

    # batch-invariant embed_pos(p2) in (H, N) layout (plain jnp, off the kernel path);
    # stacked to (B*H, N) for the sublane-batched apply kernel
    xp = params["embed_pos_w"] @ params["p2"][0] + params["embed_pos_b"]  # (H, N)
    xp2 = jnp.concatenate([xp] * B, axis=0)                               # (B*H, N)

    # hyper-network parameter generation -> block-diagonal weights (plain jnp, tiny)
    wbd, bbd = hyper_generate(latent, params["hyper"])

    # Pallas kernel 2: hyper layers + LayerNorm + to_samples, one grid-less step
    wo2 = jnp.concatenate([params["to_samples_w"]] * B, axis=0)           # (B*H, 1)
    out = hyper_apply(xp2, wbd, bbd, params["norm_gT"], params["norm_bT"],
                      wo2, params["to_samples_b"])
    return out                                                            # (B, 1, N)


# ----------------------------------- main --------------------------------------
if __name__ == "__main__":
    key = jax.random.PRNGKey(0)
    pkey, xkey = jax.random.split(key)
    params = init_params(pkey)
    # pooled filterbank features (see TODO(synk) at top of file)
    feats = jax.random.normal(xkey, (B, N_BANDS, T), dtype=jnp.float32)

    fwd = jax.jit(model_forward)
    out = jax.block_until_ready(fwd(feats, params))
    assert out.shape == (B, 1, N_SAMPLES), out.shape
    assert bool(jnp.all(jnp.isfinite(out)))
    print("KERNEL_OK")
</pallas_src>

<mosaic_0001>
module attributes {stable_mosaic.version = 11 : i64} {
  func.func @_context_kernel(%arg0: memref<128x256xbf16, #tpu.memory_space<vmem>>, %arg1: memref<32x128xbf16, #tpu.memory_space<vmem>>, %arg2: memref<32x1xf32, #tpu.memory_space<vmem>>, %arg3: memref<7x32x96xbf16, #tpu.memory_space<vmem>>, %arg4: memref<7x32x1xf32, #tpu.memory_space<vmem>>, %arg5: memref<7x32x1xf32, #tpu.memory_space<vmem>>, %arg6: memref<7x32x1xf32, #tpu.memory_space<vmem>>, %arg7: memref<32x2xf32, #tpu.memory_space<vmem>>) attributes {dimension_semantics = [], scalar_prefetch = 0 : i64, scratch_operands = 0 : i64, tpu.core_type = #tpu.core_type<tc>} {
    %c0 = arith.constant 0 : index
    %c0_0 = arith.constant 0 : index
    %0 = vector.load %arg1[%c0, %c0_0] : memref<32x128xbf16, #tpu.memory_space<vmem>>, vector<32x128xbf16>
    %c0_1 = arith.constant 0 : index
    %c0_2 = arith.constant 0 : index
    %1 = vector.load %arg0[%c0_1, %c0_2] : memref<128x256xbf16, #tpu.memory_space<vmem>>, vector<128x256xbf16>
    %cst = arith.constant dense<0.000000e+00> : vector<32x256xf32>
    %2 = tpu.matmul %0, %1, %cst {dimension_numbers = #tpu.dot_dimension_numbers<[1], [0], [0], [1], [0, 0, 1, 1], [], []>} : vector<32x128xbf16>, vector<128x256xbf16>, vector<32x256xf32> -> vector<32x256xf32>
    %c0_3 = arith.constant 0 : index
    %c0_4 = arith.constant 0 : index
    %3 = vector.load %arg2[%c0_3, %c0_4] : memref<32x1xf32, #tpu.memory_space<vmem>>, vector<32x1xf32>
    %4 = vector.broadcast %3 : vector<32x1xf32> to vector<32x256xf32>
    %5 = arith.addf %2, %4 : vector<32x256xf32>
    %6 = tpu.iota {dimensions = array<i32: 1>} : vector<32x256xi32>
    %c128_i32 = arith.constant 128 : i32
    %c0_i32 = arith.constant 0 : i32
    %7 = arith.cmpi eq, %c128_i32, %c0_i32 : i32
    %c1_i32 = arith.constant 1 : i32
    %8 = arith.select %7, %c1_i32, %c128_i32 : i32
    %9 = vector.broadcast %8 : i32 to vector<32x256xi32>
    %10 = arith.remsi %6, %9 : vector<32x256xi32>
    %c0_i32_5 = arith.constant 0 : i32
    %11 = vector.broadcast %c0_i32_5 : i32 to vector<32x256xi32>
    %12 = arith.cmpi ne, %10, %11 : vector<32x256xi32>
    %c0_i32_6 = arith.constant 0 : i32
    %13 = vector.broadcast %c0_i32_6 : i32 to vector<32x256xi32>
    %14 = arith.cmpi slt, %10, %13 : vector<32x256xi32>
    %c0_i32_7 = arith.constant 0 : i32
    %15 = arith.cmpi slt, %8, %c0_i32_7 : i32
    %16 = vector.broadcast %15 : i1 to vector<32x256xi1>
    %17 = vector.broadcast %16 : vector<32x256xi1> to vector<32x256xi1>
    %18 = arith.xori %14, %17 : vector<32x256xi1>
    %19 = arith.andi %18, %12 : vector<32x256xi1>
    %20 = vector.broadcast %8 : i32 to vector<32x256xi32>
    %21 = arith.addi %10, %20 : vector<32x256xi32>
    %22 = arith.select %19, %21, %10 : vector<32x256xi1>, vector<32x256xi32>
    %c1_i32_8 = arith.constant 1 : i32
    %23 = vector.broadcast %c1_i32_8 : i32 to vector<32x256xi32>
    %24 = arith.cmpi sge, %22, %23 : vector<32x256xi32>
    %c1_i32_9 = arith.constant 1 : i32
    %25 = tpu.dynamic_rotate %5 by %c1_i32_9 dim 1 : vector<32x256xf32>, i32 -> vector<32x256xf32>
    %cst_10 = arith.constant 0.000000e+00 : f32
    %26 = vector.broadcast %cst_10 : f32 to vector<32x256xf32>
    %27 = arith.select %24, %25, %26 : vector<32x256xi1>, vector<32x256xf32>
    %c127_i32 = arith.constant 127 : i32
    %28 = vector.broadcast %c127_i32 : i32 to vector<32x256xi32>
    %29 = arith.cmpi slt, %22, %28 : vector<32x256xi32>
    %c255_i32 = arith.constant 255 : i32
    %30 = tpu.dynamic_rotate %5 by %c255_i32 dim 1 : vector<32x256xf32>, i32 -> vector<32x256xf32>
    %cst_11 = arith.constant 0.000000e+00 : f32
    %31 = vector.broadcast %cst_11 : f32 to vector<32x256xf32>
    %32 = arith.select %29, %30, %31 : vector<32x256xi1>, vector<32x256xf32>
    %33 = tpu.concatenate %27, %5, %32 in 0 : vector<32x256xf32>, vector<32x256xf32>, vector<32x256xf32> -> vector<96x256xf32>
    %34 = arith.truncf %33 : vector<96x256xf32> to vector<96x256xbf16>
    %c0_12 = arith.constant 0 : index
    %c0_13 = arith.constant 0 : index
    %c0_14 = arith.constant 0 : index
    %35 = vector.load %arg3[%c0_12, %c0_13, %c0_14] : memref<7x32x96xbf16, #tpu.memory_space<vmem>>, vector<1x32x96xbf16>
    %36 = vector.shape_cast %35 : vector<1x32x96xbf16> to vector<32x96xbf16>
    %cst_15 = arith.constant dense<0.000000e+00> : vector<32x256xf32>
    %37 = tpu.matmul %36, %34, %cst_15 {dimension_numbers = #tpu.dot_dimension_numbers<[1], [0], [0], [1], [0, 0, 1, 1], [], []>} : vector<32x96xbf16>, vector<96x256xbf16>, vector<32x256xf32> -> vector<32x256xf32>
    %c0_16 = arith.constant 0 : index
    %c0_17 = arith.constant 0 : index
    %c0_18 = arith.constant 0 : index
    %38 = vector.load %arg4[%c0_16, %c0_17, %c0_18] : memref<7x32x1xf32, #tpu.memory_space<vmem>>, vector<1x32x1xf32>
    %39 = vector.shape_cast %38 : vector<1x32x1xf32> to vector<32x1xf32>
    %40 = vector.broadcast %39 : vector<32x1xf32> to vector<32x256xf32>
    %41 = arith.addf %37, %40 : vector<32x256xf32>
    %42 = arith.addf %41, %5 : vector<32x256xf32>
    %cst_19 = arith.constant 0.000000e+00 : f32
    %43 = vector.broadcast %cst_19 : f32 to vector<32x256xf32>
    %44 = arith.cmpf ogt, %42, %43 : vector<32x256xf32>
    %cst_20 = arith.constant 2.000000e-01 : f32
    %45 = vector.broadcast %cst_20 : f32 to vector<32x256xf32>
    %46 = arith.mulf %45, %42 : vector<32x256xf32>
    %47 = arith.select %44, %42, %46 : vector<32x256xi1>, vector<32x256xf32>
    %cst_21 = arith.constant dense<0.000000e+00> : vector<32xf32>
    %48 = vector.multi_reduction <add>, %47, %cst_21 [1] : vector<32x256xf32> to vector<32xf32>
    %49 = vector.shape_cast %48 : vector<32xf32> to vector<32x1xf32>
    %cst_22 = arith.constant 3.906250e-03 : f32
    %50 = vector.broadcast %cst_22 : f32 to vector<32x1xf32>
    %51 = arith.mulf %49, %50 : vector<32x1xf32>
    %52 = arith.mulf %47, %47 : vector<32x256xf32>
    %cst_23 = arith.constant dense<0.000000e+00> : vector<32xf32>
    %53 = vector.multi_reduction <add>, %52, %cst_23 [1] : vector<32x256xf32> to vector<32xf32>
    %54 = vector.shape_cast %53 : vector<32xf32> to vector<32x1xf32>
    %cst_24 = arith.constant 3.906250e-03 : f32
    %55 = vector.broadcast %cst_24 : f32 to vector<32x1xf32>
    %56 = arith.mulf %54, %55 : vector<32x1xf32>
    %57 = arith.mulf %51, %51 : vector<32x1xf32>
    %58 = arith.subf %56, %57 : vector<32x1xf32>
    %cst_25 = arith.constant 9.99999974E-6 : f32
    %59 = vector.broadcast %cst_25 : f32 to vector<32x1xf32>
    %60 = arith.addf %58, %59 : vector<32x1xf32>
    %61 = math.rsqrt %60 : vector<32x1xf32>
    %c0_26 = arith.constant 0 : index
    %c0_27 = arith.constant 0 : index
    %c0_28 = arith.constant 0 : index
    %62 = vector.load %arg5[%c0_26, %c0_27, %c0_28] : memref<7x32x1xf32, #tpu.memory_space<vmem>>, vector<1x32x1xf32>
    %63 = vector.shape_cast %62 : vector<1x32x1xf32> to vector<32x1xf32>
    %64 = arith.mulf %61, %63 : vector<32x1xf32>
    %65 = vector.broadcast %64 : vector<32x1xf32> to vector<32x256xf32>
    %66 = arith.mulf %47, %65 : vector<32x256xf32>
    %c0_29 = arith.constant 0 : index
    %c0_30 = arith.constant 0 : index
    %c0_31 = arith.constant 0 : index
    %67 = vector.load %arg6[%c0_29, %c0_30, %c0_31] : memref<7x32x1xf32, #tpu.memory_space<vmem>>, vector<1x32x1xf32>
    %68 = vector.shape_cast %67 : vector<1x32x1xf32> to vector<32x1xf32>
    %69 = arith.mulf %51, %64 : vector<32x1xf32>
    %70 = arith.subf %68, %69 : vector<32x1xf32>
    %71 = vector.broadcast %70 : vector<32x1xf32> to vector<32x256xf32>
    %72 = arith.addf %66, %71 : vector<32x256xf32>
    %c3_i32 = arith.constant 3 : i32
    %73 = vector.broadcast %c3_i32 : i32 to vector<32x256xi32>
    %74 = arith.cmpi sge, %22, %73 : vector<32x256xi32>
    %c3_i32_32 = arith.constant 3 : i32
    %75 = tpu.dynamic_rotate %72 by %c3_i32_32 dim 1 : vector<32x256xf32>, i32 -> vector<32x256xf32>
    %cst_33 = arith.constant 0.000000e+00 : f32
    %76 = vector.broadcast %cst_33 : f32 to vector<32x256xf32>
    %77 = arith.select %74, %75, %76 : vector<32x256xi1>, vector<32x256xf32>
    %c125_i32 = arith.constant 125 : i32
    %78 = vector.broadcast %c125_i32 : i32 to vector<32x256xi32>
    %79 = arith.cmpi slt, %22, %78 : vector<32x256xi32>
    %c253_i32 = arith.constant 253 : i32
    %80 = tpu.dynamic_rotate %72 by %c253_i32 dim 1 : vector<32x256xf32>, i32 -> vector<32x256xf32>
    %cst_34 = arith.constant 0.000000e+00 : f32
    %81 = vector.broadcast %cst_34 : f32 to vector<32x256xf32>
    %82 = arith.select %79, %80, %81 : vector<32x256xi1>, vector<32x256xf32>
    %83 = tpu.concatenate %77, %72, %82 in 0 : vector<32x256xf32>, vector<32x256xf32>, vector<32x256xf32> -> vector<96x256xf32>
    %84 = arith.truncf %83 : vector<96x256xf32> to vector<96x256xbf16>
    %c1 = arith.constant 1 : index
    %c0_35 = arith.constant 0 : index
    %c0_36 = arith.constant 0 : index
    %85 = vector.load %arg3[%c1, %c0_35, %c0_36] : memref<7x32x96xbf16, #tpu.memory_space<vmem>>, vector<1x32x96xbf16>
    %86 = vector.shape_cast %85 : vector<1x32x96xbf16> to vector<32x96xbf16>
    %cst_37 = arith.constant dense<0.000000e+00> : vector<32x256xf32>
    %87 = tpu.matmul %86, %84, %cst_37 {dimension_numbers = #tpu.dot_dimension_numbers<[1], [0], [0], [1], [0, 0, 1, 1], [], []>} : vector<32x96xbf16>, vector<96x256xbf16>, vector<32x256xf32> -> vector<32x256xf32>
    %c1_38 = arith.constant 1 : index
    %c0_39 = arith.constant 0 : index
    %c0_40 = arith.constant 0 : index
    %88 = vector.load %arg4[%c1_38, %c0_39, %c0_40] : memref<7x32x1xf32, #tpu.memory_space<vmem>>, vector<1x32x1xf32>
    %89 = vector.shape_cast %88 : vector<1x32x1xf32> to vector<32x1xf32>
    %90 = vector.broadcast %89 : vector<32x1xf32> to vector<32x256xf32>
    %91 = arith.addf %87, %90 : vector<32x256xf32>
    %92 = arith.addf %91, %72 : vector<32x256xf32>
    %cst_41 = arith.constant 0.000000e+00 : f32
    %93 = vector.broadcast %cst_41 : f32 to vector<32x256xf32>
    %94 = arith.cmpf ogt, %92, %93 : vector<32x256xf32>
    %cst_42 = arith.constant 2.000000e-01 : f32
    %95 = vector.broadcast %cst_42 : f32 to vector<32x256xf32>
    %96 = arith.mulf %95, %92 : vector<32x256xf32>
    %97 = arith.select %94, %92, %96 : vector<32x256xi1>, vector<32x256xf32>
    %cst_43 = arith.constant dense<0.000000e+00> : vector<32xf32>
    %98 = vector.multi_reduction <add>, %97, %cst_43 [1] : vector<32x256xf32> to vector<32xf32>
    %99 = vector.shape_cast %98 : vector<32xf32> to vector<32x1xf32>
    %cst_44 = arith.constant 3.906250e-03 : f32
    %100 = vector.broadcast %cst_44 : f32 to vector<32x1xf32>
    %101 = arith.mulf %99, %100 : vector<32x1xf32>
    %102 = arith.mulf %97, %97 : vector<32x256xf32>
    %cst_45 = arith.constant dense<0.000000e+00> : vector<32xf32>
    %103 = vector.multi_reduction <add>, %102, %cst_45 [1] : vector<32x256xf32> to vector<32xf32>
    %104 = vector.shape_cast %103 : vector<32xf32> to vector<32x1xf32>
    %cst_46 = arith.constant 3.906250e-03 : f32
    %105 = vector.broadcast %cst_46 : f32 to vector<32x1xf32>
    %106 = arith.mulf %104, %105 : vector<32x1xf32>
    %107 = arith.mulf %101, %101 : vector<32x1xf32>
    %108 = arith.subf %106, %107 : vector<32x1xf32>
    %cst_47 = arith.constant 9.99999974E-6 : f32
    %109 = vector.broadcast %cst_47 : f32 to vector<32x1xf32>
    %110 = arith.addf %108, %109 : vector<32x1xf32>
    %111 = math.rsqrt %110 : vector<32x1xf32>
    %c1_48 = arith.constant 1 : index
    %c0_49 = arith.constant 0 : index
    %c0_50 = arith.constant 0 : index
    %112 = vector.load %arg5[%c1_48, %c0_49, %c0_50] : memref<7x32x1xf32, #tpu.memory_space<vmem>>, vector<1x32x1xf32>
    %113 = vector.shape_cast %112 : vector<1x32x1xf32> to vector<32x1xf32>
    %114 = arith.mulf %111, %113 : vector<32x1xf32>
    %115 = vector.broadcast %114 : vector<32x1xf32> to vector<32x256xf32>
    %116 = arith.mulf %97, %115 : vector<32x256xf32>
    %c1_51 = arith.constant 1 : index
    %c0_52 = arith.constant 0 : index
    %c0_53 = arith.constant 0 : index
    %117 = vector.load %arg6[%c1_51, %c0_52, %c0_53] : memref<7x32x1xf32, #tpu.memory_space<vmem>>, vector<1x32x1xf32>
    %118 = vector.shape_cast %117 : vector<1x32x1xf32> to vector<32x1xf32>
    %119 = arith.mulf %101, %114 : vector<32x1xf32>
    %120 = arith.subf %118, %119 : vector<32x1xf32>
    %121 = vector.broadcast %120 : vector<32x1xf32> to vector<32x256xf32>
    %122 = arith.addf %116, %121 : vector<32x256xf32>
    %c9_i32 = arith.constant 9 : i32
    %123 = vector.broadcast %c9_i32 : i32 to vector<32x256xi32>
    %124 = arith.cmpi sge, %22, %123 : vector<32x256xi32>
    %c9_i32_54 = arith.constant 9 : i32
    %125 = tpu.dynamic_rotate %122 by %c9_i32_54 dim 1 : vector<32x256xf32>, i32 -> vector<32x256xf32>
    %cst_55 = arith.constant 0.000000e+00 : f32
    %126 = vector.broadcast %cst_55 : f32 to vector<32x256xf32>
    %127 = arith.select %124, %125, %126 : vector<32x256xi1>, vector<32x256xf32>
    %c119_i32 = arith.constant 119 : i32
    %128 = vector.broadcast %c119_i32 : i32 to vector<32x256xi32>
    %129 = arith.cmpi slt, %22, %128 : vector<32x256xi32>
    %c247_i32 = arith.constant 247 : i32
    %130 = tpu.dynamic_rotate %122 by %c247_i32 dim 1 : vector<32x256xf32>, i32 -> vector<32x256xf32>
    %cst_56 = arith.constant 0.000000e+00 : f32
    %131 = vector.broadcast %cst_56 : f32 to vector<32x256xf32>
    %132 = arith.select %129, %130, %131 : vector<32x256xi1>, vector<32x256xf32>
    %133 = tpu.concatenate %127, %122, %132 in 0 : vector<32x256xf32>, vector<32x256xf32>, vector<32x256xf32> -> vector<96x256xf32>
    %134 = arith.truncf %133 : vector<96x256xf32> to vector<96x256xbf16>
    %c2 = arith.constant 2 : index
    %c0_57 = arith.constant 0 : index
    %c0_58 = arith.constant 0 : index
    %135 = vector.load %arg3[%c2, %c0_57, %c0_58] : memref<7x32x96xbf16, #tpu.memory_space<vmem>>, vector<1x32x96xbf16>
    %136 = vector.shape_cast %135 : vector<1x32x96xbf16> to vector<32x96xbf16>
    %cst_59 = arith.constant dense<0.000000e+00> : vector<32x256xf32>
    %137 = tpu.matmul %136, %134, %cst_59 {dimension_numbers = #tpu.dot_dimension_numbers<[1], [0], [0], [1], [0, 0, 1, 1], [], []>} : vector<32x96xbf16>, vector<96x256xbf16>, vector<32x256xf32> -> vector<32x256xf32>
    %c2_60 = arith.constant 2 : index
    %c0_61 = arith.constant 0 : index
    %c0_62 = arith.constant 0 : index
    %138 = vector.load %arg4[%c2_60, %c0_61, %c0_62] : memref<7x32x1xf32, #tpu.memory_space<vmem>>, vector<1x32x1xf32>
    %139 = vector.shape_cast %138 : vector<1x32x1xf32> to vector<32x1xf32>
    %140 = vector.broadcast %139 : vector<32x1xf32> to vector<32x256xf32>
    %141 = arith.addf %137, %140 : vector<32x256xf32>
    %142 = arith.addf %141, %122 : vector<32x256xf32>
    %cst_63 = arith.constant 0.000000e+00 : f32
    %143 = vector.broadcast %cst_63 : f32 to vector<32x256xf32>
    %144 = arith.cmpf ogt, %142, %143 : vector<32x256xf32>
    %cst_64 = arith.constant 2.000000e-01 : f32
    %145 = vector.broadcast %cst_64 : f32 to vector<32x256xf32>
    %146 = arith.mulf %145, %142 : vector<32x256xf32>
    %147 = arith.select %144, %142, %146 : vector<32x256xi1>, vector<32x256xf32>
    %cst_65 = arith.constant dense<0.000000e+00> : vector<32xf32>
    %148 = vector.multi_reduction <add>, %147, %cst_65 [1] : vector<32x256xf32> to vector<32xf32>
    %149 = vector.shape_cast %148 : vector<32xf32> to vector<32x1xf32>
    %cst_66 = arith.constant 3.906250e-03 : f32
    %150 = vector.broadcast %cst_66 : f32 to vector<32x1xf32>
    %151 = arith.mulf %149, %150 : vector<32x1xf32>
    %152 = arith.mulf %147, %147 : vector<32x256xf32>
    %cst_67 = arith.constant dense<0.000000e+00> : vector<32xf32>
    %153 = vector.multi_reduction <add>, %152, %cst_67 [1] : vector<32x256xf32> to vector<32xf32>
    %154 = vector.shape_cast %153 : vector<32xf32> to vector<32x1xf32>
    %cst_68 = arith.constant 3.906250e-03 : f32
    %155 = vector.broadcast %cst_68 : f32 to vector<32x1xf32>
    %156 = arith.mulf %154, %155 : vector<32x1xf32>
    %157 = arith.mulf %151, %151 : vector<32x1xf32>
    %158 = arith.subf %156, %157 : vector<32x1xf32>
    %cst_69 = arith.constant 9.99999974E-6 : f32
    %159 = vector.broadcast %cst_69 : f32 to vector<32x1xf32>
    %160 = arith.addf %158, %159 : vector<32x1xf32>
    %161 = math.rsqrt %160 : vector<32x1xf32>
    %c2_70 = arith.constant 2 : index
    %c0_71 = arith.constant 0 : index
    %c0_72 = arith.constant 0 : index
    %162 = vector.load %arg5[%c2_70, %c0_71, %c0_72] : memref<7x32x1xf32, #tpu.memory_space<vmem>>, vector<1x32x1xf32>
    %163 = vector.shape_cast %162 : vector<1x32x1xf32> to vector<32x1xf32>
    %164 = arith.mulf %161, %163 : vector<32x1xf32>
    %165 = vector.broadcast %164 : vector<32x1xf32> to vector<32x256xf32>
    %166 = arith.mulf %147, %165 : vector<32x256xf32>
    %c2_73 = arith.constant 2 : index
    %c0_74 = arith.constant 0 : index
    %c0_75 = arith.constant 0 : index
    %167 = vector.load %arg6[%c2_73, %c0_74, %c0_75] : memref<7x32x1xf32, #tpu.memory_space<vmem>>, vector<1x32x1xf32>
    %168 = vector.shape_cast %167 : vector<1x32x1xf32> to vector<32x1xf32>
    %169 = arith.mulf %151, %164 : vector<32x1xf32>
    %170 = arith.subf %168, %169 : vector<32x1xf32>
    %171 = vector.broadcast %170 : vector<32x1xf32> to vector<32x256xf32>
    %172 = arith.addf %166, %171 : vector<32x256xf32>
    %c1_i32_76 = arith.constant 1 : i32
    %173 = vector.broadcast %c1_i32_76 : i32 to vector<32x256xi32>
    %174 = arith.cmpi sge, %22, %173 : vector<32x256xi32>
    %c1_i32_77 = arith.constant 1 : i32
    %175 = tpu.dynamic_rotate %172 by %c1_i32_77 dim 1 : vector<32x256xf32>, i32 -> vector<32x256xf32>
    %cst_78 = arith.constant 0.000000e+00 : f32
    %176 = vector.broadcast %cst_78 : f32 to vector<32x256xf32>
    %177 = arith.select %174, %175, %176 : vector<32x256xi1>, vector<32x256xf32>
    %c127_i32_79 = arith.constant 127 : i32
    %178 = vector.broadcast %c127_i32_79 : i32 to vector<32x256xi32>
    %179 = arith.cmpi slt, %22, %178 : vector<32x256xi32>
    %c255_i32_80 = arith.constant 255 : i32
    %180 = tpu.dynamic_rotate %172 by %c255_i32_80 dim 1 : vector<32x256xf32>, i32 -> vector<32x256xf32>
    %cst_81 = arith.constant 0.000000e+00 : f32
    %181 = vector.broadcast %cst_81 : f32 to vector<32x256xf32>
    %182 = arith.select %179, %180, %181 : vector<32x256xi1>, vector<32x256xf32>
    %183 = tpu.concatenate %177, %172, %182 in 0 : vector<32x256xf32>, vector<32x256xf32>, vector<32x256xf32> -> vector<96x256xf32>
    %184 = arith.truncf %183 : vector<96x256xf32> to vector<96x256xbf16>
    %c3 = arith.constant 3 : index
    %c0_82 = arith.constant 0 : index
    %c0_83 = arith.constant 0 : index
    %185 = vector.load %arg3[%c3, %c0_82, %c0_83] : memref<7x32x96xbf16, #tpu.memory_space<vmem>>, vector<1x32x96xbf16>
    %186 = vector.shape_cast %185 : vector<1x32x96xbf16> to vector<32x96xbf16>
    %cst_84 = arith.constant dense<0.000000e+00> : vector<32x256xf32>
    %187 = tpu.matmul %186, %184, %cst_84 {dimension_numbers = #tpu.dot_dimension_numbers<[1], [0], [0], [1], [0, 0, 1, 1], [], []>} : vector<32x96xbf16>, vector<96x256xbf16>, vector<32x256xf32> -> vector<32x256xf32>
    %c3_85 = arith.constant 3 : index
    %c0_86 = arith.constant 0 : index
    %c0_87 = arith.constant 0 : index
    %188 = vector.load %arg4[%c3_85, %c0_86, %c0_87] : memref<7x32x1xf32, #tpu.memory_space<vmem>>, vector<1x32x1xf32>
    %189 = vector.shape_cast %188 : vector<1x32x1xf32> to vector<32x1xf32>
    %190 = vector.broadcast %189 : vector<32x1xf32> to vector<32x256xf32>
    %191 = arith.addf %187, %190 : vector<32x256xf32>
    %192 = arith.addf %191, %172 : vector<32x256xf32>
    %cst_88 = arith.constant 0.000000e+00 : f32
    %193 = vector.broadcast %cst_88 : f32 to vector<32x256xf32>
    %194 = arith.cmpf ogt, %192, %193 : vector<32x256xf32>
    %cst_89 = arith.constant 2.000000e-01 : f32
    %195 = vector.broadcast %cst_89 : f32 to vector<32x256xf32>
    %196 = arith.mulf %195, %192 : vector<32x256xf32>
    %197 = arith.select %194, %192, %196 : vector<32x256xi1>, vector<32x256xf32>
    %cst_90 = arith.constant dense<0.000000e+00> : vector<32xf32>
    %198 = vector.multi_reduction <add>, %197, %cst_90 [1] : vector<32x256xf32> to vector<32xf32>
    %199 = vector.shape_cast %198 : vector<32xf32> to vector<32x1xf32>
    %cst_91 = arith.constant 3.906250e-03 : f32
    %200 = vector.broadcast %cst_91 : f32 to vector<32x1xf32>
    %201 = arith.mulf %199, %200 : vector<32x1xf32>
    %202 = arith.mulf %197, %197 : vector<32x256xf32>
    %cst_92 = arith.constant dense<0.000000e+00> : vector<32xf32>
    %203 = vector.multi_reduction <add>, %202, %cst_92 [1] : vector<32x256xf32> to vector<32xf32>
    %204 = vector.shape_cast %203 : vector<32xf32> to vector<32x1xf32>
    %cst_93 = arith.constant 3.906250e-03 : f32
    %205 = vector.broadcast %cst_93 : f32 to vector<32x1xf32>
    %206 = arith.mulf %204, %205 : vector<32x1xf32>
    %207 = arith.mulf %201, %201 : vector<32x1xf32>
    %208 = arith.subf %206, %207 : vector<32x1xf32>
    %cst_94 = arith.constant 9.99999974E-6 : f32
    %209 = vector.broadcast %cst_94 : f32 to vector<32x1xf32>
    %210 = arith.addf %208, %209 : vector<32x1xf32>
    %211 = math.rsqrt %210 : vector<32x1xf32>
    %c3_95 = arith.constant 3 : index
    %c0_96 = arith.constant 0 : index
    %c0_97 = arith.constant 0 : index
    %212 = vector.load %arg5[%c3_95, %c0_96, %c0_97] : memref<7x32x1xf32, #tpu.memory_space<vmem>>, vector<1x32x1xf32>
    %213 = vector.shape_cast %212 : vector<1x32x1xf32> to vector<32x1xf32>
    %214 = arith.mulf %211, %213 : vector<32x1xf32>
    %215 = vector.broadcast %214 : vector<32x1xf32> to vector<32x256xf32>
    %216 = arith.mulf %197, %215 : vector<32x256xf32>
    %c3_98 = arith.constant 3 : index
    %c0_99 = arith.constant 0 : index
    %c0_100 = arith.constant 0 : index
    %217 = vector.load %arg6[%c3_98, %c0_99, %c0_100] : memref<7x32x1xf32, #tpu.memory_space<vmem>>, vector<1x32x1xf32>
    %218 = vector.shape_cast %217 : vector<1x32x1xf32> to vector<32x1xf32>
    %219 = arith.mulf %201, %214 : vector<32x1xf32>
    %220 = arith.subf %218, %219 : vector<32x1xf32>
    %221 = vector.broadcast %220 : vector<32x1xf32> to vector<32x256xf32>
    %222 = arith.addf %216, %221 : vector<32x256xf32>
    %c3_i32_101 = arith.constant 3 : i32
    %223 = vector.broadcast %c3_i32_101 : i32 to vector<32x256xi32>
    %224 = arith.cmpi sge, %22, %223 : vector<32x256xi32>
    %c3_i32_102 = arith.constant 3 : i32
    %225 = tpu.dynamic_rotate %222 by %c3_i32_102 dim 1 : vector<32x256xf32>, i32 -> vector<32x256xf32>
    %cst_103 = arith.constant 0.000000e+00 : f32
    %226 = vector.broadcast %cst_103 : f32 to vector<32x256xf32>
    %227 = arith.select %224, %225, %226 : vector<32x256xi1>, vector<32x256xf32>
    %c125_i32_104 = arith.constant 125 : i32
    %228 = vector.broadcast %c125_i32_104 : i32 to vector<32x256xi32>
    %229 = arith.cmpi slt, %22, %228 : vector<32x256xi32>
    %c253_i32_105 = arith.constant 253 : i32
    %230 = tpu.dynamic_rotate %222 by %c253_i32_105 dim 1 : vector<32x256xf32>, i32 -> vector<32x256xf32>
    %cst_106 = arith.constant 0.000000e+00 : f32
    %231 = vector.broadcast %cst_106 : f32 to vector<32x256xf32>
    %232 = arith.select %229, %230, %231 : vector<32x256xi1>, vector<32x256xf32>
    %233 = tpu.concatenate %227, %222, %232 in 0 : vector<32x256xf32>, vector<32x256xf32>, vector<32x256xf32> -> vector<96x256xf32>
    %234 = arith.truncf %233 : vector<96x256xf32> to vector<96x256xbf16>
    %c4 = arith.constant 4 : index
    %c0_107 = arith.constant 0 : index
    %c0_108 = arith.constant 0 : index
    %235 = vector.load %arg3[%c4, %c0_107, %c0_108] : memref<7x32x96xbf16, #tpu.memory_space<vmem>>, vector<1x32x96xbf16>
    %236 = vector.shape_cast %235 : vector<1x32x96xbf16> to vector<32x96xbf16>
    %cst_109 = arith.constant dense<0.000000e+00> : vector<32x256xf32>
    %237 = tpu.matmul %236, %234, %cst_109 {dimension_numbers = #tpu.dot_dimension_numbers<[1], [0], [0], [1], [0, 0, 1, 1], [], []>} : vector<32x96xbf16>, vector<96x256xbf16>, vector<32x256xf32> -> vector<32x256xf32>
    %c4_110 = arith.constant 4 : index
    %c0_111 = arith.constant 0 : index
    %c0_112 = arith.constant 0 : index
    %238 = vector.load %arg4[%c4_110, %c0_111, %c0_112] : memref<7x32x1xf32, #tpu.memory_space<vmem>>, vector<1x32x1xf32>
    %239 = vector.shape_cast %238 : vector<1x32x1xf32> to vector<32x1xf32>
    %240 = vector.broadcast %239 : vector<32x1xf32> to vector<32x256xf32>
    %241 = arith.addf %237, %240 : vector<32x256xf32>
    %242 = arith.addf %241, %222 : vector<32x256xf32>
    %cst_113 = arith.constant 0.000000e+00 : f32
    %243 = vector.broadcast %cst_113 : f32 to vector<32x256xf32>
    %244 = arith.cmpf ogt, %242, %243 : vector<32x256xf32>
    %cst_114 = arith.constant 2.000000e-01 : f32
    %245 = vector.broadcast %cst_114 : f32 to vector<32x256xf32>
    %246 = arith.mulf %245, %242 : vector<32x256xf32>
    %247 = arith.select %244, %242, %246 : vector<32x256xi1>, vector<32x256xf32>
    %cst_115 = arith.constant dense<0.000000e+00> : vector<32xf32>
    %248 = vector.multi_reduction <add>, %247, %cst_115 [1] : vector<32x256xf32> to vector<32xf32>
    %249 = vector.shape_cast %248 : vector<32xf32> to vector<32x1xf32>
    %cst_116 = arith.constant 3.906250e-03 : f32
    %250 = vector.broadcast %cst_116 : f32 to vector<32x1xf32>
    %251 = arith.mulf %249, %250 : vector<32x1xf32>
    %252 = arith.mulf %247, %247 : vector<32x256xf32>
    %cst_117 = arith.constant dense<0.000000e+00> : vector<32xf32>
    %253 = vector.multi_reduction <add>, %252, %cst_117 [1] : vector<32x256xf32> to vector<32xf32>
    %254 = vector.shape_cast %253 : vector<32xf32> to vector<32x1xf32>
    %cst_118 = arith.constant 3.906250e-03 : f32
    %255 = vector.broadcast %cst_118 : f32 to vector<32x1xf32>
    %256 = arith.mulf %254, %255 : vector<32x1xf32>
    %257 = arith.mulf %251, %251 : vector<32x1xf32>
    %258 = arith.subf %256, %257 : vector<32x1xf32>
    %cst_119 = arith.constant 9.99999974E-6 : f32
    %259 = vector.broadcast %cst_119 : f32 to vector<32x1xf32>
    %260 = arith.addf %258, %259 : vector<32x1xf32>
    %261 = math.rsqrt %260 : vector<32x1xf32>
    %c4_120 = arith.constant 4 : index
    %c0_121 = arith.constant 0 : index
    %c0_122 = arith.constant 0 : index
    %262 = vector.load %arg5[%c4_120, %c0_121, %c0_122] : memref<7x32x1xf32, #tpu.memory_space<vmem>>, vector<1x32x1xf32>
    %263 = vector.shape_cast %262 : vector<1x32x1xf32> to vector<32x1xf32>
    %264 = arith.mulf %261, %263 : vector<32x1xf32>
    %265 = vector.broadcast %264 : vector<32x1xf32> to vector<32x256xf32>
    %266 = arith.mulf %247, %265 : vector<32x256xf32>
    %c4_123 = arith.constant 4 : index
    %c0_124 = arith.constant 0 : index
    %c0_125 = arith.constant 0 : index
    %267 = vector.load %arg6[%c4_123, %c0_124, %c0_125] : memref<7x32x1xf32, #tpu.memory_space<vmem>>, vector<1x32x1xf32>
    %268 = vector.shape_cast %267 : vector<1x32x1xf32> to vector<32x1xf32>
    %269 = arith.mulf %251, %264 : vector<32x1xf32>
    %270 = arith.subf %268, %269 : vector<32x1xf32>
    %271 = vector.broadcast %270 : vector<32x1xf32> to vector<32x256xf32>
    %272 = arith.addf %266, %271 : vector<32x256xf32>
    %c9_i32_126 = arith.constant 9 : i32
    %273 = vector.broadcast %c9_i32_126 : i32 to vector<32x256xi32>
    %274 = arith.cmpi sge, %22, %273 : vector<32x256xi32>
    %c9_i32_127 = arith.constant 9 : i32
    %275 = tpu.dynamic_rotate %272 by %c9_i32_127 dim 1 : vector<32x256xf32>, i32 -> vector<32x256xf32>
    %cst_128 = arith.constant 0.000000e+00 : f32
    %276 = vector.broadcast %cst_128 : f32 to vector<32x256xf32>
    %277 = arith.select %274, %275, %276 : vector<32x256xi1>, vector<32x256xf32>
    %c119_i32_129 = arith.constant 119 : i32
    %278 = vector.broadcast %c119_i32_129 : i32 to vector<32x256xi32>
    %279 = arith.cmpi slt, %22, %278 : vector<32x256xi32>
    %c247_i32_130 = arith.constant 247 : i32
    %280 = tpu.dynamic_rotate %272 by %c247_i32_130 dim 1 : vector<32x256xf32>, i32 -> vector<32x256xf32>
    %cst_131 = arith.constant 0.000000e+00 : f32
    %281 = vector.broadcast %cst_131 : f32 to vector<32x256xf32>
    %282 = arith.select %279, %280, %281 : vector<32x256xi1>, vector<32x256xf32>
    %283 = tpu.concatenate %277, %272, %282 in 0 : vector<32x256xf32>, vector<32x256xf32>, vector<32x256xf32> -> vector<96x256xf32>
    %284 = arith.truncf %283 : vector<96x256xf32> to vector<96x256xbf16>
    %c5 = arith.constant 5 : index
    %c0_132 = arith.constant 0 : index
    %c0_133 = arith.constant 0 : index
    %285 = vector.load %arg3[%c5, %c0_132, %c0_133] : memref<7x32x96xbf16, #tpu.memory_space<vmem>>, vector<1x32x96xbf16>
    %286 = vector.shape_cast %285 : vector<1x32x96xbf16> to vector<32x96xbf16>
    %cst_134 = arith.constant dense<0.000000e+00> : vector<32x256xf32>
    %287 = tpu.matmul %286, %284, %cst_134 {dimension_numbers = #tpu.dot_dimension_numbers<[1], [0], [0], [1], [0, 0, 1, 1], [], []>} : vector<32x96xbf16>, vector<96x256xbf16>, vector<32x256xf32> -> vector<32x256xf32>
    %c5_135 = arith.constant 5 : index
    %c0_136 = arith.constant 0 : index
    %c0_137 = arith.constant 0 : index
    %288 = vector.load %arg4[%c5_135, %c0_136, %c0_137] : memref<7x32x1xf32, #tpu.memory_space<vmem>>, vector<1x32x1xf32>
    %289 = vector.shape_cast %288 : vector<1x32x1xf32> to vector<32x1xf32>
    %290 = vector.broadcast %289 : vector<32x1xf32> to vector<32x256xf32>
    %291 = arith.addf %287, %290 : vector<32x256xf32>
    %292 = arith.addf %291, %272 : vector<32x256xf32>
    %cst_138 = arith.constant 0.000000e+00 : f32
    %293 = vector.broadcast %cst_138 : f32 to vector<32x256xf32>
    %294 = arith.cmpf ogt, %292, %293 : vector<32x256xf32>
    %cst_139 = arith.constant 2.000000e-01 : f32
    %295 = vector.broadcast %cst_139 : f32 to vector<32x256xf32>
    %296 = arith.mulf %295, %292 : vector<32x256xf32>
    %297 = arith.select %294, %292, %296 : vector<32x256xi1>, vector<32x256xf32>
    %cst_140 = arith.constant dense<0.000000e+00> : vector<32xf32>
    %298 = vector.multi_reduction <add>, %297, %cst_140 [1] : vector<32x256xf32> to vector<32xf32>
    %299 = vector.shape_cast %298 : vector<32xf32> to vector<32x1xf32>
    %cst_141 = arith.constant 3.906250e-03 : f32
    %300 = vector.broadcast %cst_141 : f32 to vector<32x1xf32>
    %301 = arith.mulf %299, %300 : vector<32x1xf32>
    %302 = arith.mulf %297, %297 : vector<32x256xf32>
    %cst_142 = arith.constant dense<0.000000e+00> : vector<32xf32>
    %303 = vector.multi_reduction <add>, %302, %cst_142 [1] : vector<32x256xf32> to vector<32xf32>
    %304 = vector.shape_cast %303 : vector<32xf32> to vector<32x1xf32>
    %cst_143 = arith.constant 3.906250e-03 : f32
    %305 = vector.broadcast %cst_143 : f32 to vector<32x1xf32>
    %306 = arith.mulf %304, %305 : vector<32x1xf32>
    %307 = arith.mulf %301, %301 : vector<32x1xf32>
    %308 = arith.subf %306, %307 : vector<32x1xf32>
    %cst_144 = arith.constant 9.99999974E-6 : f32
    %309 = vector.broadcast %cst_144 : f32 to vector<32x1xf32>
    %310 = arith.addf %308, %309 : vector<32x1xf32>
    %311 = math.rsqrt %310 : vector<32x1xf32>
    %c5_145 = arith.constant 5 : index
    %c0_146 = arith.constant 0 : index
    %c0_147 = arith.constant 0 : index
    %312 = vector.load %arg5[%c5_145, %c0_146, %c0_147] : memref<7x32x1xf32, #tpu.memory_space<vmem>>, vector<1x32x1xf32>
    %313 = vector.shape_cast %312 : vector<1x32x1xf32> to vector<32x1xf32>
    %314 = arith.mulf %311, %313 : vector<32x1xf32>
    %315 = vector.broadcast %314 : vector<32x1xf32> to vector<32x256xf32>
    %316 = arith.mulf %297, %315 : vector<32x256xf32>
    %c5_148 = arith.constant 5 : index
    %c0_149 = arith.constant 0 : index
    %c0_150 = arith.constant 0 : index
    %317 = vector.load %arg6[%c5_148, %c0_149, %c0_150] : memref<7x32x1xf32, #tpu.memory_space<vmem>>, vector<1x32x1xf32>
    %318 = vector.shape_cast %317 : vector<1x32x1xf32> to vector<32x1xf32>
    %319 = arith.mulf %301, %314 : vector<32x1xf32>
    %320 = arith.subf %318, %319 : vector<32x1xf32>
    %321 = vector.broadcast %320 : vector<32x1xf32> to vector<32x256xf32>
    %322 = arith.addf %316, %321 : vector<32x256xf32>
    %c1_i32_151 = arith.constant 1 : i32
    %323 = vector.broadcast %c1_i32_151 : i32 to vector<32x256xi32>
    %324 = arith.cmpi sge, %22, %323 : vector<32x256xi32>
    %c1_i32_152 = arith.constant 1 : i32
    %325 = tpu.dynamic_rotate %322 by %c1_i32_152 dim 1 : vector<32x256xf32>, i32 -> vector<32x256xf32>
    %cst_153 = arith.constant 0.000000e+00 : f32
    %326 = vector.broadcast %cst_153 : f32 to vector<32x256xf32>
    %327 = arith.select %324, %325, %326 : vector<32x256xi1>, vector<32x256xf32>
    %c127_i32_154 = arith.constant 127 : i32
    %328 = vector.broadcast %c127_i32_154 : i32 to vector<32x256xi32>
    %329 = arith.cmpi slt, %22, %328 : vector<32x256xi32>
    %c255_i32_155 = arith.constant 255 : i32
    %330 = tpu.dynamic_rotate %322 by %c255_i32_155 dim 1 : vector<32x256xf32>, i32 -> vector<32x256xf32>
    %cst_156 = arith.constant 0.000000e+00 : f32
    %331 = vector.broadcast %cst_156 : f32 to vector<32x256xf32>
    %332 = arith.select %329, %330, %331 : vector<32x256xi1>, vector<32x256xf32>
    %333 = tpu.concatenate %327, %322, %332 in 0 : vector<32x256xf32>, vector<32x256xf32>, vector<32x256xf32> -> vector<96x256xf32>
    %334 = arith.truncf %333 : vector<96x256xf32> to vector<96x256xbf16>
    %c6 = arith.constant 6 : index
    %c0_157 = arith.constant 0 : index
    %c0_158 = arith.constant 0 : index
    %335 = vector.load %arg3[%c6, %c0_157, %c0_158] : memref<7x32x96xbf16, #tpu.memory_space<vmem>>, vector<1x32x96xbf16>
    %336 = vector.shape_cast %335 : vector<1x32x96xbf16> to vector<32x96xbf16>
    %cst_159 = arith.constant dense<0.000000e+00> : vector<32x256xf32>
    %337 = tpu.matmul %336, %334, %cst_159 {dimension_numbers = #tpu.dot_dimension_numbers<[1], [0], [0], [1], [0, 0, 1, 1], [], []>} : vector<32x96xbf16>, vector<96x256xbf16>, vector<32x256xf32> -> vector<32x256xf32>
    %c6_160 = arith.constant 6 : index
    %c0_161 = arith.constant 0 : index
    %c0_162 = arith.constant 0 : index
    %338 = vector.load %arg4[%c6_160, %c0_161, %c0_162] : memref<7x32x1xf32, #tpu.memory_space<vmem>>, vector<1x32x1xf32>
    %339 = vector.shape_cast %338 : vector<1x32x1xf32> to vector<32x1xf32>
    %340 = vector.broadcast %339 : vector<32x1xf32> to vector<32x256xf32>
    %341 = arith.addf %337, %340 : vector<32x256xf32>
    %342 = arith.addf %341, %322 : vector<32x256xf32>
    %cst_163 = arith.constant 0.000000e+00 : f32
    %343 = vector.broadcast %cst_163 : f32 to vector<32x256xf32>
    %344 = arith.cmpf ogt, %342, %343 : vector<32x256xf32>
    %cst_164 = arith.constant 2.000000e-01 : f32
    %345 = vector.broadcast %cst_164 : f32 to vector<32x256xf32>
    %346 = arith.mulf %345, %342 : vector<32x256xf32>
    %347 = arith.select %344, %342, %346 : vector<32x256xi1>, vector<32x256xf32>
    %cst_165 = arith.constant dense<0.000000e+00> : vector<32xf32>
    %348 = vector.multi_reduction <add>, %347, %cst_165 [1] : vector<32x256xf32> to vector<32xf32>
    %349 = vector.shape_cast %348 : vector<32xf32> to vector<32x1xf32>
    %cst_166 = arith.constant 3.906250e-03 : f32
    %350 = vector.broadcast %cst_166 : f32 to vector<32x1xf32>
    %351 = arith.mulf %349, %350 : vector<32x1xf32>
    %352 = arith.mulf %347, %347 : vector<32x256xf32>
    %cst_167 = arith.constant dense<0.000000e+00> : vector<32xf32>
    %353 = vector.multi_reduction <add>, %352, %cst_167 [1] : vector<32x256xf32> to vector<32xf32>
    %354 = vector.shape_cast %353 : vector<32xf32> to vector<32x1xf32>
    %cst_168 = arith.constant 3.906250e-03 : f32
    %355 = vector.broadcast %cst_168 : f32 to vector<32x1xf32>
    %356 = arith.mulf %354, %355 : vector<32x1xf32>
    %357 = arith.mulf %351, %351 : vector<32x1xf32>
    %358 = arith.subf %356, %357 : vector<32x1xf32>
    %cst_169 = arith.constant 9.99999974E-6 : f32
    %359 = vector.broadcast %cst_169 : f32 to vector<32x1xf32>
    %360 = arith.addf %358, %359 : vector<32x1xf32>
    %361 = math.rsqrt %360 : vector<32x1xf32>
    %c6_170 = arith.constant 6 : index
    %c0_171 = arith.constant 0 : index
    %c0_172 = arith.constant 0 : index
    %362 = vector.load %arg5[%c6_170, %c0_171, %c0_172] : memref<7x32x1xf32, #tpu.memory_space<vmem>>, vector<1x32x1xf32>
    %363 = vector.shape_cast %362 : vector<1x32x1xf32> to vector<32x1xf32>
    %364 = arith.mulf %361, %363 : vector<32x1xf32>
    %365 = vector.broadcast %364 : vector<32x1xf32> to vector<32x256xf32>
    %366 = arith.mulf %347, %365 : vector<32x256xf32>
    %c6_173 = arith.constant 6 : index
    %c0_174 = arith.constant 0 : index
    %c0_175 = arith.constant 0 : index
    %367 = vector.load %arg6[%c6_173, %c0_174, %c0_175] : memref<7x32x1xf32, #tpu.memory_space<vmem>>, vector<1x32x1xf32>
    %368 = vector.shape_cast %367 : vector<1x32x1xf32> to vector<32x1xf32>
    %369 = arith.mulf %351, %364 : vector<32x1xf32>
    %370 = arith.subf %368, %369 : vector<32x1xf32>
    %371 = vector.broadcast %370 : vector<32x1xf32> to vector<32x256xf32>
    %372 = arith.addf %366, %371 : vector<32x256xf32>
    %c127_i32_176 = arith.constant 127 : i32
    %373 = vector.broadcast %c127_i32_176 : i32 to vector<32x256xi32>
    %374 = arith.cmpi eq, %6, %373 : vector<32x256xi32>
    %cst_177 = arith.constant 0.000000e+00 : f32
    %375 = vector.broadcast %cst_177 : f32 to vector<32x256xf32>
    %376 = arith.select %374, %372, %375 : vector<32x256xi1>, vector<32x256xf32>
    %cst_178 = arith.constant dense<0.000000e+00> : vector<32xf32>
    %377 = vector.multi_reduction <add>, %376, %cst_178 [1] : vector<32x256xf32> to vector<32xf32>
    %378 = vector.shape_cast %377 : vector<32xf32> to vector<32x1xf32>
    %c255_i32_179 = arith.constant 255 : i32
    %379 = vector.broadcast %c255_i32_179 : i32 to vector<32x256xi32>
    %380 = arith.cmpi eq, %6, %379 : vector<32x256xi32>
    %cst_180 = arith.constant 0.000000e+00 : f32
    %381 = vector.broadcast %cst_180 : f32 to vector<32x256xf32>
    %382 = arith.select %380, %372, %381 : vector<32x256xi1>, vector<32x256xf32>
    %cst_181 = arith.constant dense<0.000000e+00> : vector<32xf32>
    %383 = vector.multi_reduction <add>, %382, %cst_181 [1] : vector<32x256xf32> to vector<32xf32>
    %384 = vector.shape_cast %383 : vector<32xf32> to vector<32x1xf32>
    %385 = tpu.concatenate %378, %384 in 1 : vector<32x1xf32>, vector<32x1xf32> -> vector<32x2xf32>
    %c0_182 = arith.constant 0 : index
    %c0_183 = arith.constant 0 : index
    %386 = vector.load %arg7[%c0_182, %c0_183] : memref<32x2xf32, #tpu.memory_space<vmem>>, vector<32x2xf32>
    tpu.vector_store %arg7[%c0_182, %c0_183], %385 {strides = array<i32>} : memref<32x2xf32, #tpu.memory_space<vmem>>, vector<32x2xf32>,
    return
  }
}

module attributes {stable_mosaic.version = 11 : i64} {
  func.func @_hyper_apply_kernel(%arg0: memref<32x256xf32, #tpu.memory_space<vmem>>, %arg1: memref<2x32x32xbf16, #tpu.memory_space<vmem>>, %arg2: memref<2x32x1xf32, #tpu.memory_space<vmem>>, %arg3: memref<16x256xf32, #tpu.memory_space<vmem>>, %arg4: memref<16x256xf32, #tpu.memory_space<vmem>>, %arg5: memref<32x1xf32, #tpu.memory_space<vmem>>, %arg6: memref<1x1xf32, #tpu.memory_space<vmem>>, %arg7: memref<2x1x256xf32, #tpu.memory_space<vmem>>) attributes {dimension_semantics = [], scalar_prefetch = 0 : i64, scratch_operands = 0 : i64, tpu.core_type = #tpu.core_type<tc>} {
    %c0 = arith.constant 0 : index
    %c0_0 = arith.constant 0 : index
    %0 = vector.load %arg0[%c0, %c0_0] : memref<32x256xf32, #tpu.memory_space<vmem>>, vector<32x256xf32>
    %c0_1 = arith.constant 0 : index
    %c0_2 = arith.constant 0 : index
    %c0_3 = arith.constant 0 : index
    %1 = vector.load %arg1[%c0_1, %c0_2, %c0_3] : memref<2x32x32xbf16, #tpu.memory_space<vmem>>, vector<1x32x32xbf16>
    %2 = vector.shape_cast %1 : vector<1x32x32xbf16> to vector<32x32xbf16>
    %3 = arith.truncf %0 : vector<32x256xf32> to vector<32x256xbf16>
    %cst = arith.constant dense<0.000000e+00> : vector<32x256xf32>
    %4 = tpu.matmul %2, %3, %cst {dimension_numbers = #tpu.dot_dimension_numbers<[1], [0], [0], [1], [0, 0, 1, 1], [], []>} : vector<32x32xbf16>, vector<32x256xbf16>, vector<32x256xf32> -> vector<32x256xf32>
    %c0_4 = arith.constant 0 : index
    %c0_5 = arith.constant 0 : index
    %c0_6 = arith.constant 0 : index
    %5 = vector.load %arg2[%c0_4, %c0_5, %c0_6] : memref<2x32x1xf32, #tpu.memory_space<vmem>>, vector<1x32x1xf32>
    %6 = vector.shape_cast %5 : vector<1x32x1xf32> to vector<32x1xf32>
    %7 = vector.broadcast %6 : vector<32x1xf32> to vector<32x256xf32>
    %8 = arith.addf %4, %7 : vector<32x256xf32>
    %cst_7 = arith.constant 0.000000e+00 : f32
    %9 = vector.broadcast %cst_7 : f32 to vector<32x256xf32>
    %10 = arith.cmpf ogt, %8, %9 : vector<32x256xf32>
    %cst_8 = arith.constant 2.000000e-01 : f32
    %11 = vector.broadcast %cst_8 : f32 to vector<32x256xf32>
    %12 = arith.mulf %11, %8 : vector<32x256xf32>
    %13 = arith.select %10, %8, %12 : vector<32x256xi1>, vector<32x256xf32>
    %14 = vector.extract_strided_slice %13 {offsets = [0, 0], sizes = [16, 256], strides = [1, 1]} : vector<32x256xf32> to vector<16x256xf32>
    %15 = vector.shape_cast %14 : vector<16x256xf32> to vector<1x16x256xf32>
    %cst_9 = arith.constant dense<0.000000e+00> : vector<1xf32>
    %16 = vector.multi_reduction <add>, %15, %cst_9 [1, 2] : vector<1x16x256xf32> to vector<1xf32>
    %17 = vector.shape_cast %16 : vector<1xf32> to vector<1x1x1xf32>
    %18 = vector.extract %17[0, 0, 0] : f32 from vector<1x1x1xf32>
    %cst_10 = arith.constant 4.096000e+03 : f32
    %19 = arith.divf %18, %cst_10 : f32
    %20 = vector.broadcast %19 : f32 to vector<16x256xf32>
    %21 = arith.subf %14, %20 : vector<16x256xf32>
    %22 = arith.mulf %21, %21 : vector<16x256xf32>
    %23 = vector.shape_cast %22 : vector<16x256xf32> to vector<1x16x256xf32>
    %cst_11 = arith.constant dense<0.000000e+00> : vector<1xf32>
    %24 = vector.multi_reduction <add>, %23, %cst_11 [1, 2] : vector<1x16x256xf32> to vector<1xf32>
    %25 = vector.shape_cast %24 : vector<1xf32> to vector<1x1x1xf32>
    %26 = vector.extract %25[0, 0, 0] : f32 from vector<1x1x1xf32>
    %cst_12 = arith.constant 4.096000e+03 : f32
    %27 = arith.divf %26, %cst_12 : f32
    %28 = vector.broadcast %19 : f32 to vector<16x256xf32>
    %29 = arith.subf %14, %28 : vector<16x256xf32>
    %cst_13 = arith.constant 9.99999974E-6 : f32
    %30 = arith.addf %27, %cst_13 : f32
    %31 = math.rsqrt %30 : f32
    %32 = vector.broadcast %31 : f32 to vector<16x256xf32>
    %33 = arith.mulf %29, %32 : vector<16x256xf32>
    %c0_14 = arith.constant 0 : index
    %c0_15 = arith.constant 0 : index
    %34 = vector.load %arg3[%c0_14, %c0_15] : memref<16x256xf32, #tpu.memory_space<vmem>>, vector<16x256xf32>
    %35 = arith.mulf %33, %34 : vector<16x256xf32>
    %c0_16 = arith.constant 0 : index
    %c0_17 = arith.constant 0 : index
    %36 = vector.load %arg4[%c0_16, %c0_17] : memref<16x256xf32, #tpu.memory_space<vmem>>, vector<16x256xf32>
    %37 = arith.addf %35, %36 : vector<16x256xf32>
    %38 = vector.extract_strided_slice %13 {offsets = [16, 0], sizes = [16, 256], strides = [1, 1]} : vector<32x256xf32> to vector<16x256xf32>
    %39 = vector.shape_cast %38 : vector<16x256xf32> to vector<1x16x256xf32>
    %cst_18 = arith.constant dense<0.000000e+00> : vector<1xf32>
    %40 = vector.multi_reduction <add>, %39, %cst_18 [1, 2] : vector<1x16x256xf32> to vector<1xf32>
    %41 = vector.shape_cast %40 : vector<1xf32> to vector<1x1x1xf32>
    %42 = vector.extract %41[0, 0, 0] : f32 from vector<1x1x1xf32>
    %cst_19 = arith.constant 4.096000e+03 : f32
    %43 = arith.divf %42, %cst_19 : f32
    %44 = vector.broadcast %43 : f32 to vector<16x256xf32>
    %45 = arith.subf %38, %44 : vector<16x256xf32>
    %46 = arith.mulf %45, %45 : vector<16x256xf32>
    %47 = vector.shape_cast %46 : vector<16x256xf32> to vector<1x16x256xf32>
    %cst_20 = arith.constant dense<0.000000e+00> : vector<1xf32>
    %48 = vector.multi_reduction <add>, %47, %cst_20 [1, 2] : vector<1x16x256xf32> to vector<1xf32>
    %49 = vector.shape_cast %48 : vector<1xf32> to vector<1x1x1xf32>
    %50 = vector.extract %49[0, 0, 0] : f32 from vector<1x1x1xf32>
    %cst_21 = arith.constant 4.096000e+03 : f32
    %51 = arith.divf %50, %cst_21 : f32
    %52 = vector.broadcast %43 : f32 to vector<16x256xf32>
    %53 = arith.subf %38, %52 : vector<16x256xf32>
    %cst_22 = arith.constant 9.99999974E-6 : f32
    %54 = arith.addf %51, %cst_22 : f32
    %55 = math.rsqrt %54 : f32
    %56 = vector.broadcast %55 : f32 to vector<16x256xf32>
    %57 = arith.mulf %53, %56 : vector<16x256xf32>
    %c0_23 = arith.constant 0 : index
    %c0_24 = arith.constant 0 : index
    %58 = vector.load %arg3[%c0_23, %c0_24] : memref<16x256xf32, #tpu.memory_space<vmem>>, vector<16x256xf32>
    %59 = arith.mulf %57, %58 : vector<16x256xf32>
    %c0_25 = arith.constant 0 : index
    %c0_26 = arith.constant 0 : index
    %60 = vector.load %arg4[%c0_25, %c0_26] : memref<16x256xf32, #tpu.memory_space<vmem>>, vector<16x256xf32>
    %61 = arith.addf %59, %60 : vector<16x256xf32>
    %62 = tpu.concatenate %37, %61 in 0 : vector<16x256xf32>, vector<16x256xf32> -> vector<32x256xf32>
    %c1 = arith.constant 1 : index
    %c0_27 = arith.constant 0 : index
    %c0_28 = arith.constant 0 : index
    %63 = vector.load %arg1[%c1, %c0_27, %c0_28] : memref<2x32x32xbf16, #tpu.memory_space<vmem>>, vector<1x32x32xbf16>
    %64 = vector.shape_cast %63 : vector<1x32x32xbf16> to vector<32x32xbf16>
    %65 = arith.truncf %62 : vector<32x256xf32> to vector<32x256xbf16>
    %cst_29 = arith.constant dense<0.000000e+00> : vector<32x256xf32>
    %66 = tpu.matmul %64, %65, %cst_29 {dimension_numbers = #tpu.dot_dimension_numbers<[1], [0], [0], [1], [0, 0, 1, 1], [], []>} : vector<32x32xbf16>, vector<32x256xbf16>, vector<32x256xf32> -> vector<32x256xf32>
    %c1_30 = arith.constant 1 : index
    %c0_31 = arith.constant 0 : index
    %c0_32 = arith.constant 0 : index
    %67 = vector.load %arg2[%c1_30, %c0_31, %c0_32] : memref<2x32x1xf32, #tpu.memory_space<vmem>>, vector<1x32x1xf32>
    %68 = vector.shape_cast %67 : vector<1x32x1xf32> to vector<32x1xf32>
    %69 = vector.broadcast %68 : vector<32x1xf32> to vector<32x256xf32>
    %70 = arith.addf %66, %69 : vector<32x256xf32>
    %c0_33 = arith.constant 0 : index
    %c0_34 = arith.constant 0 : index
    %71 = vector.load %arg5[%c0_33, %c0_34] : memref<32x1xf32, #tpu.memory_space<vmem>>, vector<32x1xf32>
    %72 = vector.broadcast %71 : vector<32x1xf32> to vector<32x256xf32>
    %73 = arith.mulf %70, %72 : vector<32x256xf32>
    %74 = vector.extract_strided_slice %73 {offsets = [0, 0], sizes = [16, 256], strides = [1, 1]} : vector<32x256xf32> to vector<16x256xf32>
    %cst_35 = arith.constant dense<0.000000e+00> : vector<256xf32>
    %75 = vector.multi_reduction <add>, %74, %cst_35 [0] : vector<16x256xf32> to vector<256xf32>
    %76 = vector.shape_cast %75 : vector<256xf32> to vector<1x256xf32>
    %c0_36 = arith.constant 0 : index
    %c0_37 = arith.constant 0 : index
    %77 = vector.load %arg6[%c0_36, %c0_37] : memref<1x1xf32, #tpu.memory_space<vmem>>, vector<1x1xf32>
    %78 = vector.broadcast %77 : vector<1x1xf32> to vector<1x256xf32>
    %79 = arith.addf %76, %78 : vector<1x256xf32>
    %80 = vector.extract_strided_slice %73 {offsets = [16, 0], sizes = [16, 256], strides = [1, 1]} : vector<32x256xf32> to vector<16x256xf32>
    %cst_38 = arith.constant dense<0.000000e+00> : vector<256xf32>
    %81 = vector.multi_reduction <add>, %80, %cst_38 [0] : vector<16x256xf32> to vector<256xf32>
    %82 = vector.shape_cast %81 : vector<256xf32> to vector<1x256xf32>
    %c0_39 = arith.constant 0 : index
    %c0_40 = arith.constant 0 : index
    %83 = vector.load %arg6[%c0_39, %c0_40] : memref<1x1xf32, #tpu.memory_space<vmem>>, vector<1x1xf32>
    %84 = vector.broadcast %83 : vector<1x1xf32> to vector<1x256xf32>
    %85 = arith.addf %82, %84 : vector<1x256xf32>
    %86 = vector.shape_cast %79 : vector<1x256xf32> to vector<1x1x256xf32>
    %87 = vector.shape_cast %85 : vector<1x256xf32> to vector<1x1x256xf32>
    %88 = tpu.concatenate %86, %87 in 0 : vector<1x1x256xf32>, vector<1x1x256xf32> -> vector<2x1x256xf32>
    %c0_41 = arith.constant 0 : index
    %c0_42 = arith.constant 0 : index
    %c0_43 = arith.constant 0 : index
    %89 = vector.load %arg7[%c0_41, %c0_42, %c0_43] : memref<2x1x256xf32, #tpu.memory_space<vmem>>, vector<2x1x256xf32>
    tpu.vector_store %arg7[%c0_41, %c0_42, %c0_43], %88 {strides = array<i32>} : memref<2x1x256xf32, #tpu.memory_space<vmem>>, vector<2x1x256xf32>,
    return
  }
}

</mosaic_0001>

<bundles_post_ra>
// kernel: model_forward.3
= control target key start
LH: loop header
LB: loop body
LE: loop exit
PB: predicated region body
PF: predicated region fallthrough
CT: control target
= control target key end

     0   :  { %s796_s0 = inlined_call_operand.vmem [shape: f32[32,256], index: 0, kind: input, shape index: {}]   ;;  %s797_s1 = inlined_call_operand.vmem [shape: bf16[2,32,32], index: 1, kind: input, shape index: {}]   ;;  %s798_s2 = inlined_call_operand.vmem [shape: f32[2,32,1], index: 2, kind: input, shape index: {}]   ;;  %s799_s3 = inlined_call_operand.vmem [shape: f32[16,256], index: 3, kind: input, shape index: {}]   ;;  %s800_s4 = inlined_call_operand.vmem [shape: f32[16,256], index: 4, kind: input, shape index: {}]   ;;  %s801_s5 = inlined_call_operand.vmem [shape: f32[32,1], index: 5, kind: input, shape index: {}]   ;;  %s802_s6 = inlined_call_operand.<no memory space> [shape: f32[1,1], index: 6, kind: input, shape index: {}]   ;;  %s803_s7 = inlined_call_operand.hbm [shape: f32[2,1,256], index: 7, kind: output, shape index: {}]  }
   0x1   :  { %v12_v0 = vstv %s802_s6 }
   0x2   :  { %13 = vst [vmem:[#allocation2] sm:$0x1] %v12_v0 }
   0x3   :  { %v31_v1 = vld [vmem:[%s796_s0 + $0x8] sm:$0xff]  ;;  %v33_v2 = vld [vmem:[%s796_s0 + $0x18] sm:$0xff]  ;;  %v30_v3 = vld [vmem:[%s796_s0] sm:$0xff]  ;;  %v586_v8 = vmov 0  }
   0x4   :  { %v43_v4 = vpack.c.bf16 %v33_v2, %v31_v1  ;;  %v32_v5 = vld [vmem:[%s796_s0 + $0x10] sm:$0xff]  ;;  %v35_v6 = vld [vmem:[%s796_s0 + $0x28] sm:$0xff]  ;;  %v37_v7 = vld [vmem:[%s796_s0 + $0x38] sm:$0xff]  ;;  %119 = vmatprep.mubr.bf16.mxu0 %v586_v8  ;;  %552 = vset.pattern.permute.xlu0 %v586_v8 }
   0x5   :  { %v42_v9 = vpack.c.bf16 %v32_v5, %v30_v3  ;;  %v45_v10 = vpack.c.bf16 %v37_v7, %v35_v6  ;;  %v34_v11 = vld [vmem:[%s796_s0 + $0x20] sm:$0xff]  ;;  %v36_v12 = vld [vmem:[%s796_s0 + $0x30] sm:$0xff]  ;;  %553 = vset.pattern.permute.xlu1 %v586_v8  ;;  %366 = vmatprep.mubr.bf16.mxu1 %v586_v8  ;;  %v47_v15 = vld [vmem:[%s798_s2 + $0x8] sm:$0xff] }
   0x6   :  { %87 = vmatprep.subr.bf16.mxu0 %v43_v4  ;;  %v44_v13 = vpack.c.bf16 %v36_v12, %v34_v11  ;;  %v46_v14 = vld [vmem:[%s798_s2] sm:$0xff] }
   0x7   :  { %88 = vmatpush1.bf16.msra.mxu0 %v42_v9  ;;  %52 = vperm.xlu0 %552, %v46_v14   ;;  %v554_v16 = vld [vmem:[%s797_s1] sm:$0xff]  }
   0x8   :  { %89 = vmatprep.subr.bf16.mxu0 %v45_v10 }
   0x9   :  { %14 = vsyncpa [#allocation4], 0  ;;  %vm80_vm0 = vcmask 261120   ;;  %v49_v17 = vld [vmem:[%s798_s2 + $0x18] sm:$0xff]  ;;  %v555_v18 = vld [vmem:[%s797_s1 + $0x8] sm:$0xff]  }
   0xa   :  { %v48_v44 = vld [vmem:[%s798_s2 + $0x10] sm:$0xff]  ;;  %v528_v5 = vld [vmem:[%s798_s2 + $0x28] sm:$0xff]  ;;  %v387_v6 = vld [vmem:[%s801_s5] sm:$0xff] }
   0xb   :  { %90 = vmatpush1.bf16.msra.mxu0 %v44_v13  ;;  %57 = vperm.xlu0 %552, %v47_v15   ;;  %v389_v7 = vld [vmem:[%s801_s5 + $0x10] sm:$0xff]  ;;  %v433_v9 = vld [vmem:[#allocation2] sm:$0x1] }
   0xe   :  { %521 = vmatmul.mubr.msk.bf16.vlgmr.msra.gmra.mrb[0].mxu0 %vm80_vm0, %v554_v16 }
   0xf   :  { %129 = vmatprep.mubr.bf16.mxu0 %v586_v8  ;;  %67 = vperm.xlu0 %552, %v49_v17  }
  0x16   :  { %522 = vmatmul.mubr.msk.bf16.gmra.mrb[4].mxu0 %vm80_vm0, %v555_v18 }
  0x86   :  { %v53_v19 = vpop.permute.xlu0 %52 }
  0x8a   :  { %v58_v23 = vpop.permute.xlu0 %57 }
  0x8e   :  { %v68_v46 = vpop.permute.xlu0 %67 }
  0xe1   :  { %v121_v20 = vpop.f32.mrb[0].mxu0 }
  0xe2   :  { %v122_v21 = vadd.f32 %v121_v20, %v53_v19  ;;  %v123_v22 = vpop.f32.mrb[1].mxu0 }
  0xe3   :  { %v124_v24 = vadd.f32 %v123_v22, %v53_v19  ;;  %v125_v25 = vpop.f32.mrb[2].mxu0 }
  0xe4   :  { %vm140_vm1 = vcmp.gt.f32.partialorder %v122_v21, 0.0  ;;  %v148_v26 = vmul.f32 0.2, %v122_v21  ;;  %v126_v27 = vadd.f32 %v125_v25, %v58_v23  ;;  %v127_v28 = vpop.f32.mrb[3].mxu0 }
  0xe5   :  { %vm141_vm2 = vcmp.gt.f32.partialorder %v124_v24, 0.0  ;;  %v149_v29 = vmul.f32 0.2, %v124_v24  ;;  %v128_v30 = vadd.f32 %v127_v28, %v58_v23 }
  0xe6   :  { %vm142_vm3 = vcmp.gt.f32.partialorder %v126_v27, 0.0  ;;  %v150_v31 = vmul.f32 0.2, %v126_v27  ;;  %v156_v32 = vsel %vm140_vm1, %v122_v21, %v148_v26 }
  0xe7   :  { %v151_v33 = vmul.f32 0.2, %v128_v30  ;;  %v157_v34 = vsel %vm141_vm2, %v124_v24, %v149_v29  ;;  %vm143_vm4 = vcmp.gt.f32.partialorder %v128_v30, 0.0 }
  0xe8   :  { %v158_v35 = vsel %vm142_vm3, %v126_v27, %v150_v31  ;;  %v164_v36 = vadd.f32 %v157_v34, %v156_v32 }
  0xe9   :  { %v131_v37 = vpop.f32.mrb[4].mxu0  ;;  %v159_v41 = vsel %vm143_vm4, %v128_v30, %v151_v33 }
  0xea   :  { %v133_v38 = vpop.f32.mrb[5].mxu0  ;;  %v165_v39 = vadd.f32 %v164_v36, %v158_v35 }
  0xeb   :  { %v135_v40 = vpop.f32.mrb[6].mxu0 }
  0xec   :  { %v137_v42 = vpop.f32.mrb[7].mxu0  ;;  %v166_v43 = vadd.f32 %v165_v39, %v159_v41  ;;  %v136_v48 = vadd.f32 %v135_v40, %v68_v46  ;;  %v707_v39 = vld [vmem:[%s799_s3 + $0x8] sm:$0xff]  ;;  %v712_v40 = vld [vmem:[%s799_s3 + $0x18] sm:$0xff] }
  0xed   :  { %v138_v51 = vadd.f32 %v137_v42, %v68_v46  ;;  %v722_v46 = vld [vmem:[%s799_s3 + $0x10] sm:$0xff] }
  0xee   :  { %167 = vadd.xlane.f32.xlu1 %v166_v43  ;;  %v154_v55 = vmul.f32 0.2, %v136_v48  ;;  %vm146_vm7 = vcmp.gt.f32.partialorder %v136_v48, 0.0 }
  0xef   :  { %v155_v59 = vmul.f32 0.2, %v138_v51  ;;  %vm147_vm8 = vcmp.gt.f32.partialorder %v138_v51, 0.0 }
  0xf0   :  { %v689_v0 = vsel %vm146_vm7, %v136_v48, %v154_v55  ;;  %v732_v48 = vld [vmem:[%s800_s4 + $0x18] sm:$0xff] }
  0xf1   :  { %v692_v3 = vsel %vm147_vm8, %v138_v51, %v155_v59 }
  0xff   :  { %62 = vperm.xlu1 %553, %v48_v44  }
 0x17b   :  { %v168_v45 = vpop.xlane.xlu1 %167 }
 0x17c   :  { %v169_v47 = vrot.slane %v168_v45, 4 }
 0x17e   :  { %v170_v49 = vadd.f32 %v169_v47, %v168_v45  ;;  %v727_v47 = vld [vmem:[%s800_s4 + $0x8] sm:$0xff] }
 0x17f   :  { %v63_v50 = vpop.permute.xlu1 %62 }
 0x180   :  { %v171_v52 = vrot.slane %v170_v49, 2  ;;  %v132_v53 = vadd.f32 %v131_v37, %v63_v50  ;;  %v134_v54 = vadd.f32 %v133_v38, %v63_v50 }
 0x182   :  { %vm144_vm5 = vcmp.gt.f32.partialorder %v132_v53, 0.0  ;;  %vm145_vm6 = vcmp.gt.f32.partialorder %v134_v54, 0.0  ;;  %v152_v56 = vmul.f32 0.2, %v132_v53  ;;  %v153_v57 = vmul.f32 0.2, %v134_v54 }
 0x183   :  { %v172_v58 = vadd.f32 %v171_v52, %v170_v49  ;;  %v737_v49 = vld [vmem:[%s800_s4] sm:$0xff] }
 0x184   :  { %v683_v60 = vsel %vm144_vm5, %v132_v53, %v152_v56  ;;  %v685_v61 = vsel %vm145_vm6, %v134_v54, %v153_v57  ;;  %v222_v57 = vld [vmem:[%s800_s4 + $0x10] sm:$0xff] }
 0x185   :  { %v173_v62 = vrot.slane %v172_v58, 1  ;;  %v228_v63 = vadd.f32 %v685_v61, %v683_v60 }
 0x187   :  { %v174_v1 = vadd.f32 %v173_v62, %v172_v58  ;;  %v229_v2 = vadd.f32 %v228_v63, %v689_v0 }
 0x189   :  { %535 = vpush %v174_v1  ;;  %v230_v4 = vadd.f32 %v229_v2, %v692_v3 }
 0x18b   :  { %231 = vadd.xlane.f32.xlu1 %v230_v4 }
 0x19c   :  { %305 = vperm.xlu1 %553, %v528_v5  }
 0x1a0   :  { %393 = vperm.xlu1 %553, %v387_v6  }
 0x1a4   :  { %403 = vperm.xlu1 %553, %v389_v7  }
 0x1a8   :  { %436 = vperm.xlu1 %553, %v433_v9  }
 0x1ba   :  { %s536_s6 = spop %535 }
 0x1bb   :  { %s178_s12 = smul.f32 0.00024414063, %s536_s6 }
 0x1bd   :  { %v179_v10 = vstv %s178_s12 }
 0x1be   :  { %v180_v11 = vsub.f32 %v156_v32, %v179_v10  ;;  %v181_v12 = vsub.f32 %v157_v34, %v179_v10  ;;  %v182_v13 = vsub.f32 %v158_v35, %v179_v10  ;;  %v183_v14 = vsub.f32 %v159_v41, %v179_v10  ;;  %v717_v41 = vld [vmem:[%s799_s3] sm:$0xff] }
 0x1c0   :  { %v184_v15 = vmul.f32 %v180_v11, %v180_v11  ;;  %v185_v16 = vmul.f32 %v181_v12, %v181_v12  ;;  %v186_v17 = vmul.f32 %v182_v13, %v182_v13  ;;  %v187_v19 = vmul.f32 %v183_v14, %v183_v14 }
 0x1c2   :  { %v188_v18 = vadd.f32 %v185_v16, %v184_v15 }
 0x1c4   :  { %v189_v20 = vadd.f32 %v188_v18, %v186_v17 }
 0x1c6   :  { %v190_v21 = vadd.f32 %v189_v20, %v187_v19 }
 0x1c8   :  { %191 = vadd.xlane.f32.xlu0 %v190_v21 }
 0x218   :  { %v232_v29 = vpop.xlane.xlu1 %231 }
 0x219   :  { %v233_v30 = vrot.slane %v232_v29, 4 }
 0x21b   :  { %v234_v31 = vadd.f32 %v233_v30, %v232_v29 }
 0x21d   :  { %v235_v32 = vrot.slane %v234_v31, 2 }
 0x21f   :  { %v236_v34 = vadd.f32 %v235_v32, %v234_v31 }
 0x221   :  { %v237_v35 = vrot.slane %v236_v34, 1 }
 0x223   :  { %v238_v37 = vadd.f32 %v237_v35, %v236_v34 }
 0x255   :  { %v192_v22 = vpop.xlane.xlu0 %191 }
 0x256   :  { %v193_v23 = vrot.slane %v192_v22, 4 }
 0x258   :  { %v194_v24 = vadd.f32 %v193_v23, %v192_v22 }
 0x25a   :  { %v195_v25 = vrot.slane %v194_v24, 2 }
 0x25c   :  { %v196_v26 = vadd.f32 %v195_v25, %v194_v24 }
 0x25e   :  { %v197_v27 = vrot.slane %v196_v26, 1 }
 0x260   :  { %v198_v28 = vadd.f32 %v197_v27, %v196_v26 }
 0x262   :  { %537 = vpush %v198_v28 }
 0x293   :  { %s538_s13 = spop %537 }
 0x294   :  { %s202_s14 = smul.f32 0.00024414063, %s538_s13 }
 0x296   :  { %s203_s15 = sadd.f32 1e-05, %s202_s14 }
 0x298   :  { %v204_v33 = vstv %s203_s15 }
 0x299   :  { %558 = vrsqrt.f32 %v204_v33 }
 0x2a3   :  { %v559_v36 = vpop.eup %558 }
 0x2a4   :  { %539 = vpush %v559_v36 }
 0x2a5   :  { %541 = vpush %v238_v37 }
 0x2d5   :  { %s540_s16 = spop %539 }
 0x2d6   :  { %v207_v38 = vstv %s540_s16  ;;  %s542_s17 = spop %541 }
 0x2d7   :  { %v208_v42 = vmul.f32 %v207_v38, %v180_v11  ;;  %v209_v43 = vmul.f32 %v207_v38, %v181_v12  ;;  %v210_v44 = vmul.f32 %v207_v38, %v182_v13  ;;  %v211_v45 = vmul.f32 %v207_v38, %v183_v14  ;;  %s242_s0 = smul.f32 0.00024414063, %s542_s17  ;;  %v527_v11 = vld [vmem:[%s798_s2 + $0x20] sm:$0xff]  ;;  %v530_v12 = vld [vmem:[%s798_s2 + $0x38] sm:$0xff]  ;;  %v388_v13 = vld [vmem:[%s801_s5 + $0x8] sm:$0xff] }
 0x2d8   :  { %v390_v14 = vld [vmem:[%s801_s5 + $0x18] sm:$0xff] }
 0x2d9   :  { %v243_v50 = vstv %s242_s0  ;;  %v217_v51 = vmul.f32 %v707_v39, %v209_v43  ;;  %v219_v52 = vmul.f32 %v712_v40, %v211_v45  ;;  %v216_v53 = vmul.f32 %v717_v41, %v208_v42  ;;  %v306_v43 = vpop.permute.xlu1 %305 }
 0x2da   :  { %v244_v54 = vsub.f32 %v683_v60, %v243_v50  ;;  %v245_v55 = vsub.f32 %v685_v61, %v243_v50  ;;  %v246_v56 = vsub.f32 %v689_v0, %v243_v50  ;;  %v218_v62 = vmul.f32 %v722_v46, %v210_v44 }
 0x2db   :  { %v225_v58 = vadd.f32 %v727_v47, %v217_v51  ;;  %v227_v59 = vadd.f32 %v732_v48, %v219_v52  ;;  %v224_v63 = vadd.f32 %v737_v49, %v216_v53  ;;  %v247_v1 = vsub.f32 %v692_v3, %v243_v50  ;;  %v529_v3 = vld [vmem:[%s798_s2 + $0x30] sm:$0xff] }
 0x2dc   :  { %v248_v2 = vmul.f32 %v244_v54, %v244_v54  ;;  %v249_v60 = vmul.f32 %v245_v55, %v245_v55  ;;  %v226_v61 = vadd.f32 %v222_v57, %v218_v62  ;;  %v250_v5 = vmul.f32 %v246_v56, %v246_v56 }
 0x2dd   :  { %v290_v4 = vpack.c.bf16 %v227_v59, %v225_v58  ;;  %v251_v7 = vmul.f32 %v247_v1, %v247_v1  ;;  %v394_v52 = vpop.permute.xlu1 %393  ;;  %v439_v58 = vlaneseq }
 0x2de   :  { %v252_v0 = vadd.f32 %v249_v60, %v248_v2  ;;  %v289_v6 = vpack.c.bf16 %v226_v61, %v224_v63 }
 0x2df   :  { %334 = vmatprep.subr.bf16.mxu1 %v290_v4  ;;  %vm499_vm9 = vcmp.lt.s32.totalorder %v439_v58, 256 }
 0x2e0   :  { %v253_v9 = vadd.f32 %v252_v0, %v250_v5  ;;  %335 = vmatpush1.bf16.msra.mxu1 %v289_v6  ;;  %v440_v6 = vshrl.u32 %v439_v58, 7 }
 0x2e1   :  { %v404_v4 = vpop.permute.xlu1 %403 }
 0x2e2   :  { %v254_v10 = vadd.f32 %v253_v9, %v251_v7 }
 0x2e4   :  { %255 = vadd.xlane.f32.xlu0 %v254_v10 }
 0x2fa   :  { %300 = vperm.xlu0 %552, %v527_v11  }
 0x2fe   :  { %310 = vperm.xlu0 %552, %v529_v3  }
 0x302   :  { %315 = vperm.xlu0 %552, %v530_v12  }
 0x306   :  { %398 = vperm.xlu0 %552, %v388_v13  }
 0x30a   :  { %408 = vperm.xlu0 %552, %v390_v14  }
 0x371   :  { %v256_v15 = vpop.xlane.xlu0 %255 }
 0x372   :  { %v257_v16 = vrot.slane %v256_v15, 4 }
 0x374   :  { %v258_v17 = vadd.f32 %v257_v16, %v256_v15  ;;  %v587_v16 = vmov 1966171168  }
 0x376   :  { %v259_v18 = vrot.slane %v258_v17, 2 }
 0x378   :  { %v260_v19 = vadd.f32 %v259_v18, %v258_v17  ;;  %v467_v17 = vunpack.c.l.s4 %v587_v16 }
 0x37a   :  { %v261_v20 = vrot.slane %v260_v19, 1 }
 0x37c   :  { %v262_v21 = vadd.f32 %v261_v20, %v260_v19 }
 0x37e   :  { %543 = vpush %v262_v21  ;;  %v441_v21 = vsub.s32 0, %v440_v6 }
 0x3af   :  { %s544_s2 = spop %543 }
 0x3b0   :  { %s266_s18 = smul.f32 0.00024414063, %s544_s2 }
 0x3b2   :  { %s267_s19 = sadd.f32 1e-05, %s266_s18 }
 0x3b4   :  { %v268_v22 = vstv %s267_s19 }
 0x3b5   :  { %560 = vrsqrt.f32 %v268_v22 }
 0x3bf   :  { %v561_v23 = vpop.eup %560 }
 0x3c0   :  { %545 = vpush %v561_v23 }
 0x3f1   :  { %s546_s20 = spop %545 }
 0x3f2   :  { %v271_v24 = vstv %s546_s20 }
 0x3f3   :  { %v272_v25 = vmul.f32 %v271_v24, %v244_v54  ;;  %v273_v26 = vmul.f32 %v271_v24, %v245_v55  ;;  %v274_v27 = vmul.f32 %v271_v24, %v246_v56  ;;  %v275_v28 = vmul.f32 %v271_v24, %v247_v1  ;;  %v437_v24 = vpop.permute.xlu1 %436 }
 0x3f5   :  { %v276_v29 = vmul.f32 %v272_v25, %v717_v41  ;;  %v277_v30 = vmul.f32 %v273_v26, %v707_v39  ;;  %v278_v31 = vmul.f32 %v274_v27, %v722_v46  ;;  %v279_v32 = vmul.f32 %v275_v28, %v712_v40  ;;  %v556_v41 = vld [vmem:[%s797_s1 + $0x10] sm:$0xff]   ;;  %v557_v39 = vld [vmem:[%s797_s1 + $0x18] sm:$0xff]   ;;  %v301_v40 = vpop.permute.xlu0 %300  ;;  %s588_s1 = smov [#allocation3]  }
 0x3f6   :  { %s508_s0 = sshll.u32 %s588_s1, 4  ;;  %s509_s0 = int_to_ptr.vmem [resolvable:$true] %s508_s0 }
 0x3f7   :  { %v281_v33 = vadd.f32 %v277_v30, %v727_v47  ;;  %v283_v34 = vadd.f32 %v279_v32, %v732_v48  ;;  %v280_v35 = vadd.f32 %v276_v29, %v737_v49  ;;  %v282_v36 = vadd.f32 %v278_v31, %v222_v57  ;;  %s562_s24 = scalar_lea.vmem %s509_s0, 64  ;;  %p567_p1 = scmp.lt.s32.totalorder %s509_s0, %s509_s0 }
 0x3f8   :  { %v468_v29 = vunpack.c.0.s8 %v467_v17  ;;  %v442_v32 = vrot.slane %v437_v24, %v441_v21  ;;  %p563_p0 = scmp.ne.s32.totalorder %s509_s0, %s562_s24  ;;  %p568_p2 = scmp.lt.s32.totalorder %s562_s24, %s562_s24 }
 0x3f9   :  { %v292_v37 = vpack.c.bf16 %v283_v34, %v281_v33  ;;  %v291_v38 = vpack.c.bf16 %v282_v36, %v280_v35  ;;  %v311_v42 = vpop.permute.xlu0 %310 }
 0x3fa   :  { %p569_p3 = por %p568_p2, %p567_p1 }
 0x3fb   :  { %336 = vmatprep.subr.bf16.mxu1 %v292_v37 }
 0x3fc   :  { %337 = vmatpush1.bf16.msra.mxu1 %v291_v38  ;;  %p570_p4 = pnand %p569_p3, %p563_p0 }
 0x3fd   :  { %v316_v44 = vpop.permute.xlu0 %315 }
 0x3ff   :  { %533 = vmatmul.mubr.msk.bf16.vlgmr.msra.gmra.mrb[0].mxu1 %vm80_vm0, %v556_v41  ;;  %v471_v41 = vsub.s32 %v468_v29, %v440_v6 }
 0x400   :  { %376 = vmatprep.mubr.bf16.mxu1 %v586_v8 }
 0x401   :  { %v399_v53 = vpop.permute.xlu0 %398 }
 0x405   :  { %v409_v11 = vpop.permute.xlu0 %408 }
 0x407   :  { %534 = vmatmul.mubr.msk.bf16.gmra.mrb[4].mxu1 %vm80_vm0, %v557_v39 }
 0x4d2   :  { %v368_v45 = vpop.f32.mrb[0].mxu1 }
 0x4d3   :  { %v369_v46 = vadd.f32 %v368_v45, %v301_v40  ;;  %v370_v47 = vpop.f32.mrb[1].mxu1 }
 0x4d4   :  { %v371_v48 = vadd.f32 %v370_v47, %v301_v40  ;;  %v372_v49 = vpop.f32.mrb[2].mxu1 }
 0x4d5   :  { %v373_v50 = vadd.f32 %v372_v49, %v306_v43  ;;  %v374_v51 = vpop.f32.mrb[3].mxu1  ;;  %v411_v54 = vmul.f32 %v394_v52, %v369_v46 }
 0x4d6   :  { %v375_v8 = vadd.f32 %v374_v51, %v306_v43  ;;  %v412_v56 = vmul.f32 %v394_v52, %v371_v48 }
 0x4d7   :  { %v413_v55 = vmul.f32 %v399_v53, %v373_v50 }
 0x4d8   :  { %v414_v57 = vmul.f32 %v399_v53, %v375_v8 }
 0x4d9   :  { %v419_v59 = vadd.f32 %v413_v55, %v411_v54 }
 0x4da   :  { %v426_v62 = vadd.f32 %v414_v57, %v412_v56  ;;  %v378_v63 = vpop.f32.mrb[4].mxu1 }
 0x4db   :  { %v420_v1 = vrot.slane %v419_v59, 4  ;;  %v379_v2 = vadd.f32 %v378_v63, %v311_v42  ;;  %v380_v60 = vpop.f32.mrb[5].mxu1 }
 0x4dc   :  { %v427_v61 = vrot.slane %v426_v62, 4  ;;  %v381_v5 = vadd.f32 %v380_v60, %v311_v42  ;;  %v382_v0 = vpop.f32.mrb[6].mxu1 }
 0x4dd   :  { %v421_v7 = vadd.f32 %v420_v1, %v419_v59  ;;  %v383_v9 = vadd.f32 %v382_v0, %v316_v44  ;;  %v384_v10 = vpop.f32.mrb[7].mxu1  ;;  %v415_v14 = vmul.f32 %v404_v4, %v379_v2 }
 0x4de   :  { %v428_v3 = vadd.f32 %v427_v61, %v426_v62  ;;  %v385_v12 = vadd.f32 %v384_v10, %v316_v44  ;;  %v416_v19 = vmul.f32 %v404_v4, %v381_v5 }
 0x4df   :  { %v422_v13 = vrot.slane %v421_v7, 2  ;;  %v417_v15 = vmul.f32 %v409_v11, %v383_v9 }
 0x4e0   :  { %v429_v18 = vrot.slane %v428_v3, 2  ;;  %v418_v20 = vmul.f32 %v409_v11, %v385_v12 }
 0x4e1   :  { %v423_v22 = vadd.f32 %v422_v13, %v421_v7  ;;  %v445_v23 = vadd.f32 %v417_v15, %v415_v14 }
 0x4e2   :  { %v430_v25 = vadd.f32 %v429_v18, %v428_v3  ;;  %v452_v26 = vadd.f32 %v418_v20, %v416_v19 }
 0x4e3   :  { %v424_v27 = vrot.slane %v423_v22, 1  ;;  %v446_v28 = vrot.slane %v445_v23, 4 }
 0x4e4   :  { %v431_v30 = vrot.slane %v430_v25, 1  ;;  %v453_v31 = vrot.slane %v452_v26, 4 }
 0x4e5   :  { %v425_v33 = vadd.f32 %v424_v27, %v423_v22  ;;  %v447_v34 = vadd.f32 %v446_v28, %v445_v23 }
 0x4e6   :  { %v432_v35 = vadd.f32 %v431_v30, %v430_v25  ;;  %v454_v36 = vadd.f32 %v453_v31, %v452_v26 }
 0x4e7   :  { %v443_v37 = vadd.f32 %v442_v32, %v425_v33  ;;  %v448_v38 = vrot.slane %v447_v34, 2 }
 0x4e8   :  { %v444_v39 = vadd.f32 %v442_v32, %v432_v35  ;;  %v455_v40 = vrot.slane %v454_v36, 2 }
 0x4e9   :  { %v449_v42 = vadd.f32 %v448_v38, %v447_v34 }
 0x4ea   :  { %v456_v43 = vadd.f32 %v455_v40, %v454_v36  ;;  %v465_v44 = vcombine.low %v443_v37, %v444_v39 }
 0x4eb   :  { %v450_v45 = vrot.slane %v449_v42, 1 }
 0x4ec   :  { %v457_v46 = vrot.slane %v456_v43, 1  ;;  %v472_v47 = vrot.slane %v465_v44, %v471_v41 }
 0x4ed   :  { %v451_v48 = vadd.f32 %v450_v45, %v449_v42 }
 0x4ee   :  { %v458_v49 = vadd.f32 %v457_v46, %v456_v43  ;;  %v479_v50 = vrot.slane %v472_v47, %v471_v41 }
 0x4ef   :  { %v459_v51 = vadd.f32 %v451_v48, %v442_v32 }
 0x4f0   :  { %v460_v52 = vadd.f32 %v458_v49, %v442_v32  ;;  %501 = vst.msk [vmem:[#allocation3] sm:$0x3] %vm499_vm9, %v479_v50 }
 0x4f2   :  { %v480_v53 = vcombine.low %v459_v51, %v460_v52 }
 0x4f4   :  { %v487_v8 = vrot.slane %v480_v53, %v471_v41 }
 0x4f6   :  { %v494_v54 = vrot.slane %v487_v8, %v471_v41 }
 0x4f8   :  { %502 = vst.msk [vmem:[#allocation3 + $0x2] sm:$0x3] %vm499_vm9, %v494_v54 }
 0x4f9   :  { %573 = shalt.err (!%p570_p4)
}
 0x4fa   :  { %s574_s27 = scalar_lea.hbm %s803_s7, 64 }
 0x4fb   :  { %p575_p5 = scmp.ne.s32.totalorder %s803_s7, %s574_s27  ;;  %p578_p6 = scmp.lt.u32.totalorder %s574_s27, %s803_s7 }
 0x4fd   :  { %p580_p7 = pnand %p578_p6, %p575_p5 }
 0x4ff   :  { %583 = shalt.err (!%p580_p7)
}
 0x500   :  { %s589_s3 = smov 32   ;;  %s590_s9 = smov 2  }
 0x501   :  { %514 = dma.vmem_to_hbm [thread:$0]  %s509_s0, 64, %s803_s7, [#allocation4], %s589_s3, %s589_s3, %s590_s9  }
 0x502   :  { %584 = dma.done.wait [#allocation4], 64  }
 0x503   :  { %585 = vsyncadd [#allocation4], 4294967232 }
 0x504   :  { %518 = vsyncpa [#allocation4], 1 }

// kernel: model_forward.2
= control target key start
LH: loop header
LB: loop body
LE: loop exit
PB: predicated region body
PF: predicated region fallthrough
CT: control target
= control target key end

     0   :  { %v3398_v1 = vmov 0   ;;  %v216_v51 = vlaneseq  ;;  %vm4975_vm9 = vcmask 785408   ;;  %s3401_s25 = smov 3   ;;  %s3402_s26 = smov 125   ;;  %s4963_s0 = inlined_call_operand.vmem [shape: bf16[128,256], index: 0, kind: input, shape index: {}]   ;;  %s4964_s1 = inlined_call_operand.vmem [shape: bf16[32,128], index: 1, kind: input, shape index: {}]   ;;  %s4965_s2 = inlined_call_operand.vmem [shape: f32[32,1], index: 2, kind: input, shape index: {}]   ;;  %s4966_s4 = inlined_call_operand.vmem [shape: f32[7,32,1], index: 4, kind: input, shape index: {}]   ;;  %s4967_s3 = inlined_call_operand.vmem [shape: bf16[7,32,96], index: 3, kind: input, shape index: {}]   ;;  %s4968_s5 = inlined_call_operand.vmem [shape: f32[7,32,1], index: 5, kind: input, shape index: {}]   ;;  %s4969_s6 = inlined_call_operand.vmem [shape: f32[7,32,1], index: 6, kind: input, shape index: {}]   ;;  %s4970_s7 = inlined_call_operand.vmem [shape: f32[32,2], index: 7, kind: output, shape index: {}]  }
   0x1   :  { %v3302_v0 = vld [vmem:[%s4963_s0 + $0x4] ss:$8 sps:$4 sm:$0xff]   ;;  %195 = vmatprep.mubr.bf16.mxu0 %v3398_v1  ;;  %3020 = vset.pattern.permute.xlu0 %v3398_v1  ;;  %v3304_v2 = vld [vmem:[%s4963_s0] ss:$8 sps:$4 sm:$0xff]   ;;  %v3305_v3 = vld [vmem:[%s4963_s0 + $0x14] ss:$8 sps:$4 sm:$0xff]  }
   0x2   :  { %3021 = vset.pattern.permute.xlu1 %v3398_v1  ;;  %402 = vmatprep.mubr.bf16.mxu1 %v3398_v1  ;;  %v3307_v4 = vld [vmem:[%s4963_s0 + $0x10] ss:$8 sps:$4 sm:$0xff]   ;;  %v3308_v5 = vld [vmem:[%s4963_s0 + $0x24] ss:$8 sps:$4 sm:$0xff]   ;;  %v3310_v6 = vld [vmem:[%s4963_s0 + $0x20] ss:$8 sps:$4 sm:$0xff]  }
   0x3   :  { %163 = vmatprep.subr.bf16.mxu0 %v3302_v0  ;;  %v3311_v7 = vld [vmem:[%s4963_s0 + $0x34] ss:$8 sps:$4 sm:$0xff]   ;;  %v3313_v8 = vld [vmem:[%s4963_s0 + $0x30] ss:$8 sps:$4 sm:$0xff]   ;;  %v3314_v9 = vld [vmem:[%s4963_s0 + $0x44] ss:$8 sps:$4 sm:$0xff]  }
   0x4   :  { %164 = vmatpush1.bf16.msra.mxu0 %v3304_v2  ;;  %v47_v10 = vld [vmem:[%s4965_s2] sm:$0xff]  ;;  %v49_v11 = vld [vmem:[%s4965_s2 + $0x10] sm:$0xff]  ;;  %v48_v12 = vld [vmem:[%s4965_s2 + $0x8] sm:$0xff]  ;;  %v3561_v52 = vand.u32 127, %v216_v51  ;;  %s3403_s10 = smov 9   ;;  %s3404_s11 = smov 119  }
   0x5   :  { %165 = vmatprep.subr.bf16.mxu0 %v3305_v3  ;;  %53 = vperm.xlu0 %3020, %v47_v10   ;;  %v3316_v13 = vld [vmem:[%s4963_s0 + $0x40] ss:$8 sps:$4 sm:$0xff]   ;;  %v50_v14 = vld [vmem:[%s4965_s2 + $0x18] sm:$0xff]  ;;  %v3320_v17 = vld [vmem:[%s4963_s0 + $0x64] ss:$8 sps:$4 sm:$0xff]  }
   0x6   :  { %63 = vperm.xlu1 %3021, %v49_v11   ;;  %v3317_v15 = vld [vmem:[%s4963_s0 + $0x54] ss:$8 sps:$4 sm:$0xff]   ;;  %v3319_v16 = vld [vmem:[%s4963_s0 + $0x50] ss:$8 sps:$4 sm:$0xff]   ;;  %v3322_v18 = vld [vmem:[%s4963_s0 + $0x60] ss:$8 sps:$4 sm:$0xff]  }
   0x7   :  { %v3323_v19 = vld [vmem:[%s4963_s0 + $0x74] ss:$8 sps:$4 sm:$0xff]   ;;  %v3325_v20 = vld [vmem:[%s4963_s0 + $0x70] ss:$8 sps:$4 sm:$0xff]   ;;  %v3326_v21 = vld [vmem:[%s4964_s1] sm:$0xff]   ;;  %s3399_s0 = smov 1  }
   0x8   :  { %166 = vmatpush1.bf16.msra.mxu0 %v3307_v4  ;;  %v3327_v22 = vld [vmem:[%s4964_s1 + $0x8] sm:$0xff]   ;;  %s3400_s1 = smov 127   ;;  %v329_v47 = vld [vmem:[%s4966_s4] sm:$0xff]  ;;  %v331_v49 = vld [vmem:[%s4966_s4 + $0x10] sm:$0xff]  ;;  %v3564_v53 = vadd.s32 128, %v3561_v52  ;;  %vm4977_vm1 = vcmp.lt.s32.totalorder %v3561_v52, 1 }
   0x9   :  { %167 = vmatprep.subr.bf16.mxu0 %v3308_v5  ;;  %58 = vperm.xlu0 %3020, %v48_v12   ;;  %v330_v48 = vld [vmem:[%s4966_s4 + $0x8] sm:$0xff]  ;;  %v332_v50 = vld [vmem:[%s4966_s4 + $0x18] sm:$0xff]  ;;  %vm243_vm2 = vcmp.ge.s32.totalorder %v3561_v52, 1  ;;  %v4982_v4 = vmov 0  ;;  %vm4976_vm5 = vcmp.lt.s32.totalorder %v3561_v52, 127 }
   0xa   :  { %68 = vperm.xlu1 %3021, %v50_v14   ;;  %v3567_v54 = vand.u32 127, %v3564_v53  ;;  %vm3584_vm4 = vmpackc.low %vm243_vm2, %vm243_vm2 }
   0xb   :  { %v4983_v4 = vsel %vm3584_vm4, 4294967295, %v4982_v4  ;;  %vm3635_vm8 = vmpackc.low %vm4976_vm5, %vm4976_vm5 }
   0xc   :  { %168 = vmatpush1.bf16.msra.mxu0 %v3310_v6  ;;  %vm244_vm0 = vcmp.ge.s32.totalorder %v3567_v54, 1  ;;  %vm279_vm6 = vcmp.lt.s32.totalorder %v3567_v54, 127 }
   0xd   :  { %169 = vmatprep.subr.bf16.mxu0 %v3311_v7  ;;  %vm3576_vm3 = vmpackc.low %vm244_vm0, %vm244_vm0 }
   0xe   :  { %vm3618_vm7 = vmpackc.low %vm279_vm6, %vm279_vm6  ;;  %vm4972_vm6 = vcmp.lt.s32.totalorder %v3561_v52, 3 }
  0x10   :  { %170 = vmatpush1.bf16.msra.mxu0 %v3313_v8 }
  0x11   :  { %171 = vmatprep.subr.bf16.mxu0 %v3314_v9 }
  0x14   :  { %172 = vmatpush1.bf16.msra.mxu0 %v3316_v13 }
  0x15   :  { %173 = vmatprep.subr.bf16.mxu0 %v3317_v15 }
  0x18   :  { %174 = vmatpush1.bf16.msra.mxu0 %v3319_v16 }
  0x19   :  { %175 = vmatprep.subr.bf16.mxu0 %v3320_v17 }
  0x1c   :  { %176 = vmatpush1.bf16.msra.mxu0 %v3322_v18 }
  0x1d   :  { %177 = vmatprep.subr.bf16.mxu0 %v3323_v19 }
  0x20   :  { %178 = vmatpush1.bf16.msra.mxu0 %v3325_v20 }
  0x23   :  { %196 = vmatmul.mubr.bf16.vlgmr.msra.gmra.mrb[0].mxu0 %v3326_v21 }
  0x24   :  { %205 = vmatprep.mubr.bf16.mxu0 %v3398_v1 }
  0x2b   :  { %206 = vmatmul.mubr.bf16.gmra.mrb[4].mxu0 %v3327_v22 }
  0x2c   :  { %1094 = vmatprep.mubr.bf16.mxu0 %v3398_v1 }
  0x84   :  { %v54_v23 = vpop.permute.xlu0 %53 }
  0x85   :  { %v64_v32 = vpop.permute.xlu1 %63 }
  0x88   :  { %v59_v25 = vpop.permute.xlu0 %58 }
  0x89   :  { %v69_v38 = vpop.permute.xlu1 %68 }
  0xf6   :  { %v197_v24 = vpop.f32.mrb[0].mxu0 }
  0xf7   :  { %v199_v26 = vpop.f32.mrb[1].mxu0  ;;  %v3517_v28 = vadd.f32 %v197_v24, %v54_v23 }
  0xf8   :  { %v201_v27 = vpop.f32.mrb[2].mxu0  ;;  %v3521_v31 = vadd.f32 %v199_v26, %v54_v23 }
  0xf9   :  { %v3519_v29 = vadd.f32 %v201_v27, %v59_v25  ;;  %v203_v30 = vpop.f32.mrb[3].mxu0 }
  0xfa   :  { %v3523_v33 = vadd.f32 %v203_v30, %v59_v25 }
  0xfb   :  { %v3022_v34 = vpack.i.bf16 %v3519_v29, %v3517_v28  ;;  %v317_v27 = vpack.c.bf16 %v3519_v29, %v3517_v28 }
  0xfc   :  { %v3027_v35 = vpack.i.bf16 %v3523_v33, %v3521_v31  ;;  %v318_v20 = vpack.c.bf16 %v3523_v33, %v3521_v31 }
  0xfd   :  { %3023 = vrot.lane.b32.xlu0 %v3022_v34, %s3399_s0 }
  0xfe   :  { %v207_v36 = vpop.f32.mrb[4].mxu0  ;;  %3028 = vrot.lane.b32.xlu1 %v3027_v35, %s3399_s0 }
  0xff   :  { %v209_v37 = vpop.f32.mrb[5].mxu0  ;;  %v3531_v40 = vadd.f32 %v207_v36, %v64_v32 }
 0x100   :  { %v211_v39 = vpop.f32.mrb[6].mxu0  ;;  %v3535_v43 = vadd.f32 %v209_v37, %v64_v32 }
 0x101   :  { %v3533_v41 = vadd.f32 %v211_v39, %v69_v38  ;;  %v213_v42 = vpop.f32.mrb[7].mxu0 }
 0x102   :  { %v3537_v44 = vadd.f32 %v213_v42, %v69_v38 }
 0x103   :  { %v3032_v45 = vpack.i.bf16 %v3533_v41, %v3531_v40  ;;  %v319_v39 = vpack.c.bf16 %v3533_v41, %v3531_v40 }
 0x104   :  { %v3037_v46 = vpack.i.bf16 %v3537_v44, %v3535_v43 }
 0x105   :  { %3033 = vrot.lane.b32.xlu0 %v3032_v45, %s3399_s0 }
 0x106   :  { %3038 = vrot.lane.b32.xlu1 %v3037_v46, %s3399_s0 }
 0x109   :  { %3043 = vrot.lane.b32.xlu0 %v3022_v34, %s3400_s1  ;;  %v320_v34 = vpack.c.bf16 %v3537_v44, %v3535_v43 }
 0x10a   :  { %3048 = vrot.lane.b32.xlu1 %v3027_v35, %s3400_s1 }
 0x10d   :  { %3053 = vrot.lane.b32.xlu0 %v3032_v45, %s3400_s1 }
 0x10e   :  { %3058 = vrot.lane.b32.xlu1 %v3037_v46, %s3400_s1 }
 0x111   :  { %335 = vperm.xlu0 %3020, %v329_v47  }
 0x112   :  { %340 = vperm.xlu1 %3021, %v330_v48  }
 0x115   :  { %345 = vperm.xlu0 %3020, %v331_v49  }
 0x116   :  { %350 = vperm.xlu1 %3021, %v332_v50  }
 0x16f   :  { %v3024_v55 = vpop.permute.xlu0 %3023 }
 0x170   :  { %v3026_v56 = vunpack.i.h.bf16 %v3024_v55  ;;  %v3025_v57 = vunpack.i.l.bf16 %v3024_v55  ;;  %v3029_v58 = vpop.permute.xlu1 %3028 }
 0x171   :  { %v3031_v59 = vunpack.i.h.bf16 %v3029_v58  ;;  %v3030_v60 = vunpack.i.l.bf16 %v3029_v58 }
 0x173   :  { %v262_v61 = vsel %vm4977_vm1, %v3025_v57, %v3030_v60  ;;  %v263_v62 = vsel %vm4977_vm1, %v3026_v56, %v3031_v59  ;;  %v266_v0 = vsel %vm4977_vm1, %v3030_v60, %v3025_v57  ;;  %v267_v2 = vsel %vm4977_vm1, %v3031_v59, %v3026_v56  ;;  %v3328_v59 = vld [vmem:[%s4967_s3] sm:$0xff]   ;;  %v3329_v60 = vld [vmem:[%s4967_s3 + $0x8] sm:$0xff]  }
 0x174   :  { %v2724_v3 = vpack.c.bf16 %v263_v62, %v262_v61  ;;  %v2727_v5 = vpack.c.bf16 %v267_v2, %v266_v0 }
 0x176   :  { %2725 = vmatprep.subr.msk.bf16.mxu1 %vm3576_vm3, %v2724_v3 }
 0x177   :  { %v3034_v6 = vpop.permute.xlu0 %3033  ;;  %2728 = vmatpush1.bf16.msk.msra.mxu1 %vm3584_vm4, %v2727_v5 }
 0x178   :  { %v3036_v7 = vunpack.i.h.bf16 %v3034_v6  ;;  %v3035_v8 = vunpack.i.l.bf16 %v3034_v6  ;;  %v3039_v9 = vpop.permute.xlu1 %3038 }
 0x179   :  { %v3041_v10 = vunpack.i.h.bf16 %v3039_v9  ;;  %v3040_v11 = vunpack.i.l.bf16 %v3039_v9 }
 0x17b   :  { %v264_v12 = vsel %vm4977_vm1, %v3035_v8, %v3040_v11  ;;  %v265_v13 = vsel %vm4977_vm1, %v3036_v7, %v3041_v10  ;;  %v268_v14 = vsel %vm4977_vm1, %v3040_v11, %v3035_v8  ;;  %v269_v15 = vsel %vm4977_vm1, %v3041_v10, %v3036_v7  ;;  %v3044_v16 = vpop.permute.xlu0 %3043 }
 0x17c   :  { %v3049_v17 = vpop.permute.xlu1 %3048  ;;  %v2730_v18 = vpack.c.bf16 %v265_v13, %v264_v12  ;;  %v2733_v19 = vpack.c.bf16 %v269_v15, %v268_v14  ;;  %v3046_v21 = vunpack.i.h.bf16 %v3044_v16  ;;  %v3045_v22 = vunpack.i.l.bf16 %v3044_v16 }
 0x17d   :  { %v3051_v23 = vunpack.i.h.bf16 %v3049_v17  ;;  %v3050_v24 = vunpack.i.l.bf16 %v3049_v17 }
 0x17e   :  { %2731 = vmatprep.subr.msk.bf16.mxu1 %vm3576_vm3, %v2730_v18 }
 0x17f   :  { %2734 = vmatpush1.bf16.msk.msra.mxu1 %vm3584_vm4, %v2733_v19  ;;  %v3054_v25 = vpop.permute.xlu0 %3053  ;;  %v301_v30 = vsel %vm4976_vm5, %v3050_v24, %v3045_v22  ;;  %v302_v32 = vsel %vm4976_vm5, %v3051_v23, %v3046_v21  ;;  %v297_v45 = vsel %vm4976_vm5, %v3045_v22, %v3050_v24  ;;  %v298_v46 = vsel %vm4976_vm5, %v3046_v21, %v3051_v23 }
 0x180   :  { %v3059_v26 = vpop.permute.xlu1 %3058  ;;  %374 = vmatprep.subr.bf16.mxu1 %v318_v20  ;;  %v3056_v35 = vunpack.i.h.bf16 %v3054_v25  ;;  %v3055_v36 = vunpack.i.l.bf16 %v3054_v25  ;;  %v2736_v47 = vpack.c.bf16 %v302_v32, %v301_v30  ;;  %v2739_v51 = vpack.c.bf16 %v298_v46, %v297_v45 }
 0x181   :  { %v3061_v37 = vunpack.i.h.bf16 %v3059_v26  ;;  %v3060_v38 = vunpack.i.l.bf16 %v3059_v26 }
 0x183   :  { %375 = vmatpush1.bf16.msra.mxu1 %v317_v27  ;;  %v303_v48 = vsel %vm4976_vm5, %v3060_v38, %v3055_v36  ;;  %v304_v49 = vsel %vm4976_vm5, %v3061_v37, %v3056_v35  ;;  %v299_v55 = vsel %vm4976_vm5, %v3055_v36, %v3060_v38  ;;  %v300_v56 = vsel %vm4976_vm5, %v3056_v35, %v3061_v37 }
 0x184   :  { %376 = vmatprep.subr.bf16.mxu1 %v320_v34  ;;  %v2742_v57 = vpack.c.bf16 %v304_v49, %v303_v48  ;;  %v2745_v58 = vpack.c.bf16 %v300_v56, %v299_v55 }
 0x187   :  { %377 = vmatpush1.bf16.msra.mxu1 %v319_v39 }
 0x188   :  { %2737 = vmatprep.subr.msk.bf16.mxu1 %vm3618_vm7, %v2736_v47 }
 0x18b   :  { %2740 = vmatpush1.bf16.msk.msra.mxu1 %vm3635_vm8, %v2739_v51 }
 0x18c   :  { %2743 = vmatprep.subr.msk.bf16.mxu1 %vm3618_vm7, %v2742_v57 }
 0x18f   :  { %2746 = vmatpush1.bf16.msk.msra.mxu1 %vm3635_vm8, %v2745_v58 }
 0x190   :  { %v336_v61 = vpop.permute.xlu0 %335 }
 0x191   :  { %v341_v3 = vpop.permute.xlu1 %340 }
 0x192   :  { %2747 = vmatmul.mubr.msk.bf16.vlgmr.msra.gmra.mrb[0].mxu1 %vm4975_vm9, %v3328_v59 }
 0x193   :  { %412 = vmatprep.mubr.bf16.mxu1 %v3398_v1 }
 0x194   :  { %v346_v18 = vpop.permute.xlu0 %345 }
 0x195   :  { %v351_v24 = vpop.permute.xlu1 %350 }
 0x19a   :  { %2748 = vmatmul.mubr.msk.bf16.gmra.mrb[4].mxu1 %vm4975_vm9, %v3329_v60 }
 0x19b   :  { %747 = vmatprep.mubr.bf16.mxu1 %v3398_v1 }
 0x265   :  { %v404_v62 = vpop.f32.mrb[0].mxu1 }
 0x266   :  { %v405_v0 = vadd.f32 %v404_v62, %v336_v61  ;;  %v406_v2 = vpop.f32.mrb[1].mxu1 }
 0x267   :  { %v407_v5 = vadd.f32 %v406_v2, %v336_v61  ;;  %v408_v6 = vpop.f32.mrb[2].mxu1 }
 0x268   :  { %v423_v7 = vadd.f32 %v405_v0, %v3517_v28  ;;  %v409_v8 = vadd.f32 %v408_v6, %v341_v3  ;;  %v410_v9 = vpop.f32.mrb[3].mxu1 }
 0x269   :  { %v424_v10 = vadd.f32 %v407_v5, %v3521_v31  ;;  %v411_v11 = vadd.f32 %v410_v9, %v341_v3 }
 0x26a   :  { %v439_v12 = vmul.f32 0.2, %v423_v7  ;;  %v425_v13 = vadd.f32 %v409_v8, %v3519_v29  ;;  %vm431_vm10 = vcmp.gt.f32.partialorder %v423_v7, 0.0 }
 0x26b   :  { %v440_v14 = vmul.f32 0.2, %v424_v10  ;;  %v426_v15 = vadd.f32 %v411_v11, %v3523_v33  ;;  %vm432_vm11 = vcmp.gt.f32.partialorder %v424_v10, 0.0 }
 0x26c   :  { %v441_v16 = vmul.f32 0.2, %v425_v13  ;;  %v3663_v17 = vsel %vm431_vm10, %v423_v7, %v439_v12  ;;  %vm433_vm12 = vcmp.gt.f32.partialorder %v425_v13, 0.0  ;;  %vm588_vm10 = vcmp.ge.s32.totalorder %v3567_v54, 3 }
 0x26d   :  { %v442_v19 = vmul.f32 0.2, %v426_v15  ;;  %v414_v28 = vpop.f32.mrb[4].mxu1  ;;  %v3665_v20 = vsel %vm432_vm11, %v424_v10, %v440_v14  ;;  %vm434_vm13 = vcmp.gt.f32.partialorder %v426_v15, 0.0  ;;  %v471_v31 = vmul.f32 %v3663_v17, %v3663_v17 }
 0x26e   :  { %v415_v21 = vadd.f32 %v414_v28, %v346_v18  ;;  %v416_v29 = vpop.f32.mrb[5].mxu1  ;;  %v455_v22 = vadd.f32 %v3665_v20, %v3663_v17  ;;  %v3671_v33 = vsel %vm433_vm12, %v425_v13, %v441_v16  ;;  %v472_v23 = vmul.f32 %v3665_v20, %v3665_v20  ;;  %vm3794_vm12 = vmpackc.low %vm588_vm10, %vm588_vm10 }
 0x26f   :  { %v417_v25 = vadd.f32 %v416_v29, %v346_v18  ;;  %v418_v26 = vpop.f32.mrb[6].mxu1  ;;  %v3675_v27 = vsel %vm434_vm13, %v426_v15, %v442_v19  ;;  %v473_v39 = vmul.f32 %v3671_v33, %v3671_v33  ;;  %vm587_vm11 = vcmp.ge.s32.totalorder %v3561_v52, 3 }
 0x270   :  { %v427_v30 = vadd.f32 %v415_v21, %v3531_v40  ;;  %v419_v32 = vadd.f32 %v418_v26, %v351_v24  ;;  %v420_v34 = vpop.f32.mrb[7].mxu1  ;;  %456 = vadd.xlane.f32.xlu0 %v455_v22  ;;  %v458_v35 = vadd.f32 %v3675_v27, %v3671_v33  ;;  %v479_v38 = vadd.f32 %v472_v23, %v471_v31  ;;  %vm3798_vm13 = vmpackc.low %vm587_vm11, %vm587_vm11 }
 0x271   :  { %v428_v36 = vadd.f32 %v417_v25, %v3535_v43  ;;  %v421_v37 = vadd.f32 %v420_v34, %v351_v24  ;;  %v474_v40 = vmul.f32 %v3675_v27, %v3675_v27 }
 0x272   :  { %v443_v45 = vmul.f32 0.2, %v427_v30  ;;  %v429_v46 = vadd.f32 %v419_v32, %v3533_v41  ;;  %459 = vadd.xlane.f32.xlu1 %v458_v35  ;;  %vm435_vm14 = vcmp.gt.f32.partialorder %v427_v30, 0.0  ;;  %v511_v35 = vld [vmem:[%s4968_s5] sm:$0xff] }
 0x273   :  { %v444_v47 = vmul.f32 0.2, %v428_v36  ;;  %v430_v48 = vadd.f32 %v421_v37, %v3537_v44  ;;  %vm436_vm15 = vcmp.gt.f32.partialorder %v428_v36, 0.0  ;;  %v482_v56 = vadd.f32 %v474_v40, %v473_v39  ;;  %v547_v39 = vld [vmem:[%s4969_s6] sm:$0xff] }
 0x274   :  { %v445_v49 = vmul.f32 0.2, %v429_v46  ;;  %480 = vadd.xlane.f32.xlu0 %v479_v38  ;;  %v3687_v43 = vsel %vm435_vm14, %v427_v30, %v443_v45  ;;  %vm437_vm0 = vcmp.gt.f32.partialorder %v429_v46, 0.0  ;;  %v512_v45 = vld [vmem:[%s4968_s5 + $0x8] sm:$0xff]  ;;  %vm4971_vm14 = vcmp.lt.s32.totalorder %v3561_v52, 125 }
 0x275   :  { %v446_v51 = vmul.f32 0.2, %v430_v48  ;;  %v3689_v55 = vsel %vm436_vm15, %v428_v36, %v444_v47  ;;  %vm438_vm2 = vcmp.gt.f32.partialorder %v430_v48, 0.0  ;;  %v475_v57 = vmul.f32 %v3687_v43, %v3687_v43 }
 0x276   :  { %v461_v41 = vadd.f32 %v3689_v55, %v3687_v43  ;;  %v476_v44 = vmul.f32 %v3689_v55, %v3689_v55  ;;  %v3697_v58 = vsel %vm437_vm0, %v429_v46, %v445_v49  ;;  %v513_v49 = vld [vmem:[%s4968_s5 + $0x10] sm:$0xff]  ;;  %vm623_vm15 = vcmp.lt.s32.totalorder %v3567_v54, 125 }
 0x277   :  { %v3699_v59 = vsel %vm438_vm2, %v430_v48, %v446_v51  ;;  %v477_v62 = vmul.f32 %v3697_v58, %v3697_v58  ;;  %v548_v51 = vld [vmem:[%s4969_s6 + $0x8] sm:$0xff]  ;;  %vm3832_vm0 = vmpackc.low %vm623_vm15, %vm623_vm15 }
 0x278   :  { %462 = vadd.xlane.f32.xlu1 %v461_v41  ;;  %483 = vadd.xlane.f32.xlu0 %v482_v56  ;;  %v485_v60 = vadd.f32 %v476_v44, %v475_v57  ;;  %v464_v61 = vadd.f32 %v3699_v59, %v3697_v58  ;;  %v478_v0 = vmul.f32 %v3699_v59, %v3699_v59  ;;  %vm3849_vm2 = vmpackc.low %vm4971_vm14, %vm4971_vm14 }
 0x27a   :  { %v488_v2 = vadd.f32 %v478_v0, %v477_v62 }
 0x27c   :  { %486 = vadd.xlane.f32.xlu1 %v485_v60  ;;  %465 = vadd.xlane.f32.xlu0 %v464_v61  ;;  %v549_v60 = vld [vmem:[%s4969_s6 + $0x10] sm:$0xff]  ;;  %v514_v61 = vld [vmem:[%s4968_s5 + $0x18] sm:$0xff] }
 0x280   :  { %489 = vadd.xlane.f32.xlu0 %v488_v2 }
 0x2fd   :  { %v457_v3 = vpop.xlane.xlu0 %456 }
 0x2fe   :  { %v467_v5 = vmul.f32 0.00390625, %v457_v3 }
 0x2ff   :  { %v460_v6 = vpop.xlane.xlu1 %459 }
 0x300   :  { %v495_v8 = vmul.f32 %v467_v5, %v467_v5  ;;  %v468_v9 = vmul.f32 0.00390625, %v460_v6 }
 0x301   :  { %v481_v7 = vpop.xlane.xlu0 %480 }
 0x302   :  { %v491_v10 = vmul.f32 0.00390625, %v481_v7  ;;  %v496_v14 = vmul.f32 %v468_v9, %v468_v9 }
 0x304   :  { %v499_v11 = vsub.f32 %v491_v10, %v495_v8 }
 0x305   :  { %v463_v12 = vpop.xlane.xlu1 %462  ;;  %v484_v13 = vpop.xlane.xlu0 %483 }
 0x306   :  { %v503_v15 = vadd.f32 1e-05, %v499_v11  ;;  %v469_v16 = vmul.f32 0.00390625, %v463_v12  ;;  %v492_v18 = vmul.f32 0.00390625, %v484_v13 }
 0x308   :  { %3342 = vrsqrt.f32 %v503_v15  ;;  %v500_v19 = vsub.f32 %v492_v18, %v496_v14  ;;  %v497_v21 = vmul.f32 %v469_v16, %v469_v16 }
 0x309   :  { %v487_v28 = vpop.xlane.xlu1 %486  ;;  %v466_v31 = vpop.xlane.xlu0 %465 }
 0x30a   :  { %v504_v29 = vadd.f32 1e-05, %v500_v19  ;;  %v493_v22 = vmul.f32 0.00390625, %v487_v28  ;;  %v470_v23 = vmul.f32 0.00390625, %v466_v31 }
 0x30c   :  { %3344 = vrsqrt.f32 %v504_v29  ;;  %v501_v24 = vsub.f32 %v493_v22, %v497_v21  ;;  %v498_v30 = vmul.f32 %v470_v23, %v470_v23 }
 0x30d   :  { %v490_v25 = vpop.xlane.xlu0 %489 }
 0x30e   :  { %v505_v26 = vadd.f32 1e-05, %v501_v24  ;;  %v494_v32 = vmul.f32 0.00390625, %v490_v25 }
 0x310   :  { %3346 = vrsqrt.f32 %v505_v26  ;;  %v502_v34 = vsub.f32 %v494_v32, %v498_v30 }
 0x312   :  { %v3343_v36 = vpop.eup %3342  ;;  %v506_v37 = vadd.f32 1e-05, %v502_v34 }
 0x313   :  { %v515_v38 = vmul.f32 %v3343_v36, %v511_v35  ;;  %v2755_v35 = vld [vmem:[%s4966_s4 + $0x30] sm:$0xff] }
 0x314   :  { %3348 = vrsqrt.f32 %v506_v37 }
 0x315   :  { %521 = vperm.xlu1 %3021, %v515_v38   ;;  %v551_v46 = vmul.f32 %v515_v38, %v467_v5  ;;  %v550_v5 = vld [vmem:[%s4969_s6 + $0x18] sm:$0xff] }
 0x316   :  { %v3345_v40 = vpop.eup %3344 }
 0x317   :  { %v555_v47 = vsub.f32 %v547_v39, %v551_v46  ;;  %v516_v48 = vmul.f32 %v3345_v40, %v512_v45 }
 0x319   :  { %561 = vperm.xlu1 %3021, %v555_v47   ;;  %526 = vperm.xlu0 %3020, %v516_v48   ;;  %v552_v41 = vmul.f32 %v516_v48, %v468_v9 }
 0x31a   :  { %v3347_v56 = vpop.eup %3346 }
 0x31b   :  { %v517_v57 = vmul.f32 %v3347_v56, %v513_v49  ;;  %v556_v44 = vsub.f32 %v548_v51, %v552_v41 }
 0x31d   :  { %531 = vperm.xlu0 %3020, %v517_v57   ;;  %566 = vperm.xlu1 %3021, %v556_v44   ;;  %v553_v62 = vmul.f32 %v517_v57, %v469_v16 }
 0x31e   :  { %v3349_v0 = vpop.eup %3348 }
 0x31f   :  { %v557_v2 = vsub.f32 %v549_v60, %v553_v62  ;;  %v518_v3 = vmul.f32 %v3349_v0, %v514_v61 }
 0x321   :  { %571 = vperm.xlu0 %3020, %v557_v2   ;;  %536 = vperm.xlu1 %3021, %v518_v3   ;;  %v554_v6 = vmul.f32 %v518_v3, %v470_v23 }
 0x323   :  { %v558_v7 = vsub.f32 %v550_v5, %v554_v6 }
 0x325   :  { %576 = vperm.xlu1 %3021, %v558_v7  }
 0x394   :  { %v522_v8 = vpop.permute.xlu1 %521 }
 0x395   :  { %v539_v11 = vmul.f32 %v522_v8, %v3663_v17  ;;  %v540_v12 = vmul.f32 %v522_v8, %v3665_v20 }
 0x398   :  { %v562_v9 = vpop.permute.xlu1 %561  ;;  %v527_v10 = vpop.permute.xlu0 %526 }
 0x399   :  { %v541_v13 = vmul.f32 %v527_v10, %v3671_v33  ;;  %v542_v14 = vmul.f32 %v527_v10, %v3675_v27  ;;  %v3735_v18 = vadd.f32 %v562_v9, %v539_v11  ;;  %v3737_v19 = vadd.f32 %v562_v9, %v540_v12 }
 0x39c   :  { %v567_v15 = vpop.permute.xlu1 %566  ;;  %v532_v16 = vpop.permute.xlu0 %531 }
 0x39d   :  { %v3739_v28 = vadd.f32 %v567_v15, %v541_v13  ;;  %v3741_v31 = vadd.f32 %v567_v15, %v542_v14  ;;  %v543_v27 = vmul.f32 %v532_v16, %v3687_v43  ;;  %v544_v29 = vmul.f32 %v532_v16, %v3689_v55  ;;  %v2754_v55 = vld [vmem:[%s4966_s4 + $0x28] sm:$0xff] }
 0x39f   :  { %v3067_v21 = vpack.i.bf16 %v3741_v31, %v3737_v19  ;;  %v3062_v17 = vpack.i.bf16 %v3739_v28, %v3735_v18  ;;  %v662_v12 = vpack.c.bf16 %v3741_v31, %v3737_v19 }
 0x3a0   :  { %v537_v20 = vpop.permute.xlu1 %536  ;;  %v572_v33 = vpop.permute.xlu0 %571 }
 0x3a1   :  { %3068 = vrot.lane.b32.xlu1 %v3067_v21, %s3401_s25  ;;  %3063 = vrot.lane.b32.xlu0 %v3062_v17, %s3401_s25  ;;  %v545_v22 = vmul.f32 %v537_v20, %v3697_v58  ;;  %v546_v23 = vmul.f32 %v537_v20, %v3699_v59  ;;  %v3753_v25 = vadd.f32 %v572_v33, %v543_v27  ;;  %v2753_v58 = vld [vmem:[%s4966_s4 + $0x20] sm:$0xff]  ;;  %v2756_v59 = vld [vmem:[%s4966_s4 + $0x38] sm:$0xff] }
 0x3a2   :  { %v3755_v26 = vadd.f32 %v572_v33, %v544_v29  ;;  %v661_v20 = vpack.c.bf16 %v3739_v28, %v3735_v18 }
 0x3a4   :  { %v577_v24 = vpop.permute.xlu1 %576 }
 0x3a5   :  { %v3757_v30 = vadd.f32 %v577_v24, %v545_v22  ;;  %v3759_v32 = vadd.f32 %v577_v24, %v546_v23 }
 0x3a7   :  { %v3077_v34 = vpack.i.bf16 %v3759_v32, %v3755_v26  ;;  %v3072_v43 = vpack.i.bf16 %v3757_v30, %v3753_v25  ;;  %v664_v29 = vpack.c.bf16 %v3759_v32, %v3755_v26 }
 0x3a9   :  { %3078 = vrot.lane.b32.xlu1 %v3077_v34, %s3401_s25  ;;  %3073 = vrot.lane.b32.xlu0 %v3072_v43, %s3401_s25 }
 0x3ad   :  { %3088 = vrot.lane.b32.xlu1 %v3067_v21, %s3402_s26  ;;  %3083 = vrot.lane.b32.xlu0 %v3062_v17, %s3402_s26 }
 0x3b1   :  { %3098 = vrot.lane.b32.xlu1 %v3077_v34, %s3402_s26  ;;  %3093 = vrot.lane.b32.xlu0 %v3072_v43, %s3402_s26  ;;  %v663_v43 = vpack.c.bf16 %v3757_v30, %v3753_v25 }
 0x3b5   :  { %686 = vperm.xlu1 %3021, %v2754_v55   ;;  %681 = vperm.xlu0 %3020, %v2753_v58  }
 0x3b9   :  { %696 = vperm.xlu1 %3021, %v2756_v59   ;;  %691 = vperm.xlu0 %3020, %v2755_v35  }
 0x413   :  { %v3069_v36 = vpop.permute.xlu1 %3068  ;;  %v3064_v39 = vpop.permute.xlu0 %3063 }
 0x414   :  { %v3071_v37 = vunpack.i.h.bf16 %v3069_v36  ;;  %v3070_v38 = vunpack.i.l.bf16 %v3069_v36  ;;  %v3066_v45 = vunpack.i.h.bf16 %v3064_v39  ;;  %v3065_v46 = vunpack.i.l.bf16 %v3064_v39 }
 0x416   :  { %v607_v40 = vsel %vm4972_vm6, %v3066_v45, %v3071_v37  ;;  %v611_v47 = vsel %vm4972_vm6, %v3071_v37, %v3066_v45  ;;  %v606_v48 = vsel %vm4972_vm6, %v3065_v46, %v3070_v38  ;;  %v610_v49 = vsel %vm4972_vm6, %v3070_v38, %v3065_v46 }
 0x417   :  { %v2763_v41 = vpack.c.bf16 %v611_v47, %v610_v49  ;;  %v2760_v56 = vpack.c.bf16 %v607_v40, %v606_v48  ;;  %v3330_v48 = vld [vmem:[%s4967_s3 + $0x10] sm:$0xff]   ;;  %v3331_v49 = vld [vmem:[%s4967_s3 + $0x18] sm:$0xff]  }
 0x419   :  { %2761 = vmatprep.subr.msk.bf16.mxu1 %vm3794_vm12, %v2760_v56 }
 0x41a   :  { %2764 = vmatpush1.bf16.msk.msra.mxu1 %vm3798_vm13, %v2763_v41 }
 0x41b   :  { %v3079_v44 = vpop.permute.xlu1 %3078  ;;  %v3074_v60 = vpop.permute.xlu0 %3073 }
 0x41c   :  { %v3081_v61 = vunpack.i.h.bf16 %v3079_v44  ;;  %v3080_v62 = vunpack.i.l.bf16 %v3079_v44  ;;  %v3076_v0 = vunpack.i.h.bf16 %v3074_v60  ;;  %v3075_v2 = vunpack.i.l.bf16 %v3074_v60 }
 0x41e   :  { %v609_v3 = vsel %vm4972_vm6, %v3076_v0, %v3081_v61  ;;  %v613_v5 = vsel %vm4972_vm6, %v3081_v61, %v3076_v0  ;;  %v608_v6 = vsel %vm4972_vm6, %v3075_v2, %v3080_v62  ;;  %v612_v7 = vsel %vm4972_vm6, %v3080_v62, %v3075_v2 }
 0x41f   :  { %v2769_v8 = vpack.c.bf16 %v613_v5, %v612_v7  ;;  %v3089_v9 = vpop.permute.xlu1 %3088  ;;  %v3084_v10 = vpop.permute.xlu0 %3083  ;;  %v2766_v11 = vpack.c.bf16 %v609_v3, %v608_v6 }
 0x420   :  { %v3091_v13 = vunpack.i.h.bf16 %v3089_v9  ;;  %v3090_v14 = vunpack.i.l.bf16 %v3089_v9  ;;  %v3086_v15 = vunpack.i.h.bf16 %v3084_v10  ;;  %v3085_v16 = vunpack.i.l.bf16 %v3084_v10 }
 0x421   :  { %2767 = vmatprep.subr.msk.bf16.mxu1 %vm3794_vm12, %v2766_v11 }
 0x422   :  { %2770 = vmatpush1.bf16.msk.msra.mxu1 %vm3798_vm13, %v2769_v8  ;;  %v646_v33 = vsel %vm4971_vm14, %v3091_v13, %v3086_v15  ;;  %v645_v27 = vsel %vm4971_vm14, %v3090_v14, %v3085_v16  ;;  %v642_v58 = vsel %vm4971_vm14, %v3086_v15, %v3091_v13  ;;  %v641_v59 = vsel %vm4971_vm14, %v3085_v16, %v3090_v14 }
 0x423   :  { %v3099_v21 = vpop.permute.xlu1 %3098  ;;  %v3094_v17 = vpop.permute.xlu0 %3093  ;;  %719 = vmatprep.subr.bf16.mxu1 %v662_v12  ;;  %v2772_v35 = vpack.c.bf16 %v646_v33, %v645_v27  ;;  %v2775_v39 = vpack.c.bf16 %v642_v58, %v641_v59 }
 0x424   :  { %v3101_v22 = vunpack.i.h.bf16 %v3099_v21  ;;  %v3100_v23 = vunpack.i.l.bf16 %v3099_v21  ;;  %v3096_v24 = vunpack.i.h.bf16 %v3094_v17  ;;  %v3095_v34 = vunpack.i.l.bf16 %v3094_v17 }
 0x426   :  { %720 = vmatpush1.bf16.msra.mxu1 %v661_v20  ;;  %v648_v36 = vsel %vm4971_vm14, %v3101_v22, %v3096_v24  ;;  %v647_v37 = vsel %vm4971_vm14, %v3100_v23, %v3095_v34  ;;  %v644_v45 = vsel %vm4971_vm14, %v3096_v24, %v3101_v22  ;;  %v643_v46 = vsel %vm4971_vm14, %v3095_v34, %v3100_v23 }
 0x427   :  { %721 = vmatprep.subr.bf16.mxu1 %v664_v29  ;;  %v2778_v40 = vpack.c.bf16 %v648_v36, %v647_v37  ;;  %v2781_v47 = vpack.c.bf16 %v644_v45, %v643_v46 }
 0x42a   :  { %722 = vmatpush1.bf16.msra.mxu1 %v663_v43 }
 0x42b   :  { %2773 = vmatprep.subr.msk.bf16.mxu1 %vm3832_vm0, %v2772_v35 }
 0x42e   :  { %2776 = vmatpush1.bf16.msk.msra.mxu1 %vm3849_vm2, %v2775_v39 }
 0x42f   :  { %2779 = vmatprep.subr.msk.bf16.mxu1 %vm3832_vm0, %v2778_v40 }
 0x432   :  { %2782 = vmatpush1.bf16.msk.msra.mxu1 %vm3849_vm2, %v2781_v47 }
 0x434   :  { %v682_v41 = vpop.permute.xlu0 %681  ;;  %v687_v61 = vpop.permute.xlu1 %686 }
 0x435   :  { %2783 = vmatmul.mubr.msk.bf16.vlgmr.msra.gmra.mrb[8].mxu1 %vm4975_vm9, %v3330_v48 }
 0x436   :  { %757 = vmatprep.mubr.bf16.mxu1 %v3398_v1 }
 0x438   :  { %v692_v14 = vpop.permute.xlu0 %691  ;;  %v697_v33 = vpop.permute.xlu1 %696 }
 0x43d   :  { %2784 = vmatmul.mubr.msk.bf16.gmra.mrb[12].mxu1 %vm4975_vm9, %v3331_v49 }
 0x43e   :  { %1435 = vmatprep.mubr.bf16.mxu1 %v3398_v1 }
 0x508   :  { %v749_v56 = vpop.f32.mrb[8].mxu1 }
 0x509   :  { %v750_v44 = vadd.f32 %v749_v56, %v682_v41  ;;  %v751_v60 = vpop.f32.mrb[9].mxu1 }
 0x50a   :  { %v752_v62 = vadd.f32 %v751_v60, %v682_v41  ;;  %v753_v0 = vpop.f32.mrb[10].mxu1 }
 0x50b   :  { %v768_v2 = vadd.f32 %v750_v44, %v3735_v18  ;;  %v754_v3 = vadd.f32 %v753_v0, %v687_v61  ;;  %v755_v5 = vpop.f32.mrb[11].mxu1 }
 0x50c   :  { %v769_v6 = vadd.f32 %v752_v62, %v3737_v19  ;;  %v756_v7 = vadd.f32 %v755_v5, %v687_v61 }
 0x50d   :  { %v784_v8 = vmul.f32 0.2, %v768_v2  ;;  %v770_v9 = vadd.f32 %v754_v3, %v3739_v28  ;;  %vm776_vm10 = vcmp.gt.f32.partialorder %v768_v2, 0.0 }
 0x50e   :  { %v785_v10 = vmul.f32 0.2, %v769_v6  ;;  %v771_v11 = vadd.f32 %v756_v7, %v3741_v31  ;;  %vm777_vm11 = vcmp.gt.f32.partialorder %v769_v6, 0.0 }
 0x50f   :  { %v786_v12 = vmul.f32 0.2, %v770_v9  ;;  %v3877_v13 = vsel %vm776_vm10, %v768_v2, %v784_v8  ;;  %vm778_vm15 = vcmp.gt.f32.partialorder %v770_v9, 0.0 }
 0x510   :  { %v787_v15 = vmul.f32 0.2, %v771_v11  ;;  %v759_v18 = vpop.f32.mrb[12].mxu1  ;;  %v3879_v16 = vsel %vm777_vm11, %v769_v6, %v785_v10  ;;  %vm779_vm14 = vcmp.gt.f32.partialorder %v771_v11, 0.0  ;;  %v816_v19 = vmul.f32 %v3877_v13, %v3877_v13 }
 0x511   :  { %v760_v21 = vadd.f32 %v759_v18, %v692_v14  ;;  %v761_v28 = vpop.f32.mrb[13].mxu1  ;;  %v800_v17 = vadd.f32 %v3879_v16, %v3877_v13  ;;  %v3885_v31 = vsel %vm778_vm15, %v770_v9, %v786_v12  ;;  %v817_v20 = vmul.f32 %v3879_v16, %v3879_v16 }
 0x512   :  { %v762_v27 = vadd.f32 %v761_v28, %v692_v14  ;;  %v763_v29 = vpop.f32.mrb[14].mxu1  ;;  %v3889_v22 = vsel %vm779_vm14, %v771_v11, %v787_v15  ;;  %v818_v36 = vmul.f32 %v3885_v31, %v3885_v31 }
 0x513   :  { %v772_v23 = vadd.f32 %v760_v21, %v3753_v25  ;;  %v764_v24 = vadd.f32 %v763_v29, %v697_v33  ;;  %v765_v34 = vpop.f32.mrb[15].mxu1  ;;  %801 = vadd.xlane.f32.xlu0 %v800_v17  ;;  %v803_v43 = vadd.f32 %v3889_v22, %v3885_v31  ;;  %v824_v35 = vadd.f32 %v817_v20, %v816_v19 }
 0x514   :  { %v773_v58 = vadd.f32 %v762_v27, %v3755_v26  ;;  %v766_v59 = vadd.f32 %v765_v34, %v697_v33  ;;  %v819_v25 = vmul.f32 %v3889_v22, %v3889_v22 }
 0x515   :  { %v788_v37 = vmul.f32 0.2, %v772_v23  ;;  %v774_v39 = vadd.f32 %v764_v24, %v3757_v30  ;;  %804 = vadd.xlane.f32.xlu1 %v803_v43  ;;  %vm780_vm14 = vcmp.gt.f32.partialorder %v772_v23, 0.0 }
 0x516   :  { %v789_v45 = vmul.f32 0.2, %v773_v58  ;;  %v775_v46 = vadd.f32 %v766_v59, %v3759_v32  ;;  %vm781_vm10 = vcmp.gt.f32.partialorder %v773_v58, 0.0  ;;  %v827_v49 = vadd.f32 %v819_v25, %v818_v36  ;;  %v2785_v36 = vld [vmem:[%s4968_s5 + $0x20] sm:$0xff] }
 0x517   :  { %v790_v40 = vmul.f32 0.2, %v774_v39  ;;  %825 = vadd.xlane.f32.xlu0 %v824_v35  ;;  %v3901_v26 = vsel %vm780_vm14, %v772_v23, %v788_v37  ;;  %vm782_vm11 = vcmp.gt.f32.partialorder %v774_v39, 0.0  ;;  %vm4973_vm14 = vcmp.lt.s32.totalorder %v3561_v52, 9 }
 0x518   :  { %v791_v47 = vmul.f32 0.2, %v775_v46  ;;  %v3903_v48 = vsel %vm781_vm10, %v773_v58, %v789_v45  ;;  %vm783_vm15 = vcmp.gt.f32.partialorder %v775_v46, 0.0  ;;  %v820_v41 = vmul.f32 %v3901_v26, %v3901_v26  ;;  %v2789_v45 = vld [vmem:[%s4969_s6 + $0x20] sm:$0xff] }
 0x519   :  { %v806_v30 = vadd.f32 %v3903_v48, %v3901_v26  ;;  %v821_v32 = vmul.f32 %v3903_v48, %v3903_v48  ;;  %v3911_v56 = vsel %vm782_vm11, %v774_v39, %v790_v40  ;;  %vm935_vm10 = vcmp.ge.s32.totalorder %v3567_v54, 9 }
 0x51a   :  { %v3913_v44 = vsel %vm783_vm15, %v775_v46, %v791_v47  ;;  %v822_v62 = vmul.f32 %v3911_v56, %v3911_v56  ;;  %v2786_v46 = vld [vmem:[%s4968_s5 + $0x28] sm:$0xff]  ;;  %vm934_vm11 = vcmp.ge.s32.totalorder %v3561_v52, 9  ;;  %vm4008_vm15 = vmpackc.low %vm935_vm10, %vm935_vm10  ;;  %vm4974_vm10 = vcmp.lt.s32.totalorder %v3561_v52, 119 }
 0x51b   :  { %807 = vadd.xlane.f32.xlu1 %v806_v30  ;;  %828 = vadd.xlane.f32.xlu0 %v827_v49  ;;  %v830_v60 = vadd.f32 %v821_v32, %v820_v41  ;;  %v809_v61 = vadd.f32 %v3913_v44, %v3911_v56  ;;  %v823_v0 = vmul.f32 %v3913_v44, %v3913_v44  ;;  %v2787_v41 = vld [vmem:[%s4968_s5 + $0x30] sm:$0xff]  ;;  %v2790_v32 = vld [vmem:[%s4969_s6 + $0x28] sm:$0xff]  ;;  %vm4012_vm6 = vmpackc.low %vm934_vm11, %vm934_vm11  ;;  %vm970_vm11 = vcmp.lt.s32.totalorder %v3567_v54, 119 }
 0x51d   :  { %v833_v2 = vadd.f32 %v823_v0, %v822_v62 }
 0x51f   :  { %831 = vadd.xlane.f32.xlu1 %v830_v60  ;;  %810 = vadd.xlane.f32.xlu0 %v809_v61 }
 0x523   :  { %834 = vadd.xlane.f32.xlu0 %v833_v2  ;;  %v2791_v2 = vld [vmem:[%s4969_s6 + $0x30] sm:$0xff] }
 0x5a0   :  { %v802_v3 = vpop.xlane.xlu0 %801 }
 0x5a1   :  { %v812_v5 = vmul.f32 0.00390625, %v802_v3  ;;  %v2788_v3 = vld [vmem:[%s4968_s5 + $0x38] sm:$0xff] }
 0x5a2   :  { %v805_v6 = vpop.xlane.xlu1 %804 }
 0x5a3   :  { %v840_v8 = vmul.f32 %v812_v5, %v812_v5  ;;  %v813_v9 = vmul.f32 0.00390625, %v805_v6 }
 0x5a4   :  { %v826_v7 = vpop.xlane.xlu0 %825 }
 0x5a5   :  { %v836_v10 = vmul.f32 0.00390625, %v826_v7  ;;  %v841_v15 = vmul.f32 %v813_v9, %v813_v9 }
 0x5a7   :  { %v844_v11 = vsub.f32 %v836_v10, %v840_v8 }
 0x5a8   :  { %v808_v12 = vpop.xlane.xlu1 %807  ;;  %v829_v14 = vpop.xlane.xlu0 %828 }
 0x5a9   :  { %v848_v18 = vadd.f32 1e-05, %v844_v11  ;;  %v814_v19 = vmul.f32 0.00390625, %v808_v12  ;;  %v837_v21 = vmul.f32 0.00390625, %v829_v14 }
 0x5ab   :  { %3350 = vrsqrt.f32 %v848_v18  ;;  %v845_v28 = vsub.f32 %v837_v21, %v841_v15  ;;  %v842_v33 = vmul.f32 %v814_v19, %v814_v19 }
 0x5ac   :  { %v832_v17 = vpop.xlane.xlu1 %831  ;;  %v811_v20 = vpop.xlane.xlu0 %810 }
 0x5ad   :  { %v849_v27 = vadd.f32 1e-05, %v845_v28  ;;  %v838_v29 = vmul.f32 0.00390625, %v832_v17  ;;  %v815_v23 = vmul.f32 0.00390625, %v811_v20 }
 0x5af   :  { %3352 = vrsqrt.f32 %v849_v27  ;;  %v846_v24 = vsub.f32 %v838_v29, %v842_v33  ;;  %v843_v58 = vmul.f32 %v815_v23, %v815_v23 }
 0x5b0   :  { %v835_v34 = vpop.xlane.xlu0 %834 }
 0x5b1   :  { %v850_v43 = vadd.f32 1e-05, %v846_v24  ;;  %v839_v59 = vmul.f32 0.00390625, %v835_v34 }
 0x5b3   :  { %3354 = vrsqrt.f32 %v850_v43  ;;  %v847_v35 = vsub.f32 %v839_v59, %v843_v58 }
 0x5b5   :  { %v3351_v37 = vpop.eup %3350  ;;  %v851_v39 = vadd.f32 1e-05, %v847_v35 }
 0x5b6   :  { %v861_v25 = vmul.f32 %v3351_v37, %v2785_v36 }
 0x5b7   :  { %3356 = vrsqrt.f32 %v851_v39 }
 0x5b8   :  { %867 = vperm.xlu1 %3021, %v861_v25   ;;  %v898_v40 = vmul.f32 %v861_v25, %v812_v5 }
 0x5b9   :  { %v3353_v47 = vpop.eup %3352 }
 0x5ba   :  { %v902_v30 = vsub.f32 %v2789_v45, %v898_v40  ;;  %v862_v49 = vmul.f32 %v3353_v47, %v2786_v46  ;;  %v2799_v45 = vld [vmem:[%s4966_s4 + $0x50] sm:$0xff] }
 0x5bc   :  { %908 = vperm.xlu1 %3021, %v902_v30   ;;  %872 = vperm.xlu0 %3020, %v862_v49   ;;  %v899_v60 = vmul.f32 %v862_v49, %v813_v9  ;;  %v2792_v9 = vld [vmem:[%s4969_s6 + $0x38] sm:$0xff] }
 0x5bd   :  { %v3355_v61 = vpop.eup %3354 }
 0x5be   :  { %v863_v62 = vmul.f32 %v3355_v61, %v2787_v41  ;;  %v903_v0 = vsub.f32 %v2790_v32, %v899_v60 }
 0x5c0   :  { %877 = vperm.xlu0 %3020, %v863_v62   ;;  %913 = vperm.xlu1 %3021, %v903_v0   ;;  %v900_v5 = vmul.f32 %v863_v62, %v814_v19 }
 0x5c1   :  { %v3357_v6 = vpop.eup %3356 }
 0x5c2   :  { %v904_v7 = vsub.f32 %v2791_v2, %v900_v5  ;;  %v864_v8 = vmul.f32 %v3357_v6, %v2788_v3 }
 0x5c4   :  { %918 = vperm.xlu0 %3020, %v904_v7   ;;  %882 = vperm.xlu1 %3021, %v864_v8   ;;  %v901_v10 = vmul.f32 %v864_v8, %v815_v23 }
 0x5c6   :  { %v905_v11 = vsub.f32 %v2792_v9, %v901_v10 }
 0x5c8   :  { %923 = vperm.xlu1 %3021, %v905_v11  }
 0x637   :  { %v868_v12 = vpop.permute.xlu1 %867 }
 0x638   :  { %v885_v18 = vmul.f32 %v868_v12, %v3877_v13  ;;  %v886_v21 = vmul.f32 %v868_v12, %v3879_v16 }
 0x63b   :  { %v909_v14 = vpop.permute.xlu1 %908  ;;  %v873_v15 = vpop.permute.xlu0 %872 }
 0x63c   :  { %v887_v19 = vmul.f32 %v873_v15, %v3885_v31  ;;  %v888_v28 = vmul.f32 %v873_v15, %v3889_v22  ;;  %v3949_v33 = vadd.f32 %v909_v14, %v885_v18  ;;  %v3951_v27 = vadd.f32 %v909_v14, %v886_v21 }
 0x63f   :  { %v914_v17 = vpop.permute.xlu1 %913  ;;  %v878_v20 = vpop.permute.xlu0 %877 }
 0x640   :  { %v3953_v29 = vadd.f32 %v914_v17, %v887_v19  ;;  %v3955_v23 = vadd.f32 %v914_v17, %v888_v28  ;;  %v889_v22 = vmul.f32 %v878_v20, %v3901_v26  ;;  %v890_v34 = vmul.f32 %v878_v20, %v3903_v48  ;;  %v2798_v48 = vld [vmem:[%s4966_s4 + $0x48] sm:$0xff] }
 0x642   :  { %v3107_v24 = vpack.i.bf16 %v3955_v23, %v3951_v27  ;;  %v3102_v13 = vpack.i.bf16 %v3953_v29, %v3949_v33  ;;  %v1009_v20 = vpack.c.bf16 %v3955_v23, %v3951_v27 }
 0x643   :  { %v883_v16 = vpop.permute.xlu1 %882  ;;  %v919_v31 = vpop.permute.xlu0 %918 }
 0x644   :  { %3108 = vrot.lane.b32.xlu1 %v3107_v24, %s3403_s10  ;;  %3103 = vrot.lane.b32.xlu0 %v3102_v13, %s3403_s10  ;;  %v891_v43 = vmul.f32 %v883_v16, %v3911_v56  ;;  %v892_v58 = vmul.f32 %v883_v16, %v3913_v44  ;;  %v3967_v35 = vadd.f32 %v919_v31, %v889_v22  ;;  %v2797_v56 = vld [vmem:[%s4966_s4 + $0x40] sm:$0xff]  ;;  %v2800_v44 = vld [vmem:[%s4966_s4 + $0x58] sm:$0xff] }
 0x645   :  { %v3969_v36 = vadd.f32 %v919_v31, %v890_v34 }
 0x647   :  { %v924_v59 = vpop.permute.xlu1 %923 }
 0x648   :  { %v3971_v37 = vadd.f32 %v924_v59, %v891_v43  ;;  %v3973_v39 = vadd.f32 %v924_v59, %v892_v58  ;;  %v1008_v43 = vpack.c.bf16 %v3953_v29, %v3949_v33 }
 0x64a   :  { %v3117_v25 = vpack.i.bf16 %v3973_v39, %v3969_v36  ;;  %v3112_v26 = vpack.i.bf16 %v3971_v37, %v3967_v35 }
 0x64c   :  { %3118 = vrot.lane.b32.xlu1 %v3117_v25, %s3403_s10  ;;  %3113 = vrot.lane.b32.xlu0 %v3112_v26, %s3403_s10 }
 0x650   :  { %3128 = vrot.lane.b32.xlu1 %v3107_v24, %s3404_s11  ;;  %3123 = vrot.lane.b32.xlu0 %v3102_v13, %s3404_s11 }
 0x654   :  { %3138 = vrot.lane.b32.xlu1 %v3117_v25, %s3404_s11  ;;  %3133 = vrot.lane.b32.xlu0 %v3112_v26, %s3404_s11  ;;  %v1011_v25 = vpack.c.bf16 %v3973_v39, %v3969_v36 }
 0x658   :  { %1033 = vperm.xlu1 %3021, %v2798_v48   ;;  %1028 = vperm.xlu0 %3020, %v2797_v56  }
 0x65c   :  { %1043 = vperm.xlu1 %3021, %v2800_v44   ;;  %1038 = vperm.xlu0 %3020, %v2799_v45   ;;  %v1010_v45 = vpack.c.bf16 %v3971_v37, %v3967_v35 }
 0x6b6   :  { %v3109_v46 = vpop.permute.xlu1 %3108  ;;  %v3104_v30 = vpop.permute.xlu0 %3103 }
 0x6b7   :  { %v3111_v40 = vunpack.i.h.bf16 %v3109_v46  ;;  %v3110_v47 = vunpack.i.l.bf16 %v3109_v46  ;;  %v3106_v49 = vunpack.i.h.bf16 %v3104_v30  ;;  %v3105_v41 = vunpack.i.l.bf16 %v3104_v30 }
 0x6b9   :  { %v954_v32 = vsel %vm4973_vm14, %v3106_v49, %v3111_v40  ;;  %v958_v60 = vsel %vm4973_vm14, %v3111_v40, %v3106_v49  ;;  %v953_v61 = vsel %vm4973_vm14, %v3105_v41, %v3110_v47  ;;  %v957_v62 = vsel %vm4973_vm14, %v3110_v47, %v3105_v41 }
 0x6ba   :  { %v2807_v2 = vpack.c.bf16 %v958_v60, %v957_v62  ;;  %v2804_v3 = vpack.c.bf16 %v954_v32, %v953_v61 }
 0x6bc   :  { %2805 = vmatprep.subr.msk.bf16.mxu0 %vm4008_vm15, %v2804_v3  ;;  %v3332_v3 = vld [vmem:[%s4967_s3 + $0x20] sm:$0xff]  }
 0x6bd   :  { %2808 = vmatpush1.bf16.msk.msra.mxu0 %vm4012_vm6, %v2807_v2 }
 0x6be   :  { %v3119_v6 = vpop.permute.xlu1 %3118  ;;  %v3114_v7 = vpop.permute.xlu0 %3113 }
 0x6bf   :  { %v3121_v8 = vunpack.i.h.bf16 %v3119_v6  ;;  %v3120_v9 = vunpack.i.l.bf16 %v3119_v6  ;;  %v3116_v10 = vunpack.i.h.bf16 %v3114_v7  ;;  %v3115_v11 = vunpack.i.l.bf16 %v3114_v7  ;;  %v3333_v6 = vld [vmem:[%s4967_s3 + $0x28] sm:$0xff]  }
 0x6c1   :  { %v956_v12 = vsel %vm4973_vm14, %v3116_v10, %v3121_v8  ;;  %v960_v14 = vsel %vm4973_vm14, %v3121_v8, %v3116_v10  ;;  %v955_v15 = vsel %vm4973_vm14, %v3115_v11, %v3120_v9  ;;  %v959_v18 = vsel %vm4973_vm14, %v3120_v9, %v3115_v11  ;;  %vm4046_vm14 = vmpackc.low %vm970_vm11, %vm970_vm11 }
 0x6c2   :  { %v2813_v21 = vpack.c.bf16 %v960_v14, %v959_v18  ;;  %v3129_v19 = vpop.permute.xlu1 %3128  ;;  %v3124_v28 = vpop.permute.xlu0 %3123  ;;  %v2810_v17 = vpack.c.bf16 %v956_v12, %v955_v15  ;;  %vm4063_vm11 = vmpackc.low %vm4974_vm10, %vm4974_vm10 }
 0x6c3   :  { %v3131_v24 = vunpack.i.h.bf16 %v3129_v19  ;;  %v3130_v13 = vunpack.i.l.bf16 %v3129_v19  ;;  %v3126_v16 = vunpack.i.h.bf16 %v3124_v28  ;;  %v3125_v31 = vunpack.i.l.bf16 %v3124_v28 }
 0x6c4   :  { %2811 = vmatprep.subr.msk.bf16.mxu0 %vm4008_vm15, %v2810_v17 }
 0x6c5   :  { %2814 = vmatpush1.bf16.msk.msra.mxu0 %vm4012_vm6, %v2813_v21  ;;  %v993_v58 = vsel %vm4974_vm10, %v3131_v24, %v3126_v16  ;;  %v992_v59 = vsel %vm4974_vm10, %v3130_v13, %v3125_v31  ;;  %v989_v40 = vsel %vm4974_vm10, %v3126_v16, %v3131_v24  ;;  %v988_v47 = vsel %vm4974_vm10, %v3125_v31, %v3130_v13 }
 0x6c6   :  { %v3139_v22 = vpop.permute.xlu1 %3138  ;;  %v3134_v34 = vpop.permute.xlu0 %3133  ;;  %1066 = vmatprep.subr.bf16.mxu0 %v1009_v20  ;;  %v2816_v54 = vpack.c.bf16 %v993_v58, %v992_v59  ;;  %v2819_v32 = vpack.c.bf16 %v989_v40, %v988_v47 }
 0x6c7   :  { %v3141_v26 = vunpack.i.h.bf16 %v3139_v22  ;;  %v3140_v48 = vunpack.i.l.bf16 %v3139_v22  ;;  %v3136_v56 = vunpack.i.h.bf16 %v3134_v34  ;;  %v3135_v44 = vunpack.i.l.bf16 %v3134_v34 }
 0x6c9   :  { %1067 = vmatpush1.bf16.msra.mxu0 %v1008_v43  ;;  %v995_v30 = vsel %vm4974_vm10, %v3141_v26, %v3136_v56  ;;  %v994_v49 = vsel %vm4974_vm10, %v3140_v48, %v3135_v44  ;;  %v991_v60 = vsel %vm4974_vm10, %v3136_v56, %v3141_v26  ;;  %v990_v61 = vsel %vm4974_vm10, %v3135_v44, %v3140_v48 }
 0x6ca   :  { %1068 = vmatprep.subr.bf16.mxu0 %v1011_v25  ;;  %v2822_v62 = vpack.c.bf16 %v995_v30, %v994_v49  ;;  %v2825_v2 = vpack.c.bf16 %v991_v60, %v990_v61 }
 0x6cd   :  { %1069 = vmatpush1.bf16.msra.mxu0 %v1010_v45 }
 0x6ce   :  { %2817 = vmatprep.subr.msk.bf16.mxu0 %vm4046_vm14, %v2816_v54 }
 0x6d1   :  { %2820 = vmatpush1.bf16.msk.msra.mxu0 %vm4063_vm11, %v2819_v32 }
 0x6d2   :  { %2823 = vmatprep.subr.msk.bf16.mxu0 %vm4046_vm14, %v2822_v62 }
 0x6d5   :  { %2826 = vmatpush1.bf16.msk.msra.mxu0 %vm4063_vm11, %v2825_v2 }
 0x6d7   :  { %v1029_v7 = vpop.permute.xlu0 %1028  ;;  %v1034_v11 = vpop.permute.xlu1 %1033 }
 0x6d8   :  { %2827 = vmatmul.mubr.msk.bf16.vlgmr.msra.gmra.mrb[8].mxu0 %vm4975_vm9, %v3332_v3 }
 0x6d9   :  { %1104 = vmatprep.mubr.bf16.mxu0 %v3398_v1 }
 0x6db   :  { %v1039_v22 = vpop.permute.xlu0 %1038  ;;  %v1044_v26 = vpop.permute.xlu1 %1043 }
 0x6e0   :  { %2828 = vmatmul.mubr.msk.bf16.gmra.mrb[12].mxu0 %vm4975_vm9, %v3333_v6 }
 0x6e1   :  { %1776 = vmatprep.mubr.bf16.mxu0 %v3398_v1 }
 0x7ab   :  { %v1096_v8 = vpop.f32.mrb[8].mxu0 }
 0x7ac   :  { %v1097_v9 = vadd.f32 %v1096_v8, %v1029_v7  ;;  %v1098_v10 = vpop.f32.mrb[9].mxu0 }
 0x7ad   :  { %v1099_v12 = vadd.f32 %v1098_v10, %v1029_v7  ;;  %v1100_v14 = vpop.f32.mrb[10].mxu0 }
 0x7ae   :  { %v1115_v15 = vadd.f32 %v1097_v9, %v3949_v33  ;;  %v1101_v18 = vadd.f32 %v1100_v14, %v1034_v11  ;;  %v1102_v21 = vpop.f32.mrb[11].mxu0 }
 0x7af   :  { %v1116_v19 = vadd.f32 %v1099_v12, %v3951_v27  ;;  %v1103_v28 = vadd.f32 %v1102_v21, %v1034_v11 }
 0x7b0   :  { %v1131_v17 = vmul.f32 0.2, %v1115_v15  ;;  %v1117_v20 = vadd.f32 %v1101_v18, %v3953_v29  ;;  %vm1123_vm10 = vcmp.gt.f32.partialorder %v1115_v15, 0.0 }
 0x7b1   :  { %v1132_v24 = vmul.f32 0.2, %v1116_v19  ;;  %v1118_v13 = vadd.f32 %v1103_v28, %v3955_v23  ;;  %vm1124_vm9 = vcmp.gt.f32.partialorder %v1116_v19, 0.0 }
 0x7b2   :  { %v1133_v16 = vmul.f32 0.2, %v1117_v20  ;;  %v4091_v31 = vsel %vm1123_vm10, %v1115_v15, %v1131_v17  ;;  %vm1125_vm5 = vcmp.gt.f32.partialorder %v1117_v20, 0.0 }
 0x7b3   :  { %v1134_v34 = vmul.f32 0.2, %v1118_v13  ;;  %v1106_v33 = vpop.f32.mrb[12].mxu0  ;;  %v4093_v43 = vsel %vm1124_vm9, %v1116_v19, %v1132_v24  ;;  %vm1126_vm1 = vcmp.gt.f32.partialorder %v1118_v13, 0.0  ;;  %v1163_v27 = vmul.f32 %v4091_v31, %v4091_v31 }
 0x7b4   :  { %v1107_v58 = vadd.f32 %v1106_v33, %v1039_v22  ;;  %v1108_v29 = vpop.f32.mrb[13].mxu0  ;;  %v1147_v59 = vadd.f32 %v4093_v43, %v4091_v31  ;;  %v4099_v23 = vsel %vm1125_vm5, %v1117_v20, %v1133_v16  ;;  %v1164_v25 = vmul.f32 %v4093_v43, %v4093_v43 }
 0x7b5   :  { %v1109_v48 = vadd.f32 %v1108_v29, %v1039_v22  ;;  %v1110_v56 = vpop.f32.mrb[14].mxu0  ;;  %v4103_v44 = vsel %vm1126_vm1, %v1118_v13, %v1134_v34  ;;  %v1165_v60 = vmul.f32 %v4099_v23, %v4099_v23 }
 0x7b6   :  { %v1119_v45 = vadd.f32 %v1107_v58, %v3967_v35  ;;  %v1111_v40 = vadd.f32 %v1110_v56, %v1044_v26  ;;  %v1112_v47 = vpop.f32.mrb[15].mxu0  ;;  %1148 = vadd.xlane.f32.xlu0 %v1147_v59  ;;  %v1150_v54 = vadd.f32 %v4103_v44, %v4099_v23  ;;  %v1171_v32 = vadd.f32 %v1164_v25, %v1163_v27 }
 0x7b7   :  { %v1120_v30 = vadd.f32 %v1109_v48, %v3969_v36  ;;  %v1113_v49 = vadd.f32 %v1112_v47, %v1044_v26  ;;  %v1166_v35 = vmul.f32 %v4103_v44, %v4103_v44 }
 0x7b8   :  { %v1135_v61 = vmul.f32 0.2, %v1119_v45  ;;  %v1121_v62 = vadd.f32 %v1111_v40, %v3971_v37  ;;  %1151 = vadd.xlane.f32.xlu1 %v1150_v54  ;;  %vm1127_vm1 = vcmp.gt.f32.partialorder %v1119_v45, 0.0 }
 0x7b9   :  { %v1136_v2 = vmul.f32 0.2, %v1120_v30  ;;  %v1122_v3 = vadd.f32 %v1113_v49, %v3973_v39  ;;  %vm1128_vm5 = vcmp.gt.f32.partialorder %v1120_v30, 0.0  ;;  %v1174_v9 = vadd.f32 %v1166_v35, %v1165_v60  ;;  %v2829_v35 = vld [vmem:[%s4968_s5 + $0x40] sm:$0xff] }
 0x7ba   :  { %v1137_v6 = vmul.f32 0.2, %v1121_v62  ;;  %1172 = vadd.xlane.f32.xlu0 %v1171_v32  ;;  %v4115_v36 = vsel %vm1127_vm1, %v1119_v45, %v1135_v61  ;;  %vm1129_vm9 = vcmp.gt.f32.partialorder %v1121_v62, 0.0  ;;  %vm5004_vm1 = vcmp.lt.s32.totalorder %v3561_v52, 1 }
 0x7bb   :  { %v1138_v7 = vmul.f32 0.2, %v1122_v3  ;;  %v4117_v8 = vsel %vm1128_vm5, %v1120_v30, %v1136_v2  ;;  %vm1130_vm10 = vcmp.gt.f32.partialorder %v1122_v3, 0.0  ;;  %v1167_v10 = vmul.f32 %v4115_v36, %v4115_v36  ;;  %vm5005_vm5 = vmmov %vm5004_vm1 }
 0x7bc   :  { %v1153_v37 = vadd.f32 %v4117_v8, %v4115_v36  ;;  %v1168_v39 = vmul.f32 %v4117_v8, %v4117_v8  ;;  %v4125_v11 = vsel %vm1129_vm9, %v1121_v62, %v1137_v6  ;;  %vm5006_vm9 = vmmov %vm5004_vm1 }
 0x7bd   :  { %v4127_v12 = vsel %vm1130_vm10, %v1122_v3, %v1138_v7  ;;  %v1169_v18 = vmul.f32 %v4125_v11, %v4125_v11  ;;  %v2833_v7 = vld [vmem:[%s4969_s6 + $0x40] sm:$0xff]  ;;  %vm5007_vm10 = vmmov %vm5004_vm1 }
 0x7be   :  { %1154 = vadd.xlane.f32.xlu1 %v1153_v37  ;;  %1175 = vadd.xlane.f32.xlu0 %v1174_v9  ;;  %v1177_v14 = vadd.f32 %v1168_v39, %v1167_v10  ;;  %v1156_v15 = vadd.f32 %v4127_v12, %v4125_v11  ;;  %v1170_v21 = vmul.f32 %v4127_v12, %v4127_v12  ;;  %v2830_v37 = vld [vmem:[%s4968_s5 + $0x48] sm:$0xff] }
 0x7c0   :  { %v1180_v19 = vadd.f32 %v1170_v21, %v1169_v18  ;;  %v2834_v18 = vld [vmem:[%s4969_s6 + $0x48] sm:$0xff] }
 0x7c2   :  { %1178 = vadd.xlane.f32.xlu1 %v1177_v14  ;;  %1157 = vadd.xlane.f32.xlu0 %v1156_v15  ;;  %v2831_v15 = vld [vmem:[%s4968_s5 + $0x50] sm:$0xff] }
 0x7c6   :  { %1181 = vadd.xlane.f32.xlu0 %v1180_v19 }
 0x843   :  { %v1149_v28 = vpop.xlane.xlu0 %1148 }
 0x844   :  { %v1159_v17 = vmul.f32 0.00390625, %v1149_v28 }
 0x845   :  { %v1152_v20 = vpop.xlane.xlu1 %1151 }
 0x846   :  { %v1187_v13 = vmul.f32 %v1159_v17, %v1159_v17  ;;  %v1160_v16 = vmul.f32 0.00390625, %v1152_v20 }
 0x847   :  { %v1173_v24 = vpop.xlane.xlu0 %1172 }
 0x848   :  { %v1183_v22 = vmul.f32 0.00390625, %v1173_v24  ;;  %v1188_v58 = vmul.f32 %v1160_v16, %v1160_v16  ;;  %v2832_v24 = vld [vmem:[%s4968_s5 + $0x58] sm:$0xff] }
 0x84a   :  { %v1191_v34 = vsub.f32 %v1183_v22, %v1187_v13 }
 0x84b   :  { %v1155_v33 = vpop.xlane.xlu1 %1154  ;;  %v1176_v27 = vpop.xlane.xlu0 %1175 }
 0x84c   :  { %v1195_v29 = vadd.f32 1e-05, %v1191_v34  ;;  %v1161_v59 = vmul.f32 0.00390625, %v1155_v33  ;;  %v1184_v25 = vmul.f32 0.00390625, %v1176_v27 }
 0x84e   :  { %3358 = vrsqrt.f32 %v1195_v29  ;;  %v1192_v26 = vsub.f32 %v1184_v25, %v1188_v58  ;;  %v1189_v45 = vmul.f32 %v1161_v59, %v1161_v59 }
 0x84f   :  { %v1179_v48 = vpop.xlane.xlu1 %1178  ;;  %v1158_v56 = vpop.xlane.xlu0 %1157 }
 0x850   :  { %v1196_v40 = vadd.f32 1e-05, %v1192_v26  ;;  %v1185_v47 = vmul.f32 0.00390625, %v1179_v48  ;;  %v1162_v54 = vmul.f32 0.00390625, %v1158_v56 }
 0x852   :  { %3360 = vrsqrt.f32 %v1196_v40  ;;  %v1193_v30 = vsub.f32 %v1185_v47, %v1189_v45  ;;  %v1190_v60 = vmul.f32 %v1162_v54, %v1162_v54 }
 0x853   :  { %v1182_v49 = vpop.xlane.xlu0 %1181 }
 0x854   :  { %v1197_v32 = vadd.f32 1e-05, %v1193_v30  ;;  %v1186_v61 = vmul.f32 0.00390625, %v1182_v49 }
 0x856   :  { %3362 = vrsqrt.f32 %v1197_v32  ;;  %v1194_v62 = vsub.f32 %v1186_v61, %v1190_v60 }
 0x858   :  { %v3359_v2 = vpop.eup %3358  ;;  %v1198_v3 = vadd.f32 1e-05, %v1194_v62 }
 0x859   :  { %v1208_v6 = vmul.f32 %v3359_v2, %v2829_v35 }
 0x85a   :  { %3364 = vrsqrt.f32 %v1198_v3 }
 0x85b   :  { %1214 = vperm.xlu1 %3021, %v1208_v6   ;;  %v1245_v9 = vmul.f32 %v1208_v6, %v1159_v17  ;;  %v2835_v17 = vld [vmem:[%s4969_s6 + $0x50] sm:$0xff] }
 0x85c   :  { %v3361_v10 = vpop.eup %3360 }
 0x85d   :  { %v1249_v39 = vsub.f32 %v2833_v7, %v1245_v9  ;;  %v1209_v14 = vmul.f32 %v3361_v10, %v2830_v37  ;;  %v2843_v10 = vld [vmem:[%s4966_s4 + $0x70] sm:$0xff] }
 0x85f   :  { %1255 = vperm.xlu1 %3021, %v1249_v39   ;;  %1219 = vperm.xlu0 %3020, %v1209_v14   ;;  %v1246_v21 = vmul.f32 %v1209_v14, %v1160_v16  ;;  %v2836_v16 = vld [vmem:[%s4969_s6 + $0x58] sm:$0xff] }
 0x860   :  { %v3363_v19 = vpop.eup %3362 }
 0x861   :  { %v1210_v28 = vmul.f32 %v3363_v19, %v2831_v15  ;;  %v1250_v20 = vsub.f32 %v2834_v18, %v1246_v21 }
 0x863   :  { %1224 = vperm.xlu0 %3020, %v1210_v28   ;;  %1260 = vperm.xlu1 %3021, %v1250_v20   ;;  %v1247_v13 = vmul.f32 %v1210_v28, %v1161_v59 }
 0x864   :  { %v3365_v22 = vpop.eup %3364 }
 0x865   :  { %v1251_v34 = vsub.f32 %v2835_v17, %v1247_v13  ;;  %v1211_v33 = vmul.f32 %v3365_v22, %v2832_v24 }
 0x867   :  { %1265 = vperm.xlu0 %3020, %v1251_v34   ;;  %1229 = vperm.xlu1 %3021, %v1211_v33   ;;  %v1248_v27 = vmul.f32 %v1211_v33, %v1162_v54 }
 0x869   :  { %v1252_v58 = vsub.f32 %v2836_v16, %v1248_v27 }
 0x86b   :  { %1270 = vperm.xlu1 %3021, %v1252_v58  }
 0x8da   :  { %v1215_v29 = vpop.permute.xlu1 %1214 }
 0x8db   :  { %v1232_v48 = vmul.f32 %v1215_v29, %v4091_v31  ;;  %v1233_v56 = vmul.f32 %v1215_v29, %v4093_v43 }
 0x8de   :  { %v1256_v25 = vpop.permute.xlu1 %1255  ;;  %v1220_v26 = vpop.permute.xlu0 %1219 }
 0x8df   :  { %v1234_v59 = vmul.f32 %v1220_v26, %v4099_v23  ;;  %v1235_v45 = vmul.f32 %v1220_v26, %v4103_v44  ;;  %v4163_v30 = vadd.f32 %v1256_v25, %v1232_v48  ;;  %v4165_v49 = vadd.f32 %v1256_v25, %v1233_v56 }
 0x8e2   :  { %v1261_v40 = vpop.permute.xlu1 %1260  ;;  %v1225_v47 = vpop.permute.xlu0 %1224 }
 0x8e3   :  { %v4167_v54 = vadd.f32 %v1261_v40, %v1234_v59  ;;  %v4169_v32 = vadd.f32 %v1261_v40, %v1235_v45  ;;  %v1236_v44 = vmul.f32 %v1225_v47, %v4115_v36  ;;  %v1237_v61 = vmul.f32 %v1225_v47, %v4117_v8  ;;  %v2842_v8 = vld [vmem:[%s4966_s4 + $0x68] sm:$0xff] }
 0x8e5   :  { %v3147_v60 = vpack.i.bf16 %v4169_v32, %v4165_v49  ;;  %v3142_v31 = vpack.i.bf16 %v4167_v54, %v4163_v30 }
 0x8e6   :  { %v1230_v43 = vpop.permute.xlu1 %1229  ;;  %v1266_v23 = vpop.permute.xlu0 %1265 }
 0x8e7   :  { %3148 = vrot.lane.b32.xlu1 %v3147_v60, %s3399_s0  ;;  %3143 = vrot.lane.b32.xlu0 %v3142_v31, %s3399_s0  ;;  %v1238_v62 = vmul.f32 %v1230_v43, %v4125_v11  ;;  %v1239_v35 = vmul.f32 %v1230_v43, %v4127_v12  ;;  %v4181_v3 = vadd.f32 %v1266_v23, %v1236_v44  ;;  %v2841_v11 = vld [vmem:[%s4966_s4 + $0x60] sm:$0xff]  ;;  %v2844_v12 = vld [vmem:[%s4966_s4 + $0x78] sm:$0xff] }
 0x8e8   :  { %v4183_v6 = vadd.f32 %v1266_v23, %v1237_v61 }
 0x8ea   :  { %v1271_v2 = vpop.permute.xlu1 %1270 }
 0x8eb   :  { %v4185_v7 = vadd.f32 %v1271_v2, %v1238_v62  ;;  %v4187_v37 = vadd.f32 %v1271_v2, %v1239_v35  ;;  %v1349_v35 = vpack.c.bf16 %v4167_v54, %v4163_v30 }
 0x8ed   :  { %v3157_v9 = vpack.i.bf16 %v4187_v37, %v4183_v6  ;;  %v3152_v36 = vpack.i.bf16 %v4185_v7, %v4181_v3 }
 0x8ef   :  { %3158 = vrot.lane.b32.xlu1 %v3157_v9, %s3399_s0  ;;  %3153 = vrot.lane.b32.xlu0 %v3152_v36, %s3399_s0 }
 0x8f3   :  { %3168 = vrot.lane.b32.xlu1 %v3147_v60, %s3400_s1  ;;  %3163 = vrot.lane.b32.xlu0 %v3142_v31, %s3400_s1  ;;  %v1350_v60 = vpack.c.bf16 %v4169_v32, %v4165_v49 }
 0x8f7   :  { %3178 = vrot.lane.b32.xlu1 %v3157_v9, %s3400_s1  ;;  %3173 = vrot.lane.b32.xlu0 %v3152_v36, %s3400_s1  ;;  %v1352_v36 = vpack.c.bf16 %v4187_v37, %v4183_v6 }
 0x8fb   :  { %1374 = vperm.xlu1 %3021, %v2842_v8   ;;  %1369 = vperm.xlu0 %3020, %v2841_v11  }
 0x8ff   :  { %1384 = vperm.xlu1 %3021, %v2844_v12   ;;  %1379 = vperm.xlu0 %3020, %v2843_v10  }
 0x959   :  { %v3149_v39 = vpop.permute.xlu1 %3148  ;;  %v3144_v18 = vpop.permute.xlu0 %3143 }
 0x95a   :  { %v3151_v14 = vunpack.i.h.bf16 %v3149_v39  ;;  %v3150_v15 = vunpack.i.l.bf16 %v3149_v39  ;;  %v3146_v21 = vunpack.i.h.bf16 %v3144_v18  ;;  %v3145_v19 = vunpack.i.l.bf16 %v3144_v18 }
 0x95b   :  { %v1351_v39 = vpack.c.bf16 %v4185_v7, %v4181_v3 }
 0x95c   :  { %v1298_v28 = vsel %vm5004_vm1, %v3146_v21, %v3151_v14  ;;  %v1302_v20 = vsel %vm5005_vm5, %v3151_v14, %v3146_v21  ;;  %v1297_v17 = vsel %vm5006_vm9, %v3145_v19, %v3150_v15  ;;  %v1301_v24 = vsel %vm5007_vm10, %v3150_v15, %v3145_v19  ;;  %vm5008_vm5 = vmmov %vm5004_vm1 }
 0x95d   :  { %v2851_v13 = vpack.c.bf16 %v1302_v20, %v1301_v24  ;;  %v2848_v22 = vpack.c.bf16 %v1298_v28, %v1297_v17  ;;  %vm5009_vm9 = vmmov %vm5004_vm1 }
 0x95e   :  { %vm5010_vm10 = vmmov %vm5004_vm1 }
 0x95f   :  { %2849 = vmatprep.subr.msk.bf16.mxu1 %vm3576_vm3, %v2848_v22  ;;  %v3334_v22 = vld [vmem:[%s4967_s3 + $0x30] sm:$0xff]  }
 0x960   :  { %2852 = vmatpush1.bf16.msk.msra.mxu1 %vm3584_vm4, %v2851_v13 }
 0x961   :  { %v3159_v34 = vpop.permute.xlu1 %3158  ;;  %v3154_v33 = vpop.permute.xlu0 %3153 }
 0x962   :  { %v3161_v16 = vunpack.i.h.bf16 %v3159_v34  ;;  %v3160_v27 = vunpack.i.l.bf16 %v3159_v34  ;;  %v3156_v58 = vunpack.i.h.bf16 %v3154_v33  ;;  %v3155_v29 = vunpack.i.l.bf16 %v3154_v33  ;;  %v3335_v34 = vld [vmem:[%s4967_s3 + $0x38] sm:$0xff]  }
 0x964   :  { %v1300_v25 = vsel %vm5004_vm1, %v3156_v58, %v3161_v16  ;;  %v1304_v26 = vsel %vm5008_vm5, %v3161_v16, %v3156_v58  ;;  %v1299_v48 = vsel %vm5009_vm9, %v3155_v29, %v3160_v27  ;;  %v1303_v56 = vsel %vm5010_vm10, %v3160_v27, %v3155_v29 }
 0x965   :  { %v2857_v59 = vpack.c.bf16 %v1304_v26, %v1303_v56  ;;  %v3169_v45 = vpop.permute.xlu1 %3168  ;;  %v3164_v40 = vpop.permute.xlu0 %3163  ;;  %v2854_v47 = vpack.c.bf16 %v1300_v25, %v1299_v48  ;;  %vm5011_vm1 = vcmp.lt.s32.totalorder %v3561_v52, 127 }
 0x966   :  { %v3171_v31 = vunpack.i.h.bf16 %v3169_v45  ;;  %v3170_v43 = vunpack.i.l.bf16 %v3169_v45  ;;  %v3166_v23 = vunpack.i.h.bf16 %v3164_v40  ;;  %v3165_v44 = vunpack.i.l.bf16 %v3164_v40  ;;  %vm5012_vm5 = vmmov %vm5011_vm1 }
 0x967   :  { %2855 = vmatprep.subr.msk.bf16.mxu1 %vm3576_vm3, %v2854_v47  ;;  %vm5013_vm9 = vmmov %vm5011_vm1 }
 0x968   :  { %2858 = vmatpush1.bf16.msk.msra.mxu1 %vm3584_vm4, %v2857_v59  ;;  %v1334_v2 = vsel %vm5011_vm1, %v3171_v31, %v3166_v23  ;;  %v1333_v9 = vsel %vm5012_vm5, %v3170_v43, %v3165_v44  ;;  %v1330_v14 = vsel %vm5013_vm9, %v3166_v23, %v3171_v31  ;;  %vm5014_vm10 = vmmov %vm5011_vm1 }
 0x969   :  { %v3179_v61 = vpop.permute.xlu1 %3178  ;;  %v3174_v62 = vpop.permute.xlu0 %3173  ;;  %1407 = vmatprep.subr.bf16.mxu1 %v1350_v60  ;;  %v1329_v15 = vsel %vm5014_vm10, %v3165_v44, %v3170_v43  ;;  %v2860_v18 = vpack.c.bf16 %v1334_v2, %v1333_v9  ;;  %vm5015_vm5 = vmmov %vm5011_vm1  ;;  %vm5018_vm10 = vcmask 785408  }
 0x96a   :  { %v3181_v8 = vunpack.i.h.bf16 %v3179_v61  ;;  %v3180_v11 = vunpack.i.l.bf16 %v3179_v61  ;;  %v3176_v12 = vunpack.i.h.bf16 %v3174_v62  ;;  %v3175_v10 = vunpack.i.l.bf16 %v3174_v62  ;;  %vm5016_vm4 = vmmov %vm5011_vm1 }
 0x96b   :  { %v2863_v28 = vpack.c.bf16 %v1330_v14, %v1329_v15  ;;  %vm5017_vm9 = vmmov %vm5011_vm1 }
 0x96c   :  { %1408 = vmatpush1.bf16.msra.mxu1 %v1349_v35  ;;  %v1336_v21 = vsel %vm5011_vm1, %v3181_v8, %v3176_v12  ;;  %v1335_v19 = vsel %vm5015_vm5, %v3180_v11, %v3175_v10  ;;  %v1332_v20 = vsel %vm5016_vm4, %v3176_v12, %v3181_v8  ;;  %v1331_v17 = vsel %vm5017_vm9, %v3175_v10, %v3180_v11  ;;  %vm5019_vm4 = vmmov %vm5018_vm10 }
 0x96d   :  { %1409 = vmatprep.subr.bf16.mxu1 %v1352_v36  ;;  %v2866_v24 = vpack.c.bf16 %v1336_v21, %v1335_v19  ;;  %v2869_v13 = vpack.c.bf16 %v1332_v20, %v1331_v17 }
 0x970   :  { %1410 = vmatpush1.bf16.msra.mxu1 %v1351_v39 }
 0x971   :  { %2861 = vmatprep.subr.msk.bf16.mxu1 %vm3618_vm7, %v2860_v18 }
 0x974   :  { %2864 = vmatpush1.bf16.msk.msra.mxu1 %vm3635_vm8, %v2863_v28 }
 0x975   :  { %2867 = vmatprep.subr.msk.bf16.mxu1 %vm3618_vm7, %v2866_v24 }
 0x978   :  { %2870 = vmatpush1.bf16.msk.msra.mxu1 %vm3635_vm8, %v2869_v13 }
 0x97a   :  { %v1370_v33 = vpop.permute.xlu0 %1369  ;;  %v1375_v29 = vpop.permute.xlu1 %1374 }
 0x97b   :  { %2871 = vmatmul.mubr.msk.bf16.vlgmr.msra.gmra.mrb[16].mxu1 %vm5018_vm10, %v3334_v22 }
 0x97c   :  { %1445 = vmatprep.mubr.bf16.mxu1 %v3398_v1 }
 0x97e   :  { %v1380_v61 = vpop.permute.xlu0 %1379  ;;  %v1385_v8 = vpop.permute.xlu1 %1384 }
 0x983   :  { %2872 = vmatmul.mubr.msk.bf16.gmra.mrb[20].mxu1 %vm5019_vm4, %v3335_v34 }
 0x984   :  { %2117 = vmatprep.mubr.bf16.mxu1 %v3398_v1 }
 0xa4e   :  { %v1437_v16 = vpop.f32.mrb[16].mxu1 }
 0xa4f   :  { %v1438_v27 = vadd.f32 %v1437_v16, %v1370_v33  ;;  %v1439_v58 = vpop.f32.mrb[17].mxu1 }
 0xa50   :  { %v1440_v25 = vadd.f32 %v1439_v58, %v1370_v33  ;;  %v1441_v26 = vpop.f32.mrb[18].mxu1 }
 0xa51   :  { %v1456_v48 = vadd.f32 %v1438_v27, %v4163_v30  ;;  %v1442_v56 = vadd.f32 %v1441_v26, %v1375_v29  ;;  %v1443_v59 = vpop.f32.mrb[19].mxu1 }
 0xa52   :  { %v1457_v45 = vadd.f32 %v1440_v25, %v4165_v49  ;;  %v1444_v40 = vadd.f32 %v1443_v59, %v1375_v29 }
 0xa53   :  { %vm1464_vm1 = vcmp.gt.f32.partialorder %v1456_v48, 0.0  ;;  %v1472_v47 = vmul.f32 0.2, %v1456_v48  ;;  %v1458_v60 = vadd.f32 %v1442_v56, %v4167_v54 }
 0xa54   :  { %vm1465_vm5 = vcmp.gt.f32.partialorder %v1457_v45, 0.0  ;;  %v1473_v31 = vmul.f32 0.2, %v1457_v45  ;;  %v1459_v43 = vadd.f32 %v1444_v40, %v4169_v32 }
 0xa55   :  { %vm1466_vm9 = vcmp.gt.f32.partialorder %v1458_v60, 0.0  ;;  %v1474_v23 = vmul.f32 0.2, %v1458_v60  ;;  %v4281_v44 = vsel %vm1464_vm1, %v1456_v48, %v1472_v47 }
 0xa56   :  { %vm1467_vm10 = vcmp.gt.f32.partialorder %v1459_v43, 0.0  ;;  %v1475_v30 = vmul.f32 0.2, %v1459_v43  ;;  %v1447_v62 = vpop.f32.mrb[20].mxu1  ;;  %v4283_v35 = vsel %vm1465_vm5, %v1457_v45, %v1473_v31  ;;  %v1504_v49 = vmul.f32 %v4281_v44, %v4281_v44 }
 0xa57   :  { %v1448_v2 = vadd.f32 %v1447_v62, %v1380_v61  ;;  %v1449_v9 = vpop.f32.mrb[21].mxu1  ;;  %v1488_v54 = vadd.f32 %v4283_v35, %v4281_v44  ;;  %v4289_v36 = vsel %vm1466_vm9, %v1458_v60, %v1474_v23  ;;  %v1505_v32 = vmul.f32 %v4283_v35, %v4283_v35 }
 0xa58   :  { %v1450_v11 = vadd.f32 %v1449_v9, %v1380_v61  ;;  %v1451_v12 = vpop.f32.mrb[22].mxu1  ;;  %v4293_v10 = vsel %vm1467_vm10, %v1459_v43, %v1475_v30  ;;  %v1506_v20 = vmul.f32 %v4289_v36, %v4289_v36  ;;  %vm5020_vm10 = vcmp.lt.s32.totalorder %v3561_v52, 3 }
 0xa59   :  { %v1460_v39 = vadd.f32 %v1448_v2, %v4181_v3  ;;  %v1452_v14 = vadd.f32 %v1451_v12, %v1385_v8  ;;  %v1453_v15 = vpop.f32.mrb[23].mxu1  ;;  %1489 = vadd.xlane.f32.xlu0 %v1488_v54  ;;  %v1491_v18 = vadd.f32 %v4293_v10, %v4289_v36  ;;  %v1512_v28 = vadd.f32 %v1505_v32, %v1504_v49 }
 0xa5a   :  { %v1461_v21 = vadd.f32 %v1450_v11, %v4183_v6  ;;  %v1454_v19 = vadd.f32 %v1453_v15, %v1385_v8  ;;  %v1507_v3 = vmul.f32 %v4293_v10, %v4293_v10 }
 0xa5b   :  { %vm1468_vm4 = vcmp.gt.f32.partialorder %v1460_v39, 0.0  ;;  %v1476_v17 = vmul.f32 0.2, %v1460_v39  ;;  %v1462_v24 = vadd.f32 %v1452_v14, %v4185_v7  ;;  %1492 = vadd.xlane.f32.xlu1 %v1491_v18 }
 0xa5c   :  { %vm1469_vm1 = vcmp.gt.f32.partialorder %v1461_v21, 0.0  ;;  %v1477_v13 = vmul.f32 0.2, %v1461_v21  ;;  %v1463_v22 = vadd.f32 %v1454_v19, %v4187_v37  ;;  %v1515_v27 = vadd.f32 %v1507_v3, %v1506_v20  ;;  %v2873_v3 = vld [vmem:[%s4968_s5 + $0x60] sm:$0xff] }
 0xa5d   :  { %vm1470_vm5 = vcmp.gt.f32.partialorder %v1462_v24, 0.0  ;;  %v1478_v34 = vmul.f32 0.2, %v1462_v24  ;;  %1513 = vadd.xlane.f32.xlu0 %v1512_v28  ;;  %v4305_v6 = vsel %vm1468_vm4, %v1460_v39, %v1476_v17  ;;  %vm5021_vm4 = vmmov %vm5020_vm10 }
 0xa5e   :  { %vm1471_vm9 = vcmp.gt.f32.partialorder %v1463_v22, 0.0  ;;  %v1479_v33 = vmul.f32 0.2, %v1463_v22  ;;  %v4307_v16 = vsel %vm1469_vm1, %v1461_v21, %v1477_v13  ;;  %v1508_v58 = vmul.f32 %v4305_v6, %v4305_v6  ;;  %vm5022_vm1 = vmmov %vm5021_vm4 }
 0xa5f   :  { %v1494_v7 = vadd.f32 %v4307_v16, %v4305_v6  ;;  %v1509_v29 = vmul.f32 %v4307_v16, %v4307_v16  ;;  %v4315_v37 = vsel %vm1470_vm5, %v1462_v24, %v1478_v34  ;;  %vm5023_vm5 = vmmov %vm5022_vm1 }
 0xa60   :  { %v4317_v25 = vsel %vm1471_vm9, %v1463_v22, %v1479_v33  ;;  %v1510_v56 = vmul.f32 %v4315_v37, %v4315_v37  ;;  %v2877_v33 = vld [vmem:[%s4969_s6 + $0x60] sm:$0xff]  ;;  %vm5024_vm9 = vmmov %vm5022_vm1 }
 0xa61   :  { %1495 = vadd.xlane.f32.xlu1 %v1494_v7  ;;  %1516 = vadd.xlane.f32.xlu0 %v1515_v27  ;;  %v1518_v26 = vadd.f32 %v1509_v29, %v1508_v58  ;;  %v1497_v48 = vadd.f32 %v4317_v25, %v4315_v37  ;;  %v1511_v59 = vmul.f32 %v4317_v25, %v4317_v25  ;;  %v2874_v7 = vld [vmem:[%s4968_s5 + $0x68] sm:$0xff] }
 0xa63   :  { %v1521_v45 = vadd.f32 %v1511_v59, %v1510_v56  ;;  %v2878_v56 = vld [vmem:[%s4969_s6 + $0x68] sm:$0xff] }
 0xa65   :  { %1519 = vadd.xlane.f32.xlu1 %v1518_v26  ;;  %1498 = vadd.xlane.f32.xlu0 %v1497_v48  ;;  %v2875_v48 = vld [vmem:[%s4968_s5 + $0x70] sm:$0xff] }
 0xa69   :  { %1522 = vadd.xlane.f32.xlu0 %v1521_v45 }
 0xae6   :  { %v1490_v40 = vpop.xlane.xlu0 %1489 }
 0xae7   :  { %v1500_v47 = vmul.f32 0.00390625, %v1490_v40 }
 0xae8   :  { %v1493_v60 = vpop.xlane.xlu1 %1492 }
 0xae9   :  { %v1528_v43 = vmul.f32 %v1500_v47, %v1500_v47  ;;  %v1501_v23 = vmul.f32 0.00390625, %v1493_v60 }
 0xaea   :  { %v1514_v31 = vpop.xlane.xlu0 %1513 }
 0xaeb   :  { %v1524_v61 = vmul.f32 0.00390625, %v1514_v31  ;;  %v1529_v2 = vmul.f32 %v1501_v23, %v1501_v23  ;;  %v2876_v31 = vld [vmem:[%s4968_s5 + $0x78] sm:$0xff] }
 0xaed   :  { %v1532_v30 = vsub.f32 %v1524_v61, %v1528_v43 }
 0xaee   :  { %v1496_v62 = vpop.xlane.xlu1 %1495  ;;  %v1517_v49 = vpop.xlane.xlu0 %1516 }
 0xaef   :  { %v1536_v9 = vadd.f32 1e-05, %v1532_v30  ;;  %v1502_v54 = vmul.f32 0.00390625, %v1496_v62  ;;  %v1525_v32 = vmul.f32 0.00390625, %v1517_v49 }
 0xaf1   :  { %3366 = vrsqrt.f32 %v1536_v9  ;;  %v1533_v8 = vsub.f32 %v1525_v32, %v1529_v2  ;;  %v1530_v39 = vmul.f32 %v1502_v54, %v1502_v54 }
 0xaf2   :  { %v1520_v11 = vpop.xlane.xlu1 %1519  ;;  %v1499_v12 = vpop.xlane.xlu0 %1498 }
 0xaf3   :  { %v1537_v14 = vadd.f32 1e-05, %v1533_v8  ;;  %v1526_v15 = vmul.f32 0.00390625, %v1520_v11  ;;  %v1503_v18 = vmul.f32 0.00390625, %v1499_v12 }
 0xaf5   :  { %3368 = vrsqrt.f32 %v1537_v14  ;;  %v1534_v21 = vsub.f32 %v1526_v15, %v1530_v39  ;;  %v1531_v20 = vmul.f32 %v1503_v18, %v1503_v18 }
 0xaf6   :  { %v1523_v19 = vpop.xlane.xlu0 %1522 }
 0xaf7   :  { %v1538_v28 = vadd.f32 1e-05, %v1534_v21  ;;  %v1527_v17 = vmul.f32 0.00390625, %v1523_v19 }
 0xaf9   :  { %3370 = vrsqrt.f32 %v1538_v28  ;;  %v1535_v24 = vsub.f32 %v1527_v17, %v1531_v20 }
 0xafb   :  { %v3367_v13 = vpop.eup %3366  ;;  %v1539_v22 = vadd.f32 1e-05, %v1535_v24 }
 0xafc   :  { %v1549_v34 = vmul.f32 %v3367_v13, %v2873_v3 }
 0xafd   :  { %3372 = vrsqrt.f32 %v1539_v22 }
 0xafe   :  { %1555 = vperm.xlu1 %3021, %v1549_v34   ;;  %v1586_v27 = vmul.f32 %v1549_v34, %v1500_v47  ;;  %v2879_v47 = vld [vmem:[%s4969_s6 + $0x70] sm:$0xff] }
 0xaff   :  { %v3369_v58 = vpop.eup %3368 }
 0xb00   :  { %v1590_v29 = vsub.f32 %v2877_v33, %v1586_v27  ;;  %v1550_v26 = vmul.f32 %v3369_v58, %v2874_v7  ;;  %v2887_v58 = vld [vmem:[%s4966_s4 + $0x90] sm:$0xff] }
 0xb02   :  { %1596 = vperm.xlu1 %3021, %v1590_v29   ;;  %1560 = vperm.xlu0 %3020, %v1550_v26   ;;  %v1587_v59 = vmul.f32 %v1550_v26, %v1501_v23  ;;  %v2880_v23 = vld [vmem:[%s4969_s6 + $0x78] sm:$0xff] }
 0xb03   :  { %v3371_v45 = vpop.eup %3370 }
 0xb04   :  { %v1551_v40 = vmul.f32 %v3371_v45, %v2875_v48  ;;  %v1591_v60 = vsub.f32 %v2878_v56, %v1587_v59 }
 0xb06   :  { %1565 = vperm.xlu0 %3020, %v1551_v40   ;;  %1601 = vperm.xlu1 %3021, %v1591_v60   ;;  %v1588_v43 = vmul.f32 %v1551_v40, %v1502_v54 }
 0xb07   :  { %v3373_v61 = vpop.eup %3372 }
 0xb08   :  { %v1592_v30 = vsub.f32 %v2879_v47, %v1588_v43  ;;  %v1552_v62 = vmul.f32 %v3373_v61, %v2876_v31 }
 0xb0a   :  { %1606 = vperm.xlu0 %3020, %v1592_v30   ;;  %1570 = vperm.xlu1 %3021, %v1552_v62   ;;  %v1589_v49 = vmul.f32 %v1552_v62, %v1503_v18 }
 0xb0c   :  { %v1593_v2 = vsub.f32 %v2880_v23, %v1589_v49 }
 0xb0e   :  { %1611 = vperm.xlu1 %3021, %v1593_v2  }
 0xb7d   :  { %v1556_v9 = vpop.permute.xlu1 %1555 }
 0xb7e   :  { %v1573_v11 = vmul.f32 %v1556_v9, %v4281_v44  ;;  %v1574_v12 = vmul.f32 %v1556_v9, %v4283_v35 }
 0xb81   :  { %v1597_v32 = vpop.permute.xlu1 %1596  ;;  %v1561_v8 = vpop.permute.xlu0 %1560 }
 0xb82   :  { %v1575_v54 = vmul.f32 %v1561_v8, %v4289_v36  ;;  %v1576_v39 = vmul.f32 %v1561_v8, %v4293_v10  ;;  %v4353_v21 = vadd.f32 %v1597_v32, %v1573_v11  ;;  %v4355_v19 = vadd.f32 %v1597_v32, %v1574_v12 }
 0xb85   :  { %v1602_v14 = vpop.permute.xlu1 %1601  ;;  %v1566_v15 = vpop.permute.xlu0 %1565 }
 0xb86   :  { %v4357_v18 = vadd.f32 %v1602_v14, %v1575_v54  ;;  %v4359_v28 = vadd.f32 %v1602_v14, %v1576_v39  ;;  %v1577_v10 = vmul.f32 %v1566_v15, %v4305_v6  ;;  %v1578_v17 = vmul.f32 %v1566_v15, %v4307_v16  ;;  %v2886_v16 = vld [vmem:[%s4966_s4 + $0x88] sm:$0xff] }
 0xb88   :  { %v3187_v20 = vpack.i.bf16 %v4359_v28, %v4355_v19  ;;  %v3182_v44 = vpack.i.bf16 %v4357_v18, %v4353_v21 }
 0xb89   :  { %v1571_v35 = vpop.permute.xlu1 %1570  ;;  %v1607_v36 = vpop.permute.xlu0 %1606 }
 0xb8a   :  { %3188 = vrot.lane.b32.xlu1 %v3187_v20, %s3401_s25  ;;  %3183 = vrot.lane.b32.xlu0 %v3182_v44, %s3401_s25  ;;  %v1579_v24 = vmul.f32 %v1571_v35, %v4315_v37  ;;  %v1580_v3 = vmul.f32 %v1571_v35, %v4317_v25  ;;  %v4371_v22 = vadd.f32 %v1607_v36, %v1577_v10  ;;  %v2885_v37 = vld [vmem:[%s4966_s4 + $0x80] sm:$0xff]  ;;  %v2888_v25 = vld [vmem:[%s4966_s4 + $0x98] sm:$0xff] }
 0xb8b   :  { %v4373_v34 = vadd.f32 %v1607_v36, %v1578_v17 }
 0xb8d   :  { %v1612_v13 = vpop.permute.xlu1 %1611 }
 0xb8e   :  { %v4375_v33 = vadd.f32 %v1612_v13, %v1579_v24  ;;  %v4377_v7 = vadd.f32 %v1612_v13, %v1580_v3  ;;  %v1690_v3 = vpack.c.bf16 %v4357_v18, %v4353_v21 }
 0xb90   :  { %v3197_v27 = vpack.i.bf16 %v4377_v7, %v4373_v34  ;;  %v3192_v6 = vpack.i.bf16 %v4375_v33, %v4371_v22 }
 0xb92   :  { %3198 = vrot.lane.b32.xlu1 %v3197_v27, %s3401_s25  ;;  %3193 = vrot.lane.b32.xlu0 %v3192_v6, %s3401_s25 }
 0xb96   :  { %3208 = vrot.lane.b32.xlu1 %v3187_v20, %s3402_s26  ;;  %3203 = vrot.lane.b32.xlu0 %v3182_v44, %s3402_s26  ;;  %v1691_v20 = vpack.c.bf16 %v4359_v28, %v4355_v19 }
 0xb9a   :  { %3218 = vrot.lane.b32.xlu1 %v3197_v27, %s3402_s26  ;;  %3213 = vrot.lane.b32.xlu0 %v3192_v6, %s3402_s26  ;;  %v1693_v6 = vpack.c.bf16 %v4377_v7, %v4373_v34 }
 0xb9e   :  { %1715 = vperm.xlu1 %3021, %v2886_v16   ;;  %1710 = vperm.xlu0 %3020, %v2885_v37  }
 0xba2   :  { %1725 = vperm.xlu1 %3021, %v2888_v25   ;;  %1720 = vperm.xlu0 %3020, %v2887_v58   ;;  %v1692_v25 = vpack.c.bf16 %v4375_v33, %v4371_v22 }
 0xbfc   :  { %v3189_v29 = vpop.permute.xlu1 %3188  ;;  %v3184_v56 = vpop.permute.xlu0 %3183 }
 0xbfd   :  { %v3191_v26 = vunpack.i.h.bf16 %v3189_v29  ;;  %v3190_v48 = vunpack.i.l.bf16 %v3189_v29  ;;  %v3186_v59 = vunpack.i.h.bf16 %v3184_v56  ;;  %v3185_v45 = vunpack.i.l.bf16 %v3184_v56 }
 0xbff   :  { %v1639_v40 = vsel %vm5020_vm10, %v3186_v59, %v3191_v26  ;;  %v1643_v60 = vsel %vm5021_vm4, %v3191_v26, %v3186_v59  ;;  %v1638_v47 = vsel %vm5022_vm1, %v3185_v45, %v3190_v48  ;;  %v1642_v31 = vsel %vm5023_vm5, %v3190_v48, %v3185_v45  ;;  %vm5025_vm10 = vmmov %vm5022_vm1 }
 0xc00   :  { %v2892_v43 = vpack.c.bf16 %v1639_v40, %v1638_v47  ;;  %v2895_v61 = vpack.c.bf16 %v1643_v60, %v1642_v31  ;;  %vm5026_vm4 = vmmov %vm5022_vm1  ;;  %vm5027_vm5 = vcmp.lt.s32.totalorder %v3561_v52, 125  ;;  %v3336_v31 = vld [vmem:[%s4967_s3 + $0x40] sm:$0xff]  }
 0xc02   :  { %2893 = vmatprep.subr.msk.bf16.mxu0 %vm3794_vm12, %v2892_v43  ;;  %v3337_v43 = vld [vmem:[%s4967_s3 + $0x48] sm:$0xff]  }
 0xc03   :  { %2896 = vmatpush1.bf16.msk.msra.mxu0 %vm3798_vm13, %v2895_v61 }
 0xc04   :  { %v3199_v30 = vpop.permute.xlu1 %3198  ;;  %v3194_v62 = vpop.permute.xlu0 %3193 }
 0xc05   :  { %v3201_v23 = vunpack.i.h.bf16 %v3199_v30  ;;  %v3200_v49 = vunpack.i.l.bf16 %v3199_v30  ;;  %v3196_v2 = vunpack.i.h.bf16 %v3194_v62  ;;  %v3195_v9 = vunpack.i.l.bf16 %v3194_v62 }
 0xc07   :  { %v1641_v32 = vsel %vm5024_vm9, %v3196_v2, %v3201_v23  ;;  %v1645_v8 = vsel %vm5025_vm10, %v3201_v23, %v3196_v2  ;;  %v1640_v11 = vsel %vm5026_vm4, %v3195_v9, %v3200_v49  ;;  %v1644_v12 = vsel %vm5022_vm1, %v3200_v49, %v3195_v9  ;;  %vm5028_vm9 = vmmov %vm5027_vm5 }
 0xc08   :  { %v2898_v54 = vpack.c.bf16 %v1641_v32, %v1640_v11  ;;  %v2901_v39 = vpack.c.bf16 %v1645_v8, %v1644_v12  ;;  %v3209_v14 = vpop.permute.xlu1 %3208  ;;  %v3204_v15 = vpop.permute.xlu0 %3203  ;;  %vm5031_vm10 = vmmov %vm5027_vm5 }
 0xc09   :  { %v3211_v44 = vunpack.i.h.bf16 %v3209_v14  ;;  %v3210_v35 = vunpack.i.l.bf16 %v3209_v14  ;;  %v3206_v36 = vunpack.i.h.bf16 %v3204_v15  ;;  %v3205_v10 = vunpack.i.l.bf16 %v3204_v15  ;;  %vm5032_vm4 = vmmov %vm5027_vm5 }
 0xc0a   :  { %2899 = vmatprep.subr.msk.bf16.mxu0 %vm3794_vm12, %v2898_v54  ;;  %vm5029_vm12 = vmmov %vm5027_vm5 }
 0xc0b   :  { %2902 = vmatpush1.bf16.msk.msra.mxu0 %vm3798_vm13, %v2901_v39  ;;  %v1675_v13 = vsel %vm5027_vm5, %v3211_v44, %v3206_v36  ;;  %v1674_v27 = vsel %vm5028_vm9, %v3210_v35, %v3205_v10  ;;  %v1671_v58 = vsel %vm5029_vm12, %v3206_v36, %v3211_v44  ;;  %vm5030_vm13 = vmmov %vm5027_vm5  ;;  %vm5035_vm9 = vcmask 785408  }
 0xc0c   :  { %v3219_v17 = vpop.permute.xlu1 %3218  ;;  %v3214_v24 = vpop.permute.xlu0 %3213  ;;  %1748 = vmatprep.subr.bf16.mxu0 %v1691_v20  ;;  %v1670_v29 = vsel %vm5030_vm13, %v3205_v10, %v3210_v35  ;;  %v2904_v26 = vpack.c.bf16 %v1675_v13, %v1674_v27  ;;  %vm5033_vm1 = vmmov %vm5032_vm4 }
 0xc0d   :  { %v3221_v51 = vunpack.i.h.bf16 %v3219_v17  ;;  %v3220_v16 = vunpack.i.l.bf16 %v3219_v17  ;;  %v3216_v37 = vunpack.i.h.bf16 %v3214_v24  ;;  %v3215_v57 = vunpack.i.l.bf16 %v3214_v24  ;;  %vm5034_vm5 = vmmov %vm5033_vm1 }
 0xc0e   :  { %v2907_v59 = vpack.c.bf16 %v1671_v58, %v1670_v29  ;;  %vm5036_vm12 = vmmov %vm5035_vm9 }
 0xc0f   :  { %1749 = vmatpush1.bf16.msra.mxu0 %v1690_v3  ;;  %v1677_v48 = vsel %vm5031_vm10, %v3221_v51, %v3216_v37  ;;  %v1676_v56 = vsel %vm5032_vm4, %v3220_v16, %v3215_v57  ;;  %v1673_v45 = vsel %vm5033_vm1, %v3216_v37, %v3221_v51  ;;  %v1672_v40 = vsel %vm5034_vm5, %v3215_v57, %v3220_v16 }
 0xc10   :  { %1750 = vmatprep.subr.bf16.mxu0 %v1693_v6  ;;  %v2910_v60 = vpack.c.bf16 %v1677_v48, %v1676_v56  ;;  %v2913_v47 = vpack.c.bf16 %v1673_v45, %v1672_v40 }
 0xc13   :  { %1751 = vmatpush1.bf16.msra.mxu0 %v1692_v25 }
 0xc14   :  { %2905 = vmatprep.subr.msk.bf16.mxu0 %vm3832_vm0, %v2904_v26 }
 0xc17   :  { %2908 = vmatpush1.bf16.msk.msra.mxu0 %vm3849_vm2, %v2907_v59 }
 0xc18   :  { %2911 = vmatprep.subr.msk.bf16.mxu0 %vm3832_vm0, %v2910_v60 }
 0xc1b   :  { %2914 = vmatpush1.bf16.msk.msra.mxu0 %vm3849_vm2, %v2913_v47 }
 0xc1d   :  { %v1711_v55 = vpop.permute.xlu0 %1710  ;;  %v1716_v23 = vpop.permute.xlu1 %1715 }
 0xc1e   :  { %2915 = vmatmul.mubr.msk.bf16.vlgmr.msra.gmra.mrb[16].mxu0 %vm5035_vm9, %v3336_v31 }
 0xc1f   :  { %1786 = vmatprep.mubr.bf16.mxu0 %v3398_v1 }
 0xc21   :  { %v1721_v44 = vpop.permute.xlu0 %1720  ;;  %v1726_v3 = vpop.permute.xlu1 %1725 }
 0xc26   :  { %2916 = vmatmul.mubr.msk.bf16.gmra.mrb[20].mxu0 %vm5036_vm12, %v3337_v43  ;;  %vm5037_vm12 = vcmp.lt.s32.totalorder %v3561_v52, 9 }
 0xc27   :  { %2458 = vmatprep.mubr.bf16.mxu0 %v3398_v1 }
 0xcf1   :  { %v1778_v61 = vpop.f32.mrb[16].mxu0 }
 0xcf2   :  { %v1779_v30 = vadd.f32 %v1778_v61, %v1711_v55  ;;  %v1780_v62 = vpop.f32.mrb[17].mxu0 }
 0xcf3   :  { %v1781_v49 = vadd.f32 %v1780_v62, %v1711_v55  ;;  %v1782_v38 = vpop.f32.mrb[18].mxu0 }
 0xcf4   :  { %v1797_v2 = vadd.f32 %v1779_v30, %v4353_v21  ;;  %v1783_v9 = vadd.f32 %v1782_v38, %v1716_v23  ;;  %v1784_v32 = vpop.f32.mrb[19].mxu0 }
 0xcf5   :  { %v1798_v8 = vadd.f32 %v1781_v49, %v4355_v19  ;;  %v1785_v11 = vadd.f32 %v1784_v32, %v1716_v23 }
 0xcf6   :  { %vm1805_vm0 = vcmp.gt.f32.partialorder %v1797_v2, 0.0  ;;  %v1813_v12 = vmul.f32 0.2, %v1797_v2  ;;  %v1799_v54 = vadd.f32 %v1783_v9, %v4357_v18 }
 0xcf7   :  { %vm1806_vm2 = vcmp.gt.f32.partialorder %v1798_v8, 0.0  ;;  %v1814_v39 = vmul.f32 0.2, %v1798_v8  ;;  %v1800_v14 = vadd.f32 %v1785_v11, %v4359_v28 }
 0xcf8   :  { %vm1807_vm13 = vcmp.gt.f32.partialorder %v1799_v54, 0.0  ;;  %v1815_v15 = vmul.f32 0.2, %v1799_v54  ;;  %v4471_v20 = vsel %vm1805_vm0, %v1797_v2, %v1813_v12  ;;  %vm5038_vm0 = vmmov %vm5037_vm12 }
 0xcf9   :  { %vm1808_vm10 = vcmp.gt.f32.partialorder %v1800_v14, 0.0  ;;  %v1816_v21 = vmul.f32 0.2, %v1800_v14  ;;  %v1788_v35 = vpop.f32.mrb[20].mxu0  ;;  %v4473_v36 = vsel %vm1806_vm2, %v1798_v8, %v1814_v39  ;;  %v1845_v19 = vmul.f32 %v4471_v20, %v4471_v20  ;;  %vm5039_vm2 = vmmov %vm5038_vm0 }
 0xcfa   :  { %v1789_v10 = vadd.f32 %v1788_v35, %v1721_v44  ;;  %v1790_v17 = vpop.f32.mrb[21].mxu0  ;;  %v1829_v18 = vadd.f32 %v4473_v36, %v4471_v20  ;;  %v4479_v24 = vsel %vm1807_vm13, %v1799_v54, %v1815_v15  ;;  %v1846_v28 = vmul.f32 %v4473_v36, %v4473_v36  ;;  %vm5040_vm13 = vmmov %vm5038_vm0 }
 0xcfb   :  { %v1791_v13 = vadd.f32 %v1790_v17, %v1721_v44  ;;  %v1792_v27 = vpop.f32.mrb[22].mxu0  ;;  %v4483_v6 = vsel %vm1808_vm10, %v1800_v14, %v1816_v21  ;;  %v1847_v26 = vmul.f32 %v4479_v24, %v4479_v24  ;;  %vm5041_vm10 = vmmov %vm5038_vm0 }
 0xcfc   :  { %v1801_v51 = vadd.f32 %v1789_v10, %v4371_v22  ;;  %v1793_v16 = vadd.f32 %v1792_v27, %v1726_v3  ;;  %v1794_v37 = vpop.f32.mrb[23].mxu0  ;;  %1830 = vadd.xlane.f32.xlu0 %v1829_v18  ;;  %v1832_v57 = vadd.f32 %v4483_v6, %v4479_v24  ;;  %v1853_v29 = vadd.f32 %v1846_v28, %v1845_v19 }
 0xcfd   :  { %v1802_v25 = vadd.f32 %v1791_v13, %v4373_v34  ;;  %v1795_v58 = vadd.f32 %v1794_v37, %v1726_v3  ;;  %v1848_v22 = vmul.f32 %v4483_v6, %v4483_v6 }
 0xcfe   :  { %vm1809_vm4 = vcmp.gt.f32.partialorder %v1801_v51, 0.0  ;;  %v1817_v48 = vmul.f32 0.2, %v1801_v51  ;;  %v1803_v56 = vadd.f32 %v1793_v16, %v4375_v33  ;;  %1833 = vadd.xlane.f32.xlu1 %v1832_v57 }
 0xcff   :  { %vm1810_vm1 = vcmp.gt.f32.partialorder %v1802_v25, 0.0  ;;  %v1818_v59 = vmul.f32 0.2, %v1802_v25  ;;  %v1804_v45 = vadd.f32 %v1795_v58, %v4377_v7  ;;  %v1856_v31 = vadd.f32 %v1848_v22, %v1847_v26  ;;  %v2921_v22 = vld [vmem:[%s4969_s6 + $0x80] sm:$0xff] }
 0xd00   :  { %vm1811_vm5 = vcmp.gt.f32.partialorder %v1803_v56, 0.0  ;;  %v1819_v40 = vmul.f32 0.2, %v1803_v56  ;;  %1854 = vadd.xlane.f32.xlu0 %v1853_v29  ;;  %v4495_v34 = vsel %vm1809_vm4, %v1801_v51, %v1817_v48  ;;  %v2917_v29 = vld [vmem:[%s4968_s5 + $0x80] sm:$0xff]  ;;  %vm5042_vm4 = vmmov %vm5038_vm0 }
 0xd01   :  { %vm1812_vm9 = vcmp.gt.f32.partialorder %v1804_v45, 0.0  ;;  %v1820_v60 = vmul.f32 0.2, %v1804_v45  ;;  %v4497_v47 = vsel %vm1810_vm1, %v1802_v25, %v1818_v59  ;;  %v1849_v43 = vmul.f32 %v4495_v34, %v4495_v34  ;;  %v2918_v59 = vld [vmem:[%s4968_s5 + $0x88] sm:$0xff]  ;;  %vm5043_vm1 = vmmov %vm5038_vm0 }
 0xd02   :  { %v1835_v33 = vadd.f32 %v4497_v47, %v4495_v34  ;;  %v1850_v55 = vmul.f32 %v4497_v47, %v4497_v47  ;;  %v4505_v7 = vsel %vm1811_vm5, %v1803_v56, %v1819_v40  ;;  %vm5044_vm5 = vmmov %vm5038_vm0 }
 0xd03   :  { %v4507_v61 = vsel %vm1812_vm9, %v1804_v45, %v1820_v60  ;;  %v1851_v23 = vmul.f32 %v4505_v7, %v4505_v7  ;;  %vm5045_vm9 = vcmp.lt.s32.totalorder %v3561_v52, 119 }
 0xd04   :  { %1836 = vadd.xlane.f32.xlu1 %v1835_v33  ;;  %1857 = vadd.xlane.f32.xlu0 %v1856_v31  ;;  %v1859_v30 = vadd.f32 %v1850_v55, %v1849_v43  ;;  %v1838_v62 = vadd.f32 %v4507_v61, %v4505_v7  ;;  %v1852_v49 = vmul.f32 %v4507_v61, %v4507_v61  ;;  %v2919_v31 = vld [vmem:[%s4968_s5 + $0x90] sm:$0xff]  ;;  %v2922_v43 = vld [vmem:[%s4969_s6 + $0x88] sm:$0xff] }
 0xd06   :  { %v1862_v38 = vadd.f32 %v1852_v49, %v1851_v23  ;;  %v2923_v49 = vld [vmem:[%s4969_s6 + $0x90] sm:$0xff] }
 0xd08   :  { %1860 = vadd.xlane.f32.xlu1 %v1859_v30  ;;  %1839 = vadd.xlane.f32.xlu0 %v1838_v62 }
 0xd0c   :  { %1863 = vadd.xlane.f32.xlu0 %v1862_v38  ;;  %v2920_v38 = vld [vmem:[%s4968_s5 + $0x98] sm:$0xff] }
 0xd89   :  { %v1831_v2 = vpop.xlane.xlu0 %1830 }
 0xd8a   :  { %v1841_v9 = vmul.f32 0.00390625, %v1831_v2 }
 0xd8b   :  { %v1834_v32 = vpop.xlane.xlu1 %1833 }
 0xd8c   :  { %v1869_v11 = vmul.f32 %v1841_v9, %v1841_v9  ;;  %v1842_v12 = vmul.f32 0.00390625, %v1834_v32 }
 0xd8d   :  { %v1855_v8 = vpop.xlane.xlu0 %1854 }
 0xd8e   :  { %v1865_v54 = vmul.f32 0.00390625, %v1855_v8  ;;  %v1870_v44 = vmul.f32 %v1842_v12, %v1842_v12 }
 0xd90   :  { %v1873_v39 = vsub.f32 %v1865_v54, %v1869_v11  ;;  %v2924_v11 = vld [vmem:[%s4969_s6 + $0x98] sm:$0xff] }
 0xd91   :  { %v1837_v14 = vpop.xlane.xlu1 %1836  ;;  %v1858_v15 = vpop.xlane.xlu0 %1857 }
 0xd92   :  { %v1877_v21 = vadd.f32 1e-05, %v1873_v39  ;;  %v1843_v35 = vmul.f32 0.00390625, %v1837_v14  ;;  %v1866_v19 = vmul.f32 0.00390625, %v1858_v15 }
 0xd94   :  { %3374 = vrsqrt.f32 %v1877_v21  ;;  %v1874_v10 = vsub.f32 %v1866_v19, %v1870_v44  ;;  %v1871_v28 = vmul.f32 %v1843_v35, %v1843_v35 }
 0xd95   :  { %v1861_v17 = vpop.xlane.xlu1 %1860  ;;  %v1840_v18 = vpop.xlane.xlu0 %1839 }
 0xd96   :  { %v1878_v3 = vadd.f32 1e-05, %v1874_v10  ;;  %v1867_v13 = vmul.f32 0.00390625, %v1861_v17  ;;  %v1844_v27 = vmul.f32 0.00390625, %v1840_v18 }
 0xd98   :  { %3376 = vrsqrt.f32 %v1878_v3  ;;  %v1875_v51 = vsub.f32 %v1867_v13, %v1871_v28  ;;  %v1872_v57 = vmul.f32 %v1844_v27, %v1844_v27 }
 0xd99   :  { %v1864_v16 = vpop.xlane.xlu0 %1863 }
 0xd9a   :  { %v1879_v37 = vadd.f32 1e-05, %v1875_v51  ;;  %v1868_v25 = vmul.f32 0.00390625, %v1864_v16 }
 0xd9c   :  { %3378 = vrsqrt.f32 %v1879_v37  ;;  %v1876_v58 = vsub.f32 %v1868_v25, %v1872_v57 }
 0xd9e   :  { %v3375_v26 = vpop.eup %3374  ;;  %v1880_v48 = vadd.f32 1e-05, %v1876_v58 }
 0xd9f   :  { %v1890_v56 = vmul.f32 %v3375_v26, %v2917_v29 }
 0xda0   :  { %3380 = vrsqrt.f32 %v1880_v48 }
 0xda1   :  { %1896 = vperm.xlu1 %3021, %v1890_v56   ;;  %v1927_v45 = vmul.f32 %v1890_v56, %v1841_v9  ;;  %v2931_v56 = vld [vmem:[%s4966_s4 + $0xb0] sm:$0xff] }
 0xda2   :  { %v3377_v40 = vpop.eup %3376 }
 0xda3   :  { %v1931_v60 = vsub.f32 %v2921_v22, %v1927_v45  ;;  %v1891_v33 = vmul.f32 %v3377_v40, %v2918_v59 }
 0xda5   :  { %1937 = vperm.xlu1 %3021, %v1931_v60   ;;  %1901 = vperm.xlu0 %3020, %v1891_v33   ;;  %v1928_v55 = vmul.f32 %v1891_v33, %v1842_v12 }
 0xda6   :  { %v3379_v30 = vpop.eup %3378 }
 0xda7   :  { %v1892_v62 = vmul.f32 %v3379_v30, %v2919_v31  ;;  %v1932_v23 = vsub.f32 %v2922_v43, %v1928_v55 }
 0xda9   :  { %1906 = vperm.xlu0 %3020, %v1892_v62   ;;  %1942 = vperm.xlu1 %3021, %v1932_v23   ;;  %v1929_v2 = vmul.f32 %v1892_v62, %v1843_v35 }
 0xdaa   :  { %v3381_v9 = vpop.eup %3380 }
 0xdab   :  { %v1933_v32 = vsub.f32 %v2923_v49, %v1929_v2  ;;  %v1893_v8 = vmul.f32 %v3381_v9, %v2920_v38 }
 0xdad   :  { %1947 = vperm.xlu0 %3020, %v1933_v32   ;;  %1911 = vperm.xlu1 %3021, %v1893_v8   ;;  %v1930_v12 = vmul.f32 %v1893_v8, %v1844_v27 }
 0xdaf   :  { %v1934_v54 = vsub.f32 %v2924_v11, %v1930_v12 }
 0xdb1   :  { %1952 = vperm.xlu1 %3021, %v1934_v54  }
 0xe20   :  { %v1897_v39 = vpop.permute.xlu1 %1896 }
 0xe21   :  { %v1914_v44 = vmul.f32 %v1897_v39, %v4471_v20  ;;  %v1915_v21 = vmul.f32 %v1897_v39, %v4473_v36 }
 0xe24   :  { %v1938_v14 = vpop.permute.xlu1 %1937  ;;  %v1902_v15 = vpop.permute.xlu0 %1901 }
 0xe25   :  { %v1916_v35 = vmul.f32 %v1902_v15, %v4479_v24  ;;  %v1917_v19 = vmul.f32 %v1902_v15, %v4483_v6  ;;  %v4543_v18 = vadd.f32 %v1938_v14, %v1914_v44  ;;  %v4545_v28 = vadd.f32 %v1938_v14, %v1915_v21 }
 0xe28   :  { %v1943_v10 = vpop.permute.xlu1 %1942  ;;  %v1907_v17 = vpop.permute.xlu0 %1906 }
 0xe29   :  { %v4547_v3 = vadd.f32 %v1943_v10, %v1916_v35  ;;  %v4549_v13 = vadd.f32 %v1943_v10, %v1917_v19  ;;  %v1918_v6 = vmul.f32 %v1907_v17, %v4495_v34  ;;  %v1919_v51 = vmul.f32 %v1907_v17, %v4497_v47  ;;  %v2930_v47 = vld [vmem:[%s4966_s4 + $0xa8] sm:$0xff] }
 0xe2b   :  { %v3227_v27 = vpack.i.bf16 %v4549_v13, %v4545_v28  ;;  %v3222_v20 = vpack.i.bf16 %v4547_v3, %v4543_v18  ;;  %v2032_v35 = vpack.c.bf16 %v4549_v13, %v4545_v28 }
 0xe2c   :  { %v1912_v36 = vpop.permute.xlu1 %1911  ;;  %v1948_v24 = vpop.permute.xlu0 %1947 }
 0xe2d   :  { %3228 = vrot.lane.b32.xlu1 %v3227_v27, %s3403_s10  ;;  %3223 = vrot.lane.b32.xlu0 %v3222_v20, %s3403_s10  ;;  %v1920_v16 = vmul.f32 %v1912_v36, %v4505_v7  ;;  %v1921_v37 = vmul.f32 %v1912_v36, %v4507_v61  ;;  %v4561_v25 = vadd.f32 %v1948_v24, %v1918_v6  ;;  %v2929_v7 = vld [vmem:[%s4966_s4 + $0xa0] sm:$0xff]  ;;  %v2932_v61 = vld [vmem:[%s4966_s4 + $0xb8] sm:$0xff] }
 0xe2e   :  { %v4563_v58 = vadd.f32 %v1948_v24, %v1919_v51  ;;  %v2031_v24 = vpack.c.bf16 %v4547_v3, %v4543_v18 }
 0xe30   :  { %v1953_v57 = vpop.permute.xlu1 %1952 }
 0xe31   :  { %v4565_v29 = vadd.f32 %v1953_v57, %v1920_v16  ;;  %v4567_v26 = vadd.f32 %v1953_v57, %v1921_v37 }
 0xe33   :  { %v3237_v48 = vpack.i.bf16 %v4567_v26, %v4563_v58  ;;  %v3232_v34 = vpack.i.bf16 %v4565_v29, %v4561_v25  ;;  %v2034_v16 = vpack.c.bf16 %v4567_v26, %v4563_v58 }
 0xe35   :  { %3238 = vrot.lane.b32.xlu1 %v3237_v48, %s3403_s10  ;;  %3233 = vrot.lane.b32.xlu0 %v3232_v34, %s3403_s10 }
 0xe39   :  { %3248 = vrot.lane.b32.xlu1 %v3227_v27, %s3404_s11  ;;  %3243 = vrot.lane.b32.xlu0 %v3222_v20, %s3404_s11 }
 0xe3d   :  { %3258 = vrot.lane.b32.xlu1 %v3237_v48, %s3404_s11  ;;  %3253 = vrot.lane.b32.xlu0 %v3232_v34, %s3404_s11  ;;  %v2033_v48 = vpack.c.bf16 %v4565_v29, %v4561_v25 }
 0xe41   :  { %2056 = vperm.xlu1 %3021, %v2930_v47   ;;  %2051 = vperm.xlu0 %3020, %v2929_v7  }
 0xe45   :  { %2066 = vperm.xlu1 %3021, %v2932_v61   ;;  %2061 = vperm.xlu0 %3020, %v2931_v56  }
 0xe9f   :  { %v3229_v22 = vpop.permute.xlu1 %3228  ;;  %v3224_v40 = vpop.permute.xlu0 %3223 }
 0xea0   :  { %v3231_v59 = vunpack.i.h.bf16 %v3229_v22  ;;  %v3230_v45 = vunpack.i.l.bf16 %v3229_v22  ;;  %v3226_v60 = vunpack.i.h.bf16 %v3224_v40  ;;  %v3225_v33 = vunpack.i.l.bf16 %v3224_v40 }
 0xea2   :  { %v1980_v31 = vsel %vm5037_vm12, %v3226_v60, %v3231_v59  ;;  %v1984_v43 = vsel %vm5038_vm0, %v3231_v59, %v3226_v60  ;;  %v1979_v55 = vsel %vm5039_vm2, %v3225_v33, %v3230_v45  ;;  %v1983_v30 = vsel %vm5040_vm13, %v3230_v45, %v3225_v33  ;;  %vm5046_vm12 = vmmov %vm5045_vm9  ;;  %v3338_v33 = vld [vmem:[%s4967_s3 + $0x50] sm:$0xff]  }
 0xea3   :  { %v2936_v62 = vpack.c.bf16 %v1980_v31, %v1979_v55  ;;  %v2939_v23 = vpack.c.bf16 %v1984_v43, %v1983_v30  ;;  %v3339_v31 = vld [vmem:[%s4967_s3 + $0x58] sm:$0xff]  }
 0xea5   :  { %2937 = vmatprep.subr.msk.bf16.mxu1 %vm4008_vm15, %v2936_v62 }
 0xea6   :  { %2940 = vmatpush1.bf16.msk.msra.mxu1 %vm4012_vm6, %v2939_v23 }
 0xea7   :  { %v3239_v49 = vpop.permute.xlu1 %3238  ;;  %v3234_v38 = vpop.permute.xlu0 %3233 }
 0xea8   :  { %v3241_v2 = vunpack.i.h.bf16 %v3239_v49  ;;  %v3240_v9 = vunpack.i.l.bf16 %v3239_v49  ;;  %v3236_v32 = vunpack.i.h.bf16 %v3234_v38  ;;  %v3235_v8 = vunpack.i.l.bf16 %v3234_v38 }
 0xeaa   :  { %v1982_v11 = vsel %vm5041_vm10, %v3236_v32, %v3241_v2  ;;  %v1986_v12 = vsel %vm5042_vm4, %v3241_v2, %v3236_v32  ;;  %v1981_v54 = vsel %vm5043_vm1, %v3235_v8, %v3240_v9  ;;  %v1985_v39 = vsel %vm5044_vm5, %v3240_v9, %v3235_v8 }
 0xeab   :  { %v2942_v14 = vpack.c.bf16 %v1982_v11, %v1981_v54  ;;  %v2945_v15 = vpack.c.bf16 %v1986_v12, %v1985_v39  ;;  %v3249_v44 = vpop.permute.xlu1 %3248  ;;  %v3244_v21 = vpop.permute.xlu0 %3243  ;;  %vm5053_vm4 = vcmask 785408  }
 0xeac   :  { %v3251_v19 = vunpack.i.h.bf16 %v3249_v44  ;;  %v3250_v10 = vunpack.i.l.bf16 %v3249_v44  ;;  %v3246_v17 = vunpack.i.h.bf16 %v3244_v21  ;;  %v3245_v27 = vunpack.i.l.bf16 %v3244_v21  ;;  %vm5054_vm1 = vmmov %vm5053_vm4 }
 0xead   :  { %2943 = vmatprep.subr.msk.bf16.mxu1 %vm4008_vm15, %v2942_v14 }
 0xeae   :  { %2946 = vmatpush1.bf16.msk.msra.mxu1 %vm4012_vm6, %v2945_v15  ;;  %v2016_v6 = vsel %vm5045_vm9, %v3251_v19, %v3246_v17  ;;  %v2015_v51 = vsel %vm5046_vm12, %v3250_v10, %v3245_v27  ;;  %vm5047_vm6 = vmmov %vm5045_vm9 }
 0xeaf   :  { %v3259_v20 = vpop.permute.xlu1 %3258  ;;  %v3254_v36 = vpop.permute.xlu0 %3253  ;;  %2089 = vmatprep.subr.bf16.mxu1 %v2032_v35  ;;  %v2012_v34 = vsel %vm5047_vm6, %v3246_v17, %v3251_v19  ;;  %vm5048_vm15 = vmmov %vm5047_vm6  ;;  %v2948_v7 = vpack.c.bf16 %v2016_v6, %v2015_v51 }
 0xeb0   :  { %v3261_v0 = vunpack.i.h.bf16 %v3259_v20  ;;  %v3260_v37 = vunpack.i.l.bf16 %v3259_v20  ;;  %v3256_v57 = vunpack.i.h.bf16 %v3254_v36  ;;  %v3255_v5 = vunpack.i.l.bf16 %v3254_v36  ;;  %vm5049_vm0 = vmmov %vm5047_vm6 }
 0xeb1   :  { %v2011_v47 = vsel %vm5048_vm15, %v3245_v27, %v3250_v10  ;;  %vm5050_vm2 = vmmov %vm5049_vm0 }
 0xeb2   :  { %2090 = vmatpush1.bf16.msra.mxu1 %v2031_v24  ;;  %v2018_v61 = vsel %vm5049_vm0, %v3261_v0, %v3256_v57  ;;  %v2017_v56 = vsel %vm5050_vm2, %v3260_v37, %v3255_v5  ;;  %v2951_v22 = vpack.c.bf16 %v2012_v34, %v2011_v47  ;;  %vm5051_vm13 = vmmov %vm5049_vm0  ;;  %vm5055_vm2 = vcmp.lt.s32.totalorder %v3561_v52, 1 }
 0xeb3   :  { %2091 = vmatprep.subr.bf16.mxu1 %v2034_v16  ;;  %v2014_v59 = vsel %vm5051_vm13, %v3256_v57, %v3261_v0  ;;  %vm5052_vm10 = vmmov %vm5049_vm0  ;;  %v2954_v40 = vpack.c.bf16 %v2018_v61, %v2017_v56 }
 0xeb4   :  { %v2013_v45 = vsel %vm5052_vm10, %v3255_v5, %v3260_v37  ;;  %vm5056_vm13 = vmmov %vm5055_vm2 }
 0xeb5   :  { %v2957_v60 = vpack.c.bf16 %v2014_v59, %v2013_v45  ;;  %vm5057_vm10 = vmmov %vm5055_vm2 }
 0xeb6   :  { %2092 = vmatpush1.bf16.msra.mxu1 %v2033_v48 }
 0xeb7   :  { %2949 = vmatprep.subr.msk.bf16.mxu1 %vm4046_vm14, %v2948_v7 }
 0xeba   :  { %2952 = vmatpush1.bf16.msk.msra.mxu1 %vm4063_vm11, %v2951_v22 }
 0xebb   :  { %2955 = vmatprep.subr.msk.bf16.mxu1 %vm4046_vm14, %v2954_v40 }
 0xebe   :  { %2958 = vmatpush1.bf16.msk.msra.mxu1 %vm4063_vm11, %v2957_v60 }
 0xec0   :  { %v2052_v46 = vpop.permute.xlu0 %2051  ;;  %v2057_v62 = vpop.permute.xlu1 %2056 }
 0xec1   :  { %2959 = vmatmul.mubr.msk.bf16.vlgmr.msra.gmra.mrb[24].mxu1 %vm5053_vm4, %v3338_v33  ;;  %vm5058_vm4 = vmmov %vm5055_vm2 }
 0xec2   :  { %2127 = vmatprep.mubr.bf16.mxu1 %v3398_v1 }
 0xec4   :  { %v2062_v15 = vpop.permute.xlu0 %2061  ;;  %v2067_v17 = vpop.permute.xlu1 %2066 }
 0xec9   :  { %2960 = vmatmul.mubr.msk.bf16.gmra.mrb[28].mxu1 %vm5054_vm1, %v3339_v31  ;;  %vm5059_vm1 = vnez %v4983_v4 }
 0xf94   :  { %v2119_v43 = vpop.f32.mrb[24].mxu1 }
 0xf95   :  { %v2120_v55 = vadd.f32 %v2119_v43, %v2052_v46  ;;  %v2121_v30 = vpop.f32.mrb[25].mxu1 }
 0xf96   :  { %v2122_v23 = vadd.f32 %v2121_v30, %v2052_v46  ;;  %v2123_v49 = vpop.f32.mrb[26].mxu1 }
 0xf97   :  { %v2138_v41 = vadd.f32 %v2120_v55, %v4543_v18  ;;  %v2124_v38 = vadd.f32 %v2123_v49, %v2057_v62  ;;  %v2125_v2 = vpop.f32.mrb[27].mxu1 }
 0xf98   :  { %v2139_v9 = vadd.f32 %v2122_v23, %v4545_v28  ;;  %v2126_v32 = vadd.f32 %v2125_v2, %v2057_v62 }
 0xf99   :  { %vm2146_vm14 = vcmp.gt.f32.partialorder %v2138_v41, 0.0  ;;  %v2154_v8 = vmul.f32 0.2, %v2138_v41  ;;  %v2140_v11 = vadd.f32 %v2124_v38, %v4547_v3 }
 0xf9a   :  { %vm2147_vm11 = vcmp.gt.f32.partialorder %v2139_v9, 0.0  ;;  %v2155_v12 = vmul.f32 0.2, %v2139_v9  ;;  %v2141_v54 = vadd.f32 %v2126_v32, %v4549_v13 }
 0xf9b   :  { %vm2148_vm5 = vcmp.gt.f32.partialorder %v2140_v11, 0.0  ;;  %v2156_v39 = vmul.f32 0.2, %v2140_v11  ;;  %v4660_v14 = vsel %vm2146_vm14, %v2138_v41, %v2154_v8  ;;  %vm5060_vm14 = vmmov %vm5055_vm2 }
 0xf9c   :  { %vm2149_vm9 = vcmp.gt.f32.partialorder %v2141_v54, 0.0  ;;  %v2157_v18 = vmul.f32 0.2, %v2141_v54  ;;  %v2129_v44 = vpop.f32.mrb[28].mxu1  ;;  %v4662_v21 = vsel %vm2147_vm11, %v2139_v9, %v2155_v12  ;;  %v2186_v28 = vmul.f32 %v4660_v14, %v4660_v14  ;;  %vm5061_vm11 = vmmov %vm5055_vm2 }
 0xf9d   :  { %v2130_v35 = vadd.f32 %v2129_v44, %v2062_v15  ;;  %v2131_v19 = vpop.f32.mrb[29].mxu1  ;;  %v2170_v3 = vadd.f32 %v4662_v21, %v4660_v14  ;;  %v4668_v10 = vsel %vm2148_vm5, %v2140_v11, %v2156_v39  ;;  %v2187_v13 = vmul.f32 %v4662_v21, %v4662_v21  ;;  %vm5062_vm5 = vmmov %vm5055_vm2 }
 0xf9e   :  { %v2132_v27 = vadd.f32 %v2131_v19, %v2062_v15  ;;  %v2133_v20 = vpop.f32.mrb[30].mxu1  ;;  %v4672_v36 = vsel %vm2149_vm9, %v2141_v54, %v2157_v18  ;;  %v2188_v5 = vmul.f32 %v4668_v10, %v4668_v10  ;;  %vm5063_vm9 = vmmov %vm5055_vm2 }
 0xf9f   :  { %v2142_v24 = vadd.f32 %v2130_v35, %v4561_v25  ;;  %v2134_v6 = vadd.f32 %v2133_v20, %v2067_v17  ;;  %v2135_v51 = vpop.f32.mrb[31].mxu1  ;;  %2171 = vadd.xlane.f32.xlu0 %v2170_v3  ;;  %v2173_v16 = vadd.f32 %v4672_v36, %v4668_v10  ;;  %v2194_v57 = vadd.f32 %v2187_v13, %v2186_v28 }
 0xfa0   :  { %v2143_v0 = vadd.f32 %v2132_v27, %v4563_v58  ;;  %v2136_v37 = vadd.f32 %v2135_v51, %v2067_v17  ;;  %v2189_v25 = vmul.f32 %v4672_v36, %v4672_v36  ;;  %v2961_v51 = vld [vmem:[%s4968_s5 + $0xa0] sm:$0xff] }
 0xfa1   :  { %vm2150_vm12 = vcmp.gt.f32.partialorder %v2142_v24, 0.0  ;;  %v2158_v48 = vmul.f32 0.2, %v2142_v24  ;;  %v2144_v34 = vadd.f32 %v2134_v6, %v4565_v29  ;;  %2174 = vadd.xlane.f32.xlu1 %v2173_v16 }
 0xfa2   :  { %vm2151_vm6 = vcmp.gt.f32.partialorder %v2143_v0, 0.0  ;;  %v2159_v47 = vmul.f32 0.2, %v2143_v0  ;;  %v2145_v7 = vadd.f32 %v2136_v37, %v4567_v26  ;;  %v2197_v59 = vadd.f32 %v2189_v25, %v2188_v5  ;;  %v2962_v5 = vld [vmem:[%s4968_s5 + $0xa8] sm:$0xff] }
 0xfa3   :  { %vm2152_vm15 = vcmp.gt.f32.partialorder %v2144_v34, 0.0  ;;  %v2160_v61 = vmul.f32 0.2, %v2144_v34  ;;  %2195 = vadd.xlane.f32.xlu0 %v2194_v57  ;;  %v4684_v58 = vsel %vm2150_vm12, %v2142_v24, %v2158_v48  ;;  %v2965_v57 = vld [vmem:[%s4969_s6 + $0xa0] sm:$0xff]  ;;  %vm5064_vm12 = vcmp.lt.s32.totalorder %v3561_v52, 127 }
 0xfa4   :  { %vm2153_vm0 = vcmp.gt.f32.partialorder %v2145_v7, 0.0  ;;  %v2161_v56 = vmul.f32 0.2, %v2145_v7  ;;  %v4686_v22 = vsel %vm2151_vm6, %v2143_v0, %v2159_v47  ;;  %v2190_v45 = vmul.f32 %v4684_v58, %v4684_v58  ;;  %vm5065_vm6 = vmmov %vm5064_vm12 }
 0xfa5   :  { %v2176_v29 = vadd.f32 %v4686_v22, %v4684_v58  ;;  %v2191_v40 = vmul.f32 %v4686_v22, %v4686_v22  ;;  %v4694_v26 = vsel %vm2152_vm15, %v2144_v34, %v2160_v61  ;;  %v2966_v61 = vld [vmem:[%s4969_s6 + $0xa8] sm:$0xff] }
 0xfa6   :  { %v4696_v60 = vsel %vm2153_vm0, %v2145_v7, %v2161_v56  ;;  %v2192_v46 = vmul.f32 %v4694_v26, %v4694_v26  ;;  %v2963_v7 = vld [vmem:[%s4968_s5 + $0xb0] sm:$0xff] }
 0xfa7   :  { %2177 = vadd.xlane.f32.xlu1 %v2176_v29  ;;  %2198 = vadd.xlane.f32.xlu0 %v2197_v59  ;;  %v2200_v33 = vadd.f32 %v2191_v40, %v2190_v45  ;;  %v2179_v31 = vadd.f32 %v4696_v60, %v4694_v26  ;;  %v2193_v43 = vmul.f32 %v4696_v60, %v4696_v60  ;;  %v2967_v40 = vld [vmem:[%s4969_s6 + $0xb0] sm:$0xff] }
 0xfa9   :  { %v2203_v55 = vadd.f32 %v2193_v43, %v2192_v46 }
 0xfab   :  { %2201 = vadd.xlane.f32.xlu1 %v2200_v33  ;;  %2180 = vadd.xlane.f32.xlu0 %v2179_v31  ;;  %v2964_v33 = vld [vmem:[%s4968_s5 + $0xb8] sm:$0xff] }
 0xfaf   :  { %2204 = vadd.xlane.f32.xlu0 %v2203_v55 }
0x102c   :  { %v2172_v30 = vpop.xlane.xlu0 %2171 }
0x102d   :  { %v2182_v62 = vmul.f32 0.00390625, %v2172_v30  ;;  %v2968_v30 = vld [vmem:[%s4969_s6 + $0xb8] sm:$0xff] }
0x102e   :  { %v2175_v23 = vpop.xlane.xlu1 %2174 }
0x102f   :  { %v2210_v41 = vmul.f32 %v2182_v62, %v2182_v62  ;;  %v2183_v38 = vmul.f32 0.00390625, %v2175_v23 }
0x1030   :  { %v2196_v49 = vpop.xlane.xlu0 %2195 }
0x1031   :  { %v2206_v2 = vmul.f32 0.00390625, %v2196_v49  ;;  %v2211_v11 = vmul.f32 %v2183_v38, %v2183_v38 }
0x1033   :  { %v2214_v9 = vsub.f32 %v2206_v2, %v2210_v41 }
0x1034   :  { %v2178_v32 = vpop.xlane.xlu1 %2177  ;;  %v2199_v8 = vpop.xlane.xlu0 %2198 }
0x1035   :  { %v2218_v12 = vadd.f32 1e-05, %v2214_v9  ;;  %v2184_v54 = vmul.f32 0.00390625, %v2178_v32  ;;  %v2207_v39 = vmul.f32 0.00390625, %v2199_v8 }
0x1037   :  { %3382 = vrsqrt.f32 %v2218_v12  ;;  %v2215_v15 = vsub.f32 %v2207_v39, %v2211_v11  ;;  %v2212_v28 = vmul.f32 %v2184_v54, %v2184_v54 }
0x1038   :  { %v2202_v18 = vpop.xlane.xlu1 %2201  ;;  %v2181_v44 = vpop.xlane.xlu0 %2180 }
0x1039   :  { %v2219_v35 = vadd.f32 1e-05, %v2215_v15  ;;  %v2208_v19 = vmul.f32 0.00390625, %v2202_v18  ;;  %v2185_v3 = vmul.f32 0.00390625, %v2181_v44 }
0x103b   :  { %3384 = vrsqrt.f32 %v2219_v35  ;;  %v2216_v13 = vsub.f32 %v2208_v19, %v2212_v28  ;;  %v2213_v20 = vmul.f32 %v2185_v3, %v2185_v3 }
0x103c   :  { %v2205_v17 = vpop.xlane.xlu0 %2204 }
0x103d   :  { %v2220_v27 = vadd.f32 1e-05, %v2216_v13  ;;  %v2209_v24 = vmul.f32 0.00390625, %v2205_v17 }
0x103f   :  { %3386 = vrsqrt.f32 %v2220_v27  ;;  %v2217_v6 = vsub.f32 %v2209_v24, %v2213_v20 }
0x1041   :  { %v3383_v16 = vpop.eup %3382  ;;  %v2221_v0 = vadd.f32 1e-05, %v2217_v6  ;;  %v2975_v6 = vld [vmem:[%s4966_s4 + $0xd0] sm:$0xff] }
0x1042   :  { %v2231_v37 = vmul.f32 %v3383_v16, %v2961_v51 }
0x1043   :  { %3388 = vrsqrt.f32 %v2221_v0 }
0x1044   :  { %2237 = vperm.xlu1 %3021, %v2231_v37   ;;  %v2268_v48 = vmul.f32 %v2231_v37, %v2182_v62 }
0x1045   :  { %v3385_v34 = vpop.eup %3384 }
0x1046   :  { %v2272_v25 = vsub.f32 %v2965_v57, %v2268_v48  ;;  %v2232_v47 = vmul.f32 %v3385_v34, %v2962_v5 }
0x1048   :  { %2278 = vperm.xlu1 %3021, %v2272_v25   ;;  %2242 = vperm.xlu0 %3020, %v2232_v47   ;;  %v2269_v56 = vmul.f32 %v2232_v47, %v2183_v38 }
0x1049   :  { %v3387_v29 = vpop.eup %3386 }
0x104a   :  { %v2233_v59 = vmul.f32 %v3387_v29, %v2963_v7  ;;  %v2273_v45 = vsub.f32 %v2966_v61, %v2269_v56 }
0x104c   :  { %2247 = vperm.xlu0 %3020, %v2233_v59   ;;  %2283 = vperm.xlu1 %3021, %v2273_v45   ;;  %v2270_v31 = vmul.f32 %v2233_v59, %v2184_v54 }
0x104d   :  { %v3389_v46 = vpop.eup %3388 }
0x104e   :  { %v2274_v43 = vsub.f32 %v2967_v40, %v2270_v31  ;;  %v2234_v55 = vmul.f32 %v3389_v46, %v2964_v33 }
0x1050   :  { %2288 = vperm.xlu0 %3020, %v2274_v43   ;;  %2252 = vperm.xlu1 %3021, %v2234_v55   ;;  %v2271_v62 = vmul.f32 %v2234_v55, %v2185_v3 }
0x1052   :  { %v2275_v23 = vsub.f32 %v2968_v30, %v2271_v62 }
0x1054   :  { %2293 = vperm.xlu1 %3021, %v2275_v23  }
0x10c3   :  { %v2238_v49 = vpop.permute.xlu1 %2237 }
0x10c4   :  { %v2255_v2 = vmul.f32 %v2238_v49, %v4660_v14  ;;  %v2256_v9 = vmul.f32 %v2238_v49, %v4662_v21 }
0x10c7   :  { %v2279_v41 = vpop.permute.xlu1 %2278  ;;  %v2243_v38 = vpop.permute.xlu0 %2242 }
0x10c8   :  { %v2257_v32 = vmul.f32 %v2243_v38, %v4668_v10  ;;  %v2258_v8 = vmul.f32 %v2243_v38, %v4672_v36  ;;  %v4732_v54 = vadd.f32 %v2279_v41, %v2255_v2  ;;  %v4734_v39 = vadd.f32 %v2279_v41, %v2256_v9 }
0x10cb   :  { %v2284_v11 = vpop.permute.xlu1 %2283  ;;  %v2248_v12 = vpop.permute.xlu0 %2247 }
0x10cc   :  { %v4736_v15 = vadd.f32 %v2284_v11, %v2257_v32  ;;  %v4738_v18 = vadd.f32 %v2284_v11, %v2258_v8  ;;  %v2259_v36 = vmul.f32 %v2248_v12, %v4684_v58  ;;  %v2260_v28 = vmul.f32 %v2248_v12, %v4686_v22  ;;  %v2974_v22 = vld [vmem:[%s4966_s4 + $0xc8] sm:$0xff] }
0x10ce   :  { %v3267_v44 = vpack.i.bf16 %v4738_v18, %v4734_v39  ;;  %v3262_v14 = vpack.i.bf16 %v4736_v15, %v4732_v54  ;;  %v2373_v41 = vpack.c.bf16 %v4738_v18, %v4734_v39  ;;  %v2372_v12 = vpack.c.bf16 %v4736_v15, %v4732_v54 }
0x10cf   :  { %v2253_v21 = vpop.permute.xlu1 %2252  ;;  %v2289_v10 = vpop.permute.xlu0 %2288 }
0x10d0   :  { %3268 = vrot.lane.b32.xlu1 %v3267_v44, %s3399_s0  ;;  %3263 = vrot.lane.b32.xlu0 %v3262_v14, %s3399_s0  ;;  %v2261_v35 = vmul.f32 %v2253_v21, %v4694_v26  ;;  %v2262_v19 = vmul.f32 %v2253_v21, %v4696_v60  ;;  %v4750_v13 = vadd.f32 %v2289_v10, %v2259_v36  ;;  %v2973_v26 = vld [vmem:[%s4966_s4 + $0xc0] sm:$0xff]  ;;  %v2976_v60 = vld [vmem:[%s4966_s4 + $0xd8] sm:$0xff] }
0x10d1   :  { %v4752_v17 = vadd.f32 %v2289_v10, %v2260_v28 }
0x10d3   :  { %v2294_v3 = vpop.permute.xlu1 %2293 }
0x10d4   :  { %v4754_v27 = vadd.f32 %v2294_v3, %v2261_v35  ;;  %v4756_v20 = vadd.f32 %v2294_v3, %v2262_v19 }
0x10d6   :  { %v3277_v24 = vpack.i.bf16 %v4756_v20, %v4752_v17  ;;  %v3272_v58 = vpack.i.bf16 %v4754_v27, %v4750_v13  ;;  %v2375_v21 = vpack.c.bf16 %v4756_v20, %v4752_v17  ;;  %v2374_v28 = vpack.c.bf16 %v4754_v27, %v4750_v13 }
0x10d8   :  { %3278 = vrot.lane.b32.xlu1 %v3277_v24, %s3399_s0  ;;  %3273 = vrot.lane.b32.xlu0 %v3272_v58, %s3399_s0 }
0x10dc   :  { %3288 = vrot.lane.b32.xlu1 %v3267_v44, %s3400_s1  ;;  %3283 = vrot.lane.b32.xlu0 %v3262_v14, %s3400_s1 }
0x10e0   :  { %3298 = vrot.lane.b32.xlu1 %v3277_v24, %s3400_s1  ;;  %3293 = vrot.lane.b32.xlu0 %v3272_v58, %s3400_s1 }
0x10e4   :  { %2397 = vperm.xlu1 %3021, %v2974_v22   ;;  %2392 = vperm.xlu0 %3020, %v2973_v26  }
0x10e8   :  { %2407 = vperm.xlu1 %3021, %v2976_v60   ;;  %2402 = vperm.xlu0 %3020, %v2975_v6  }
0x1142   :  { %v3269_v51 = vpop.permute.xlu1 %3268  ;;  %v3264_v37 = vpop.permute.xlu0 %3263 }
0x1143   :  { %v3271_v16 = vunpack.i.h.bf16 %v3269_v51  ;;  %v3270_v0 = vunpack.i.l.bf16 %v3269_v51  ;;  %v3266_v57 = vunpack.i.h.bf16 %v3264_v37  ;;  %v3265_v5 = vunpack.i.l.bf16 %v3264_v37 }
0x1145   :  { %v2321_v48 = vsel %vm5055_vm2, %v3266_v57, %v3271_v16  ;;  %v2325_v34 = vsel %vm5056_vm13, %v3271_v16, %v3266_v57  ;;  %v2320_v25 = vsel %vm5057_vm10, %v3265_v5, %v3270_v0  ;;  %v2324_v47 = vsel %vm5058_vm4, %v3270_v0, %v3265_v5  ;;  %v3340_v16 = vld [vmem:[%s4967_s3 + $0x60] sm:$0xff]   ;;  %v3341_v0 = vld [vmem:[%s4967_s3 + $0x68] sm:$0xff]  }
0x1146   :  { %v2980_v7 = vpack.c.bf16 %v2321_v48, %v2320_v25  ;;  %v2983_v61 = vpack.c.bf16 %v2325_v34, %v2324_v47  ;;  %vm5072_vm4 = vcmask 785408  }
0x1148   :  { %2981 = vmatprep.subr.msk.bf16.mxu0 %vm3576_vm3, %v2980_v7 }
0x1149   :  { %2984 = vmatpush1.bf16.msk.msra.mxu0 %vm5059_vm1, %v2983_v61 }
0x114a   :  { %v3279_v56 = vpop.permute.xlu1 %3278  ;;  %v3274_v29 = vpop.permute.xlu0 %3273 }
0x114b   :  { %v3281_v59 = vunpack.i.h.bf16 %v3279_v56  ;;  %v3280_v45 = vunpack.i.l.bf16 %v3279_v56  ;;  %v3276_v40 = vunpack.i.h.bf16 %v3274_v29  ;;  %v3275_v33 = vunpack.i.l.bf16 %v3274_v29 }
0x114d   :  { %v2323_v31 = vsel %vm5060_vm14, %v3276_v40, %v3281_v59  ;;  %v2327_v46 = vsel %vm5061_vm11, %v3281_v59, %v3276_v40  ;;  %v2322_v43 = vsel %vm5062_vm5, %v3275_v33, %v3280_v45  ;;  %v2326_v55 = vsel %vm5063_vm9, %v3280_v45, %v3275_v33 }
0x114e   :  { %v2986_v30 = vpack.c.bf16 %v2323_v31, %v2322_v43  ;;  %v2989_v62 = vpack.c.bf16 %v2327_v46, %v2326_v55  ;;  %v3289_v23 = vpop.permute.xlu1 %3288  ;;  %v3284_v49 = vpop.permute.xlu0 %3283 }
0x114f   :  { %v3291_v38 = vunpack.i.h.bf16 %v3289_v23  ;;  %v3290_v2 = vunpack.i.l.bf16 %v3289_v23  ;;  %v3286_v9 = vunpack.i.h.bf16 %v3284_v49  ;;  %v3285_v32 = vunpack.i.l.bf16 %v3284_v49 }
0x1150   :  { %2987 = vmatprep.subr.msk.bf16.mxu0 %vm3576_vm3, %v2986_v30  ;;  %vm5066_vm3 = vmmov %vm5065_vm6 }
0x1151   :  { %2990 = vmatpush1.bf16.msk.msra.mxu0 %vm5059_vm1, %v2989_v62  ;;  %v2357_v44 = vsel %vm5064_vm12, %v3291_v38, %v3286_v9  ;;  %v2356_v14 = vsel %vm5065_vm6, %v3290_v2, %v3285_v32  ;;  %v2353_v35 = vsel %vm5066_vm3, %v3286_v9, %v3291_v38  ;;  %vm5067_vm15 = vmmov %vm5066_vm3 }
0x1152   :  { %v3299_v8 = vpop.permute.xlu1 %3298  ;;  %v3294_v11 = vpop.permute.xlu0 %3293  ;;  %2430 = vmatprep.subr.bf16.mxu0 %v2373_v41  ;;  %v2352_v19 = vsel %vm5067_vm15, %v3285_v32, %v3290_v2  ;;  %v2992_v3 = vpack.c.bf16 %v2357_v44, %v2356_v14  ;;  %vm5068_vm0 = vmmov %vm5066_vm3  ;;  %vm2668_vm3 = vcmp.eq.s32.totalorder %v3564_v53, 255  ;;  %vm2645_vm15 = vcmp.eq.s32.totalorder %v3561_v52, 127 }
0x1153   :  { %v3301_v63 = vunpack.i.h.bf16 %v3299_v8  ;;  %v3300_v10 = vunpack.i.l.bf16 %v3299_v8  ;;  %v3296_v36 = vunpack.i.h.bf16 %v3294_v11  ;;  %v3295_v4 = vunpack.i.l.bf16 %v3294_v11  ;;  %vm5069_vm2 = vmmov %vm5068_vm0 }
0x1154   :  { %v2995_v22 = vpack.c.bf16 %v2353_v35, %v2352_v19  ;;  %vm5070_vm13 = vmmov %vm5068_vm0 }
0x1155   :  { %2431 = vmatpush1.bf16.msra.mxu0 %v2372_v12  ;;  %v2359_v24 = vsel %vm5068_vm0, %v3301_v63, %v3296_v36  ;;  %v2358_v58 = vsel %vm5069_vm2, %v3300_v10, %v3295_v4  ;;  %v2355_v26 = vsel %vm5070_vm13, %v3296_v36, %v3301_v63  ;;  %vm5071_vm10 = vmmov %vm5068_vm0  ;;  %vm2689_vm0 = vcmask 7168  }
0x1156   :  { %2432 = vmatprep.subr.bf16.mxu0 %v2375_v21  ;;  %v2354_v60 = vsel %vm5071_vm10, %v3295_v4, %v3300_v10  ;;  %v2998_v6 = vpack.c.bf16 %v2359_v24, %v2358_v58  ;;  %vm5073_vm1 = vmmov %vm5072_vm4  ;;  %vm2694_vm2 = vcmask 15360  }
0x1157   :  { %v3001_v51 = vpack.c.bf16 %v2355_v26, %v2354_v60 }
0x1159   :  { %2433 = vmatpush1.bf16.msra.mxu0 %v2374_v28 }
0x115a   :  { %2993 = vmatprep.subr.msk.bf16.mxu0 %vm3618_vm7, %v2992_v3 }
0x115d   :  { %2996 = vmatpush1.bf16.msk.msra.mxu0 %vm3635_vm8, %v2995_v22 }
0x115e   :  { %2999 = vmatprep.subr.msk.bf16.mxu0 %vm3618_vm7, %v2998_v6 }
0x1161   :  { %3002 = vmatpush1.bf16.msk.msra.mxu0 %vm3635_vm8, %v3001_v51 }
0x1163   :  { %v2393_v42 = vpop.permute.xlu0 %2392  ;;  %v2398_v48 = vpop.permute.xlu1 %2397 }
0x1164   :  { %3003 = vmatmul.mubr.msk.bf16.vlgmr.msra.gmra.mrb[24].mxu0 %vm5072_vm4, %v3340_v16 }
0x1165   :  { %2468 = vmatprep.mubr.bf16.mxu0 %v3398_v1 }
0x1167   :  { %v2403_v31 = vpop.permute.xlu0 %2402  ;;  %v2408_v62 = vpop.permute.xlu1 %2407 }
0x116c   :  { %3004 = vmatmul.mubr.msk.bf16.gmra.mrb[28].mxu0 %vm5073_vm1, %v3341_v0 }
0x1237   :  { %v2460_v37 = vpop.f32.mrb[24].mxu0 }
0x1238   :  { %v2461_v57 = vadd.f32 %v2460_v37, %v2393_v42  ;;  %v2462_v5 = vpop.f32.mrb[25].mxu0 }
0x1239   :  { %v2463_v34 = vadd.f32 %v2462_v5, %v2393_v42  ;;  %v2464_v25 = vpop.f32.mrb[26].mxu0 }
0x123a   :  { %v2479_v50 = vadd.f32 %v2461_v57, %v4732_v54  ;;  %v2465_v47 = vadd.f32 %v2464_v25, %v2398_v48  ;;  %v2466_v7 = vpop.f32.mrb[27].mxu0 }
0x123b   :  { %v2480_v61 = vadd.f32 %v2463_v34, %v4734_v39  ;;  %v2467_v1 = vadd.f32 %v2466_v7, %v2398_v48 }
0x123c   :  { %vm2487_vm7 = vcmp.gt.f32.partialorder %v2479_v50, 0.0  ;;  %v2495_v56 = vmul.f32 0.2, %v2479_v50  ;;  %v2481_v29 = vadd.f32 %v2465_v47, %v4736_v15 }
0x123d   :  { %vm2488_vm8 = vcmp.gt.f32.partialorder %v2480_v61, 0.0  ;;  %v2496_v59 = vmul.f32 0.2, %v2480_v61  ;;  %v2482_v45 = vadd.f32 %v2467_v1, %v4738_v18 }
0x123e   :  { %vm2489_vm14 = vcmp.gt.f32.partialorder %v2481_v29, 0.0  ;;  %v2497_v40 = vmul.f32 0.2, %v2481_v29  ;;  %v4849_v33 = vsel %vm2487_vm7, %v2479_v50, %v2495_v56 }
0x123f   :  { %vm2490_vm11 = vcmp.gt.f32.partialorder %v2482_v45, 0.0  ;;  %v2498_v54 = vmul.f32 0.2, %v2482_v45  ;;  %v2470_v46 = vpop.f32.mrb[28].mxu0  ;;  %v4851_v43 = vsel %vm2488_vm8, %v2480_v61, %v2496_v59  ;;  %v2527_v18 = vmul.f32 %v4849_v33, %v4849_v33 }
0x1240   :  { %v2471_v39 = vadd.f32 %v2470_v46, %v2403_v31  ;;  %v2472_v55 = vpop.f32.mrb[29].mxu0  ;;  %v2511_v30 = vadd.f32 %v4851_v43, %v4849_v33  ;;  %v4855_v15 = vsel %vm2489_vm14, %v2481_v29, %v2497_v40  ;;  %v2528_v2 = vmul.f32 %v4851_v43, %v4851_v43 }
0x1241   :  { %v2473_v23 = vadd.f32 %v2472_v55, %v2403_v31  ;;  %v2474_v49 = vpop.f32.mrb[30].mxu0  ;;  %v4859_v41 = vsel %vm2490_vm11, %v2482_v45, %v2498_v54  ;;  %v2529_v38 = vmul.f32 %v4855_v15, %v4855_v15 }
0x1242   :  { %v2483_v9 = vadd.f32 %v2471_v39, %v4750_v13  ;;  %v2475_v32 = vadd.f32 %v2474_v49, %v2408_v62  ;;  %v2476_v8 = vpop.f32.mrb[31].mxu0  ;;  %2512 = vadd.xlane.f32.xlu0 %v2511_v30  ;;  %v2514_v11 = vadd.f32 %v4859_v41, %v4855_v15  ;;  %v2530_v12 = vmul.f32 %v4859_v41, %v4859_v41 }
0x1243   :  { %v2484_v44 = vadd.f32 %v2473_v23, %v4752_v17  ;;  %v2477_v14 = vadd.f32 %v2476_v8, %v2408_v62  ;;  %v2535_v28 = vadd.f32 %v2528_v2, %v2527_v18  ;;  %v3006_v23 = vld [vmem:[%s4968_s5 + $0xc8] sm:$0xff]  ;;  %v3005_v2 = vld [vmem:[%s4968_s5 + $0xc0] sm:$0xff] }
0x1244   :  { %vm2491_vm5 = vcmp.gt.f32.partialorder %v2483_v9, 0.0  ;;  %v2499_v21 = vmul.f32 0.2, %v2483_v9  ;;  %v2485_v63 = vadd.f32 %v2475_v32, %v4754_v27  ;;  %2515 = vadd.xlane.f32.xlu1 %v2514_v11  ;;  %v2538_v10 = vadd.f32 %v2530_v12, %v2529_v38  ;;  %v3009_v12 = vld [vmem:[%s4969_s6 + $0xc0] sm:$0xff] }
0x1245   :  { %vm2492_vm9 = vcmp.gt.f32.partialorder %v2484_v44, 0.0  ;;  %v2500_v13 = vmul.f32 0.2, %v2484_v44  ;;  %v2486_v36 = vadd.f32 %v2477_v14, %v4756_v20  ;;  %v3007_v14 = vld [vmem:[%s4968_s5 + $0xd0] sm:$0xff] }
0x1246   :  { %vm2493_vm12 = vcmp.gt.f32.partialorder %v2485_v63, 0.0  ;;  %v2501_v4 = vmul.f32 0.2, %v2485_v63  ;;  %2539 = vadd.xlane.f32.xlu0 %v2538_v10  ;;  %v4873_v35 = vsel %vm2491_vm5, %v2483_v9, %v2499_v21 }
0x1247   :  { %vm2494_vm6 = vcmp.gt.f32.partialorder %v2486_v36, 0.0  ;;  %v2502_v19 = vmul.f32 0.2, %v2486_v36  ;;  %v4875_v17 = vsel %vm2492_vm9, %v2484_v44, %v2500_v13  ;;  %v2531_v3 = vmul.f32 %v4873_v35, %v4873_v35  ;;  %v3010_v44 = vld [vmem:[%s4969_s6 + $0xc8] sm:$0xff] }
0x1248   :  { %2536 = vadd.xlane.f32.xlu1 %v2535_v28  ;;  %v2517_v27 = vadd.f32 %v4875_v17, %v4873_v35  ;;  %v2532_v20 = vmul.f32 %v4875_v17, %v4875_v17  ;;  %v4883_v24 = vsel %vm2493_vm12, %v2485_v63, %v2501_v4  ;;  %v3011_v4 = vld [vmem:[%s4969_s6 + $0xd0] sm:$0xff] }
0x1249   :  { %v4885_v58 = vsel %vm2494_vm6, %v2486_v36, %v2502_v19  ;;  %v2533_v60 = vmul.f32 %v4883_v24, %v4883_v24  ;;  %v3008_v19 = vld [vmem:[%s4968_s5 + $0xd8] sm:$0xff] }
0x124a   :  { %2518 = vadd.xlane.f32.xlu0 %v2517_v27  ;;  %v2541_v22 = vadd.f32 %v2532_v20, %v2531_v3  ;;  %v2520_v26 = vadd.f32 %v4885_v58, %v4883_v24  ;;  %v2534_v6 = vmul.f32 %v4885_v58, %v4885_v58 }
0x124c   :  { %2542 = vadd.xlane.f32.xlu1 %v2541_v22  ;;  %v2544_v51 = vadd.f32 %v2534_v6, %v2533_v60 }
0x124e   :  { %2521 = vadd.xlane.f32.xlu0 %v2520_v26  ;;  %v3012_v26 = vld [vmem:[%s4969_s6 + $0xd8] sm:$0xff] }
0x1252   :  { %2545 = vadd.xlane.f32.xlu0 %v2544_v51 }
0x12cf   :  { %v2513_v16 = vpop.xlane.xlu0 %2512 }
0x12d0   :  { %v2523_v42 = vmul.f32 0.00390625, %v2513_v16 }
0x12d1   :  { %v2516_v0 = vpop.xlane.xlu1 %2515 }
0x12d2   :  { %v2524_v37 = vmul.f32 0.00390625, %v2516_v0  ;;  %v2551_v25 = vmul.f32 %v2523_v42, %v2523_v42 }
0x12d3   :  { %v2540_v57 = vpop.xlane.xlu0 %2539 }
0x12d4   :  { %v2552_v5 = vmul.f32 %v2524_v37, %v2524_v37  ;;  %v2548_v48 = vmul.f32 0.00390625, %v2540_v57 }
0x12d5   :  { %v2537_v34 = vpop.xlane.xlu1 %2536 }
0x12d6   :  { %v2556_v50 = vsub.f32 %v2548_v48, %v2552_v5  ;;  %v2547_v47 = vmul.f32 0.00390625, %v2537_v34 }
0x12d7   :  { %v2519_v7 = vpop.xlane.xlu0 %2518 }
0x12d8   :  { %v2560_v61 = vadd.f32 1e-05, %v2556_v50  ;;  %v2555_v1 = vsub.f32 %v2547_v47, %v2551_v25  ;;  %v2525_v56 = vmul.f32 0.00390625, %v2519_v7 }
0x12d9   :  { %v2543_v29 = vpop.xlane.xlu1 %2542 }
0x12da   :  { %3390 = vrsqrt.f32 %v2560_v61  ;;  %v2559_v59 = vadd.f32 1e-05, %v2555_v1  ;;  %v2553_v45 = vmul.f32 %v2525_v56, %v2525_v56  ;;  %v2549_v40 = vmul.f32 0.00390625, %v2543_v29 }
0x12db   :  { %v2522_v31 = vpop.xlane.xlu0 %2521 }
0x12dc   :  { %3392 = vrsqrt.f32 %v2559_v59  ;;  %v2557_v54 = vsub.f32 %v2549_v40, %v2553_v45  ;;  %v2526_v46 = vmul.f32 0.00390625, %v2522_v31 }
0x12de   :  { %v2561_v39 = vadd.f32 1e-05, %v2557_v54  ;;  %v2554_v30 = vmul.f32 %v2526_v46, %v2526_v46 }
0x12df   :  { %v2546_v55 = vpop.xlane.xlu0 %2545 }
0x12e0   :  { %3394 = vrsqrt.f32 %v2561_v39  ;;  %v2550_v18 = vmul.f32 0.00390625, %v2546_v55 }
0x12e2   :  { %v2558_v62 = vsub.f32 %v2550_v18, %v2554_v30 }
0x12e4   :  { %v3391_v49 = vpop.eup %3390  ;;  %v2562_v38 = vadd.f32 1e-05, %v2558_v62 }
0x12e5   :  { %v2573_v9 = vmul.f32 %v3391_v49, %v3006_v23 }
0x12e6   :  { %v3393_v32 = vpop.eup %3392  ;;  %3396 = vrsqrt.f32 %v2562_v38 }
0x12e7   :  { %2583 = vperm.xlu0 %3020, %v2573_v9   ;;  %v2572_v8 = vmul.f32 %v3393_v32, %v3005_v2  ;;  %v2610_v11 = vmul.f32 %v2573_v9, %v2524_v37 }
0x12e9   :  { %2578 = vperm.xlu1 %3021, %v2572_v8   ;;  %v2609_v21 = vmul.f32 %v2572_v8, %v2523_v42  ;;  %v2614_v13 = vsub.f32 %v3010_v44, %v2610_v11 }
0x12ea   :  { %v3395_v63 = vpop.eup %3394 }
0x12eb   :  { %v2613_v10 = vsub.f32 %v3009_v12, %v2609_v21  ;;  %v2574_v36 = vmul.f32 %v3395_v63, %v3007_v14 }
0x12ed   :  { %2619 = vperm.xlu0 %3020, %v2613_v10   ;;  %2624 = vperm.xlu1 %3021, %v2614_v13   ;;  %v2611_v28 = vmul.f32 %v2574_v36, %v2525_v56 }
0x12ef   :  { %v2615_v3 = vsub.f32 %v3011_v4, %v2611_v28 }
0x12f0   :  { %v3397_v27 = vpop.eup %3396 }
0x12f1   :  { %2588 = vperm.xlu1 %3021, %v2574_v36   ;;  %2629 = vperm.xlu0 %3020, %v2615_v3   ;;  %v2575_v20 = vmul.f32 %v3397_v27, %v3008_v19 }
0x12f3   :  { %v2612_v22 = vmul.f32 %v2575_v20, %v2526_v46 }
0x12f5   :  { %2593 = vperm.xlu1 %3021, %v2575_v20   ;;  %v2616_v60 = vsub.f32 %v3012_v26, %v2612_v22 }
0x12f9   :  { %2634 = vperm.xlu1 %3021, %v2616_v60  }
0x1366   :  { %v2584_v6 = vpop.permute.xlu0 %2583 }
0x1367   :  { %v2598_v57 = vmul.f32 %v2584_v6, %v4855_v15  ;;  %v2599_v5 = vmul.f32 %v2584_v6, %v4859_v41 }
0x1368   :  { %v2579_v51 = vpop.permute.xlu1 %2578 }
0x1369   :  { %v2596_v16 = vmul.f32 %v2579_v51, %v4849_v33  ;;  %v2597_v0 = vmul.f32 %v2579_v51, %v4851_v43 }
0x136c   :  { %v2625_v42 = vpop.permute.xlu1 %2624  ;;  %v2620_v37 = vpop.permute.xlu0 %2619 }
0x136d   :  { %v2637_v48 = vadd.f32 %v2620_v37, %v2596_v16  ;;  %v2638_v34 = vadd.f32 %v2620_v37, %v2597_v0  ;;  %v2639_v25 = vadd.f32 %v2625_v42, %v2598_v57  ;;  %v2640_v50 = vadd.f32 %v2625_v42, %v2599_v5 }
0x136f   :  { %v2670_v47 = vsel %vm2668_vm3, %v2638_v34, 0.0  ;;  %v2647_v33 = vsel %vm2645_vm15, %v2637_v48, 0.0  ;;  %v2649_v56 = vsel %vm2645_vm15, %v2639_v25, 0.0  ;;  %v2672_v29 = vsel %vm2668_vm3, %v2640_v50, 0.0 }
0x1370   :  { %v2589_v43 = vpop.permute.xlu1 %2588  ;;  %2678 = vadd.xlane.f32.xlu1 %v2670_v47  ;;  %2656 = vadd.xlane.f32.xlu0 %v2647_v33  ;;  %v2630_v15 = vpop.permute.xlu0 %2629 }
0x1371   :  { %v2600_v7 = vmul.f32 %v2589_v43, %v4873_v35  ;;  %v2601_v61 = vmul.f32 %v2589_v43, %v4875_v17 }
0x1373   :  { %v2641_v1 = vadd.f32 %v2630_v15, %v2600_v7  ;;  %v2642_v41 = vadd.f32 %v2630_v15, %v2601_v61 }
0x1374   :  { %v2594_v59 = vpop.permute.xlu1 %2593  ;;  %2659 = vadd.xlane.f32.xlu1 %v2649_v56  ;;  %2681 = vadd.xlane.f32.xlu0 %v2672_v29 }
0x1375   :  { %v2602_v45 = vmul.f32 %v2594_v59, %v4883_v24  ;;  %v2674_v40 = vsel %vm2668_vm3, %v2642_v41, 0.0  ;;  %v2651_v35 = vsel %vm2645_vm15, %v2641_v1, 0.0  ;;  %v2603_v31 = vmul.f32 %v2594_v59, %v4885_v58 }
0x1378   :  { %v2635_v17 = vpop.permute.xlu1 %2634  ;;  %2684 = vadd.xlane.f32.xlu1 %v2674_v40  ;;  %2662 = vadd.xlane.f32.xlu0 %v2651_v35 }
0x1379   :  { %v2643_v54 = vadd.f32 %v2635_v17, %v2602_v45  ;;  %v2644_v46 = vadd.f32 %v2635_v17, %v2603_v31 }
0x137b   :  { %v2653_v39 = vsel %vm2645_vm15, %v2643_v54, 0.0  ;;  %v2676_v24 = vsel %vm2668_vm3, %v2644_v46, 0.0 }
0x137c   :  { %2665 = vadd.xlane.f32.xlu0 %v2653_v39 }
0x1380   :  { %2687 = vadd.xlane.f32.xlu0 %v2676_v24 }
0x13fd   :  { %v2679_v55 = vpop.xlane.xlu1 %2678  ;;  %v2657_v30 = vpop.xlane.xlu0 %2656 }
0x13fe   :  { %v2690_v18 = vsel %vm2689_vm0, %v2657_v30, %v2679_v55 }
0x13ff   :  { %2695 = vst.msk [vmem:[%s4970_s7] sm:$0xff] %vm2694_vm2, %v2690_v18 }
0x1401   :  { %v2660_v58 = vpop.xlane.xlu1 %2659  ;;  %v2682_v62 = vpop.xlane.xlu0 %2681 }
0x1402   :  { %v2691_v52 = vsel %vm2689_vm0, %v2660_v58, %v2682_v62 }
0x1403   :  { %2696 = vst.msk [vmem:[%s4970_s7 + $0x8] sm:$0xff] %vm2694_vm2, %v2691_v52 }
0x1405   :  { %v2685_v53 = vpop.xlane.xlu1 %2684  ;;  %v2663_v23 = vpop.xlane.xlu0 %2662 }
0x1406   :  { %v2692_v49 = vsel %vm2689_vm0, %v2663_v23, %v2685_v53 }
0x1407   :  { %2697 = vst.msk [vmem:[%s4970_s7 + $0x10] sm:$0xff] %vm2694_vm2, %v2692_v49 }
0x1409   :  { %v2666_v38 = vpop.xlane.xlu0 %2665 }
0x140d   :  { %v2688_v2 = vpop.xlane.xlu0 %2687 }
0x140e   :  { %v2693_v9 = vsel %vm2689_vm0, %v2666_v38, %v2688_v2 }
0x140f   :  { %2698 = vst.msk [vmem:[%s4970_s7 + $0x18] sm:$0xff] %vm2694_vm2, %v2693_v9 }

</bundles_post_ra>
